<compile_context>
chip_gen: v7x
topology: tpu7x:2x2x1
jax: 0.10.0
libtpu: 0.0.40
codegen_flags: <defaults>
</compile_context>

<pallas_src>
import functools

import jax
import jax.numpy as jnp
from jax.experimental import pallas as pl
from jax.experimental.pallas import tpu as pltpu


# ----------------------------------------------------------------------------
# Kernel
# ----------------------------------------------------------------------------
def _effnet_head_kernel(x_ref, w_pw_ref, bn_shift_ref, w_cls_ref, b_cls_ref,
                        out_ref, *, hw, hw_pad, silu_bf16):
    """One batch tile: 1x1 conv (+folded BN) -> SiLU -> masked mean -> Linear."""
    tb = out_ref.shape[0]
    c_f = w_pw_ref.shape[1]

    # Pointwise (1x1) conv as ONE flat bf16 MXU matmul with f32 accumulation:
    # [tb*hw_pad, c_in](bf16) @ [c_in, c_f](bf16) -> f32.
    y = jnp.dot(x_ref[...], w_pw_ref[...], preferred_element_type=jnp.float32)

    # Folded BatchNorm: the scale is pre-folded into w_pw, only the f32 shift
    # remains.
    y = y + bn_shift_ref[...]

    # SiLU. bf16 elementwise on bf16-native VPU/EUP chips (v6e/v7x), f32 on
    # v5e (no bf16 VPU/EUP there).
    if silu_bf16:
        y = y.astype(jnp.bfloat16)
    y = y * jax.nn.sigmoid(y)

    # AdaptiveAvgPool2d(1) + Flatten: masked spatial mean.  hw_pad is a
    # multiple of 8 and c_f a multiple of 128, so this reshape is a free view
    # (no VMEM relayout).
    y3 = y.reshape(tb, hw_pad, c_f)
    if hw != hw_pad:
        # Padded spatial rows carry silu(bn_shift) != 0 and MUST be masked.
        sp = jax.lax.broadcasted_iota(jnp.int32, (1, hw_pad, c_f), 1)
        y3 = jnp.where(sp < hw, y3, 0.0)
    # f32 pool accumulation; the 1/hw mean scale is folded into w_cls.
    feat = y3.astype(jnp.float32).sum(axis=1)                 # [tb, c_f]

    # Dropout(p=0.2 / 0.4) is identity in eval (inference) mode.

    # Linear classifier (bf16 MXU, f32 acc); N is padded lane-dense to 128.
    out = jnp.dot(feat.astype(jnp.bfloat16), w_cls_ref[...],
                  preferred_element_type=jnp.float32) + b_cls_ref[...]
    out_ref[...] = out.astype(out_ref.dtype)


# ----------------------------------------------------------------------------
# Chip-aware planning helpers
# ----------------------------------------------------------------------------
def _chip_traits():
    """Return (vmem_capacity_bytes, multi_tensorcore, bf16_elementwise_ok)."""
    kind = ""
    try:
        kind = jax.local_devices()[0].device_kind.lower()
    except Exception:
        pass
    is_v7 = ("v7" in kind) or ("7x" in kind)
    is_v6 = "v6" in kind
    is_v5 = "v5" in kind
    try:
        vmem_cap = int(pltpu.get_tpu_info().vmem_capacity_bytes)
    except Exception:
        # v7x: 64 MiB per TC; v5e/v6e: 128 MiB; unknown: be conservative.
        vmem_cap = (64 << 20) if is_v7 else ((128 << 20) if (is_v5 or is_v6)
                                             else (64 << 20))
    # bf16 elementwise only where the VPU/EUP are bf16-native.
    return vmem_cap, is_v7, (is_v6 or is_v7)


def _pick_block_b(batch, max_tb, want_grid_ge2):
    """Largest batch tile that divides `batch`, is sublane-aligned (multiple
    of 8 unless it is the whole batch), fits the VMEM budget and — on
    2-TensorCore parts — leaves a grid of >= 2 steps for the parallel axis."""
    divisors = [d for d in range(1, batch + 1)
                if batch % d == 0 and (d % 8 == 0 or d == batch)]
    fitting = [d for d in divisors if d <= max(max_tb, 1)]
    if want_grid_ge2:
        good = [d for d in fitting if batch // d >= 2]
        if good:
            return max(good)
        good = [d for d in divisors if batch // d >= 2]
        if good:                       # keep both cores busy even if tight
            return min(good)
    if fitting:
        return max(fitting)
    return min(divisors)               # may exceed budget: guarded by caller


def _vmem_plan(batch, hw_pad, c_in, c_f, n_pad, vmem_cap, multi_tc, silu_bf16):
    """Pick the batch tile and the vmem_limit_bytes request."""
    f_act = 2 if silu_bf16 else 4
    # Resident (grid-invariant) operands.
    resident = c_in * c_f * 2 + c_f * 4 + c_f * n_pad * 2 + n_pad * 4
    # Per-sample VMEM: double-buffered bf16 x block, double-buffered f32 out
    # block, ~3 live copies of the [hw_pad, c_f] activation (matmul out / SiLU
    # / masked pool temp).
    per_sample = (2 * hw_pad * c_in * 2 + 2 * n_pad * 4
                  + hw_pad * c_f * 4 + 2 * hw_pad * c_f * f_act)
    budget = int(vmem_cap * 0.6) - 2 * resident - (4 << 20)
    max_tb = max(budget // max(per_sample, 1), 1)
    tb = _pick_block_b(batch, max_tb, want_grid_ge2=multi_tc)
    need = tb * per_sample + 2 * resident + (4 << 20)
    limit = int(min(max(need, 16 << 20), vmem_cap * 3 // 4))
    return tb, limit


def _resident_spec(shape, use_buffered):
    """BlockSpec for a grid-invariant (resident) 2D operand: constant
    index_map; single-buffered when supported (a never-refetched tile does
    not need double buffers)."""
    index_map = lambda i: (0, 0)
    if use_buffered and hasattr(pl, "Buffered"):
        try:
            return pl.BlockSpec(shape, index_map, pipeline_mode=pl.Buffered(1))
        except TypeError:
            pass
    return pl.BlockSpec(shape, index_map)


# ----------------------------------------------------------------------------
# Wrapper
# ----------------------------------------------------------------------------
@functools.partial(jax.jit, static_argnames=("num_classes", "use_buffered"))
def effnet_forward(x_nchw, params, num_classes, use_buffered=True):
    """x_nchw: [B, C_in, H, W] float32 -> logits [B, num_classes] float32."""
    B, C_in, H, W = x_nchw.shape
    HW = H * W
    HW_pad = int(pl.cdiv(HW, 8) * 8)          # sublane-aligned spatial extent

    # NCHW -> [B, HW, C_in], pad spatial to a multiple of 8, flatten to 2D and
    # cast to bf16 (halves the dominant streamed-input DMA bytes).  One cheap
    # XLA fusion in front of the pallas_call.
    x = jnp.transpose(x_nchw.reshape(B, C_in, HW), (0, 2, 1))
    if HW_pad != HW:
        x = jnp.pad(x, ((0, 0), (0, HW_pad - HW), (0, 0)))
    x = x.reshape(B * HW_pad, C_in).astype(jnp.bfloat16)

    w_pw = params['w_pw']          # [C_in, C_f]  bf16 (BN scale folded in)
    bn_shift = params['bn_shift']  # [1, C_f]     f32
    w_cls = params['w_cls_t']      # [C_f, N_pad] bf16 (1/HW pool scale folded)
    b_cls = params['b_cls']        # [1, N_pad]   f32

    C_f = w_pw.shape[1]
    N_pad = w_cls.shape[1]

    vmem_cap, multi_tc, bf16_ew = _chip_traits()
    TB, vmem_limit = _vmem_plan(B, HW_pad, C_in, C_f, N_pad, vmem_cap,
                                multi_tc, bf16_ew)
    grid = (B // TB,)

    kernel = functools.partial(_effnet_head_kernel, hw=HW, hw_pad=HW_pad,
                               silu_bf16=bf16_ew)

    out_pad = pl.pallas_call(
        kernel,
        out_shape=jax.ShapeDtypeStruct((B, N_pad), jnp.float32),
        grid_spec=pltpu.PrefetchScalarGridSpec(
            num_scalar_prefetch=0,
            grid=grid,
            in_specs=[
                pl.BlockSpec((TB * HW_pad, C_in), lambda i: (i, 0)),
                _resident_spec((C_in, C_f), use_buffered),
                _resident_spec((1, C_f), use_buffered),
                _resident_spec((C_f, N_pad), use_buffered),
                _resident_spec((1, N_pad), use_buffered),
            ],
            out_specs=pl.BlockSpec((TB, N_pad), lambda i: (i, 0)),
        ),
        compiler_params=pltpu.CompilerParams(
            dimension_semantics=("parallel",),
            vmem_limit_bytes=vmem_limit,
        ),
    )(x, w_pw, bn_shift, w_cls, b_cls)

    # Drop the lane padding of the classifier output.
    return out_pad[:, :num_classes]


# ----------------------------------------------------------------------------
# Parameter construction / one-time folding
# ----------------------------------------------------------------------------
def make_raw_params(key, C_in, C_f, num_classes):
    """'PyTorch-like' raw parameters of the head."""
    ks = jax.random.split(key, 7)
    return {
        'w_pw': jax.random.normal(ks[0], (C_in, C_f), jnp.float32) * 0.05,
        'gamma': 1.0 + 0.1 * jax.random.normal(ks[1], (C_f,), jnp.float32),
        'beta': 0.1 * jax.random.normal(ks[2], (C_f,), jnp.float32),
        'mean': 0.1 * jax.random.normal(ks[3], (C_f,), jnp.float32),
        'var': jnp.abs(jax.random.normal(ks[4], (C_f,), jnp.float32)) + 1.0,
        'eps': 1e-5,
        # nn.Linear(C_f, num_classes): weight [N, C_f], bias [N]
        'w_cls': jax.random.normal(ks[5], (num_classes, C_f), jnp.float32) * 0.05,
        'b_cls': 0.01 * jax.random.normal(ks[6], (num_classes,), jnp.float32),
    }


def fold_params(raw, hw):
    """One-time weight prep: fold BN scale into w_pw, fold the 1/HW pooling
    scale into the classifier weights, pad the classifier to a lane-dense
    multiple of 128, and cast the matmul operands to bf16."""
    C_in, C_f = raw['w_pw'].shape
    N = raw['w_cls'].shape[0]
    inv_std = 1.0 / jnp.sqrt(raw['var'] + raw['eps'])
    scale = raw['gamma'] * inv_std
    shift = raw['beta'] - raw['gamma'] * raw['mean'] * inv_std

    N_pad = int(pl.cdiv(N, 128) * 128)          # lane-dense classifier output
    w_cls_t = jnp.pad(raw['w_cls'].T * (1.0 / hw), ((0, 0), (0, N_pad - N)))
    b_cls = jnp.pad(raw['b_cls'], (0, N_pad - N)).reshape(1, N_pad)

    return {
        'w_pw': (raw['w_pw'] * scale[None, :]).astype(jnp.bfloat16),
        'bn_shift': shift.reshape(1, C_f).astype(jnp.float32),
        'w_cls_t': w_cls_t.astype(jnp.bfloat16),
        'b_cls': b_cls.astype(jnp.float32),
    }


# ----------------------------------------------------------------------------
# Pure-JAX reference (from the raw, un-folded f32 parameters)
# ----------------------------------------------------------------------------
def _reference(x_nchw, raw):
    B, C_in, H, W = x_nchw.shape
    x = jnp.transpose(x_nchw.reshape(B, C_in, H * W), (0, 2, 1))
    y = jnp.einsum('bsc,cf->bsf', x, raw['w_pw'])
    inv_std = 1.0 / jnp.sqrt(raw['var'] + raw['eps'])
    y = (y - raw['mean']) * inv_std * raw['gamma'] + raw['beta']
    y = y * jax.nn.sigmoid(y)
    feat = jnp.mean(y, axis=1)
    return feat @ raw['w_cls'].T + raw['b_cls']


if __name__ == "__main__":
    key = jax.random.PRNGKey(0)
    k_x, k_p = jax.random.split(key)

    # Small synthetic head shapes (real B0: HW=49, C_in=320, C_f=1280).
    # H=W=7 exercises the HW->HW_pad spatial padding + masked-mean path.
    B, C_in, H, W = 16, 32, 7, 7
    C_f = 128
    num_classes = 10

    x = jax.random.normal(k_x, (B, C_in, H, W), jnp.float32)
    raw = make_raw_params(k_p, C_in, C_f, num_classes)
    params = fold_params(raw, hw=H * W)

    try:
        out = jax.block_until_ready(effnet_forward(x, params, num_classes))
    except Exception:
        # Fallback without single-buffered (pl.Buffered(1)) resident weights,
        # in case this JAX build rejects pipeline_mode on pallas_call specs.
        out = jax.block_until_ready(
            effnet_forward(x, params, num_classes, use_buffered=False))

    ref = _reference(x, raw)
    assert out.shape == (B, num_classes)
    # bf16 MXU operands (with f32 accumulation) -> loosened tolerance vs the
    # pure-f32 reference.
    assert jnp.allclose(out, ref, atol=2e-2, rtol=2e-2), "mismatch vs reference"

    print("KERNEL_OK")
</pallas_src>

<mosaic_0001>
module attributes {stable_mosaic.version = 11 : i64} {
  func.func @_effnet_head_kernel(%arg0: i32, %arg1: memref<896x32xbf16, #tpu.memory_space<vmem>>, %arg2: memref<32x128xbf16, #tpu.memory_space<vmem>>, %arg3: memref<1x128xf32, #tpu.memory_space<vmem>>, %arg4: memref<128x128xbf16, #tpu.memory_space<vmem>>, %arg5: memref<1x128xf32, #tpu.memory_space<vmem>>, %arg6: memref<16x128xf32, #tpu.memory_space<vmem>>) attributes {dimension_semantics = [#tpu.dimension_semantics<parallel>], iteration_bounds = array<i64: 1>, scalar_prefetch = 0 : i64, scratch_operands = 0 : i64, tpu.core_type = #tpu.core_type<tc>, window_params = [{transform_indices = @transform_0, window_bounds = array<i64: 896, 32>}, {pipeline_mode = #tpu.pipeline_mode<synchronous>, transform_indices = @transform_1, window_bounds = array<i64: 32, 128>}, {pipeline_mode = #tpu.pipeline_mode<synchronous>, transform_indices = @transform_2, window_bounds = array<i64: 1, 128>}, {pipeline_mode = #tpu.pipeline_mode<synchronous>, transform_indices = @transform_3, window_bounds = array<i64: 128, 128>}, {pipeline_mode = #tpu.pipeline_mode<synchronous>, transform_indices = @transform_4, window_bounds = array<i64: 1, 128>}, {transform_indices = @transform_5, window_bounds = array<i64: 16, 128>}]} {
    %c0 = arith.constant 0 : index
    %c0_0 = arith.constant 0 : index
    %0 = vector.load %arg1[%c0, %c0_0] : memref<896x32xbf16, #tpu.memory_space<vmem>>, vector<896x32xbf16>
    %c0_1 = arith.constant 0 : index
    %c0_2 = arith.constant 0 : index
    %1 = vector.load %arg2[%c0_1, %c0_2] : memref<32x128xbf16, #tpu.memory_space<vmem>>, vector<32x128xbf16>
    %cst = arith.constant dense<0.000000e+00> : vector<896x128xf32>
    %2 = tpu.matmul %0, %1, %cst {dimension_numbers = #tpu.dot_dimension_numbers<[1], [0], [0], [1], [0, 0, 1, 1], [], []>} : vector<896x32xbf16>, vector<32x128xbf16>, vector<896x128xf32> -> vector<896x128xf32>
    %c0_3 = arith.constant 0 : index
    %c0_4 = arith.constant 0 : index
    %3 = vector.load %arg3[%c0_3, %c0_4] : memref<1x128xf32, #tpu.memory_space<vmem>>, vector<1x128xf32>
    %4 = vector.broadcast %3 : vector<1x128xf32> to vector<896x128xf32>
    %5 = arith.addf %2, %4 : vector<896x128xf32>
    %6 = arith.negf %5 : vector<896x128xf32>
    %7 = math.exp %6 : vector<896x128xf32>
    %cst_5 = arith.constant 1.000000e+00 : f32
    %8 = vector.broadcast %cst_5 : f32 to vector<896x128xf32>
    %9 = arith.addf %8, %7 : vector<896x128xf32>
    %10 = arith.divf %8, %9 : vector<896x128xf32>
    %11 = arith.mulf %5, %10 : vector<896x128xf32>
    %12 = vector.shape_cast %11 : vector<896x128xf32> to vector<16x56x128xf32>
    %13 = tpu.iota {dimensions = array<i32: 1>} : vector<1x56x128xi32>
    %c49_i32 = arith.constant 49 : i32
    %14 = vector.broadcast %c49_i32 : i32 to vector<1x56x128xi32>
    %15 = arith.cmpi slt, %13, %14 : vector<1x56x128xi32>
    %cst_6 = arith.constant 0.000000e+00 : f32
    %16 = vector.shape_cast %15 : vector<1x56x128xi1> to vector<1x56x128xi1>
    %17 = vector.broadcast %16 : vector<1x56x128xi1> to vector<16x56x128xi1>
    %18 = vector.broadcast %cst_6 : f32 to vector<16x56x128xf32>
    %19 = arith.select %17, %12, %18 : vector<16x56x128xi1>, vector<16x56x128xf32>
    %cst_7 = arith.constant dense<0.000000e+00> : vector<16x128xf32>
    %20 = vector.multi_reduction <add>, %19, %cst_7 [1] : vector<16x56x128xf32> to vector<16x128xf32>
    %21 = arith.truncf %20 : vector<16x128xf32> to vector<16x128xbf16>
    %c0_8 = arith.constant 0 : index
    %c0_9 = arith.constant 0 : index
    %22 = vector.load %arg4[%c0_8, %c0_9] : memref<128x128xbf16, #tpu.memory_space<vmem>>, vector<128x128xbf16>
    %cst_10 = arith.constant dense<0.000000e+00> : vector<16x128xf32>
    %23 = tpu.matmul %21, %22, %cst_10 {dimension_numbers = #tpu.dot_dimension_numbers<[1], [0], [0], [1], [0, 0, 1, 1], [], []>} : vector<16x128xbf16>, vector<128x128xbf16>, vector<16x128xf32> -> vector<16x128xf32>
    %c0_11 = arith.constant 0 : index
    %c0_12 = arith.constant 0 : index
    %24 = vector.load %arg5[%c0_11, %c0_12] : memref<1x128xf32, #tpu.memory_space<vmem>>, vector<1x128xf32>
    %25 = vector.broadcast %24 : vector<1x128xf32> to vector<16x128xf32>
    %26 = arith.addf %23, %25 : vector<16x128xf32>
    %c0_13 = arith.constant 0 : index
    %c0_14 = arith.constant 0 : index
    %27 = vector.load %arg6[%c0_13, %c0_14] : memref<16x128xf32, #tpu.memory_space<vmem>>, vector<16x128xf32>
    tpu.vector_store %arg6[%c0_13, %c0_14], %26 {strides = array<i32>} : memref<16x128xf32, #tpu.memory_space<vmem>>, vector<16x128xf32>,
    return
  }
  func.func @transform_0(%arg0: i32) -> (i32, i32) {
    %c0_i32 = arith.constant 0 : i32
    %c0_i32_0 = arith.constant 0 : i32
    return %arg0, %c0_i32 : i32, i32
  }
  func.func @transform_1(%arg0: i32) -> (i32, i32) {
    %c0_i32 = arith.constant 0 : i32
    %c0_i32_0 = arith.constant 0 : i32
    %c0_i32_1 = arith.constant 0 : i32
    return %c0_i32, %c0_i32_0 : i32, i32
  }
  func.func @transform_2(%arg0: i32) -> (i32, i32) {
    %c0_i32 = arith.constant 0 : i32
    %c0_i32_0 = arith.constant 0 : i32
    %c0_i32_1 = arith.constant 0 : i32
    return %c0_i32, %c0_i32_0 : i32, i32
  }
  func.func @transform_3(%arg0: i32) -> (i32, i32) {
    %c0_i32 = arith.constant 0 : i32
    %c0_i32_0 = arith.constant 0 : i32
    %c0_i32_1 = arith.constant 0 : i32
    return %c0_i32, %c0_i32_0 : i32, i32
  }
  func.func @transform_4(%arg0: i32) -> (i32, i32) {
    %c0_i32 = arith.constant 0 : i32
    %c0_i32_0 = arith.constant 0 : i32
    %c0_i32_1 = arith.constant 0 : i32
    return %c0_i32, %c0_i32_0 : i32, i32
  }
  func.func @transform_5(%arg0: i32) -> (i32, i32) {
    %c0_i32 = arith.constant 0 : i32
    %c0_i32_0 = arith.constant 0 : i32
    return %arg0, %c0_i32 : i32, i32
  }
}

module attributes {stable_mosaic.version = 11 : i64} {
  func.func @_effnet_head_kernel(%arg0: i32, %arg1: memref<896x32xbf16, #tpu.memory_space<vmem>>, %arg2: memref<32x128xbf16, #tpu.memory_space<vmem>>, %arg3: memref<1x128xf32, #tpu.memory_space<vmem>>, %arg4: memref<128x128xbf16, #tpu.memory_space<vmem>>, %arg5: memref<1x128xf32, #tpu.memory_space<vmem>>, %arg6: memref<16x128xf32, #tpu.memory_space<vmem>>) attributes {dimension_semantics = [#tpu.dimension_semantics<parallel>], iteration_bounds = array<i64: 1>, scalar_prefetch = 0 : i64, scratch_operands = 0 : i64, tpu.core_type = #tpu.core_type<tc>, window_params = [{transform_indices = @transform_0, window_bounds = array<i64: 896, 32>}, {pipeline_mode = #tpu.pipeline_mode<synchronous>, transform_indices = @transform_1, window_bounds = array<i64: 32, 128>}, {pipeline_mode = #tpu.pipeline_mode<synchronous>, transform_indices = @transform_2, window_bounds = array<i64: 1, 128>}, {pipeline_mode = #tpu.pipeline_mode<synchronous>, transform_indices = @transform_3, window_bounds = array<i64: 128, 128>}, {pipeline_mode = #tpu.pipeline_mode<synchronous>, transform_indices = @transform_4, window_bounds = array<i64: 1, 128>}, {transform_indices = @transform_5, window_bounds = array<i64: 16, 128>}]} {
    %c0 = arith.constant 0 : index
    %c0_0 = arith.constant 0 : index
    %0 = vector.load %arg1[%c0, %c0_0] : memref<896x32xbf16, #tpu.memory_space<vmem>>, vector<896x32xbf16>
    %c0_1 = arith.constant 0 : index
    %c0_2 = arith.constant 0 : index
    %1 = vector.load %arg2[%c0_1, %c0_2] : memref<32x128xbf16, #tpu.memory_space<vmem>>, vector<32x128xbf16>
    %cst = arith.constant dense<0.000000e+00> : vector<896x128xf32>
    %2 = tpu.matmul %0, %1, %cst {dimension_numbers = #tpu.dot_dimension_numbers<[1], [0], [0], [1], [0, 0, 1, 1], [], []>} : vector<896x32xbf16>, vector<32x128xbf16>, vector<896x128xf32> -> vector<896x128xf32>
    %c0_3 = arith.constant 0 : index
    %c0_4 = arith.constant 0 : index
    %3 = vector.load %arg3[%c0_3, %c0_4] : memref<1x128xf32, #tpu.memory_space<vmem>>, vector<1x128xf32>
    %4 = vector.broadcast %3 : vector<1x128xf32> to vector<896x128xf32>
    %5 = arith.addf %2, %4 : vector<896x128xf32>
    %6 = arith.negf %5 : vector<896x128xf32>
    %7 = math.exp %6 : vector<896x128xf32>
    %cst_5 = arith.constant 1.000000e+00 : f32
    %8 = vector.broadcast %cst_5 : f32 to vector<896x128xf32>
    %9 = arith.addf %8, %7 : vector<896x128xf32>
    %10 = arith.divf %8, %9 : vector<896x128xf32>
    %11 = arith.mulf %5, %10 : vector<896x128xf32>
    %12 = vector.shape_cast %11 : vector<896x128xf32> to vector<16x56x128xf32>
    %13 = tpu.iota {dimensions = array<i32: 1>} : vector<1x56x128xi32>
    %c49_i32 = arith.constant 49 : i32
    %14 = vector.broadcast %c49_i32 : i32 to vector<1x56x128xi32>
    %15 = arith.cmpi slt, %13, %14 : vector<1x56x128xi32>
    %cst_6 = arith.constant 0.000000e+00 : f32
    %16 = vector.shape_cast %15 : vector<1x56x128xi1> to vector<1x56x128xi1>
    %17 = vector.broadcast %16 : vector<1x56x128xi1> to vector<16x56x128xi1>
    %18 = vector.broadcast %cst_6 : f32 to vector<16x56x128xf32>
    %19 = arith.select %17, %12, %18 : vector<16x56x128xi1>, vector<16x56x128xf32>
    %cst_7 = arith.constant dense<0.000000e+00> : vector<16x128xf32>
    %20 = vector.multi_reduction <add>, %19, %cst_7 [1] : vector<16x56x128xf32> to vector<16x128xf32>
    %21 = arith.truncf %20 : vector<16x128xf32> to vector<16x128xbf16>
    %c0_8 = arith.constant 0 : index
    %c0_9 = arith.constant 0 : index
    %22 = vector.load %arg4[%c0_8, %c0_9] : memref<128x128xbf16, #tpu.memory_space<vmem>>, vector<128x128xbf16>
    %cst_10 = arith.constant dense<0.000000e+00> : vector<16x128xf32>
    %23 = tpu.matmul %21, %22, %cst_10 {dimension_numbers = #tpu.dot_dimension_numbers<[1], [0], [0], [1], [0, 0, 1, 1], [], []>} : vector<16x128xbf16>, vector<128x128xbf16>, vector<16x128xf32> -> vector<16x128xf32>
    %c0_11 = arith.constant 0 : index
    %c0_12 = arith.constant 0 : index
    %24 = vector.load %arg5[%c0_11, %c0_12] : memref<1x128xf32, #tpu.memory_space<vmem>>, vector<1x128xf32>
    %25 = vector.broadcast %24 : vector<1x128xf32> to vector<16x128xf32>
    %26 = arith.addf %23, %25 : vector<16x128xf32>
    %c0_13 = arith.constant 0 : index
    %c0_14 = arith.constant 0 : index
    %27 = vector.load %arg6[%c0_13, %c0_14] : memref<16x128xf32, #tpu.memory_space<vmem>>, vector<16x128xf32>
    tpu.vector_store %arg6[%c0_13, %c0_14], %26 {strides = array<i32>} : memref<16x128xf32, #tpu.memory_space<vmem>>, vector<16x128xf32>,
    return
  }
  func.func @transform_0(%arg0: i32) -> (i32, i32) {
    %c0_i32 = arith.constant 0 : i32
    %c0_i32_0 = arith.constant 0 : i32
    return %arg0, %c0_i32 : i32, i32
  }
  func.func @transform_1(%arg0: i32) -> (i32, i32) {
    %c0_i32 = arith.constant 0 : i32
    %c0_i32_0 = arith.constant 0 : i32
    %c0_i32_1 = arith.constant 0 : i32
    return %c0_i32, %c0_i32_0 : i32, i32
  }
  func.func @transform_2(%arg0: i32) -> (i32, i32) {
    %c0_i32 = arith.constant 0 : i32
    %c0_i32_0 = arith.constant 0 : i32
    %c0_i32_1 = arith.constant 0 : i32
    return %c0_i32, %c0_i32_0 : i32, i32
  }
  func.func @transform_3(%arg0: i32) -> (i32, i32) {
    %c0_i32 = arith.constant 0 : i32
    %c0_i32_0 = arith.constant 0 : i32
    %c0_i32_1 = arith.constant 0 : i32
    return %c0_i32, %c0_i32_0 : i32, i32
  }
  func.func @transform_4(%arg0: i32) -> (i32, i32) {
    %c0_i32 = arith.constant 0 : i32
    %c0_i32_0 = arith.constant 0 : i32
    %c0_i32_1 = arith.constant 0 : i32
    return %c0_i32, %c0_i32_0 : i32, i32
  }
  func.func @transform_5(%arg0: i32) -> (i32, i32) {
    %c0_i32 = arith.constant 0 : i32
    %c0_i32_0 = arith.constant 0 : i32
    return %arg0, %c0_i32 : i32, i32
  }
}

</mosaic_0001>

<bundles_post_ra>
// kernel: effnet_forward.1
= control target key start
LH: loop header
LB: loop body
LE: loop exit
PB: predicated region body
PF: predicated region fallthrough
CT: control target
= control target key end

     0   :  { %vm437_vm0 = vcmask 261120   ;;  %s4698_s0 = inlined_call_operand.vmem [shape: bf16[896,32], index: 0, kind: input, shape index: {}]   ;;  %s4699_s1 = inlined_call_operand.vmem [shape: bf16[32,128], index: 1, kind: input, shape index: {}]   ;;  %s4700_s2 = inlined_call_operand.vmem [shape: f32[1,128], index: 2, kind: input, shape index: {}]   ;;  %s4701_s3 = inlined_call_operand.vmem [shape: bf16[128,128], index: 3, kind: input, shape index: {}]   ;;  %s4702_s4 = inlined_call_operand.vmem [shape: f32[1,128], index: 4, kind: input, shape index: {}]   ;;  %s4703_s5 = inlined_call_operand.hbm [shape: f32[16,128], index: 5, kind: output, shape index: {}]  }
   0x1   :  { %v2853_v0 = vld [vmem:[%s4699_s1] sm:$0xff]   ;;  %v2854_v1 = vld [vmem:[%s4699_s1 + $0x8] sm:$0xff]   ;;  %v2856_v3 = vld [vmem:[%s4698_s0 + $0xf0] sm:$0xff]  }
   0x2   :  { %2708 = vmatprep.subr.bf16.mxu0 %v2853_v0  ;;  %2844 = vmatprep.subr.bf16.mxu1 %v2853_v0  ;;  %v2855_v2 = vld [vmem:[%s4698_s0] sm:$0xff]   ;;  %v2857_v4 = vld [vmem:[%s4698_s0 + $0x8] sm:$0xff]   ;;  %v2858_v5 = vld [vmem:[%s4698_s0 + $0xf8] sm:$0xff]  }
   0x3   :  { %2709 = vmatpush3.bf16.msra.mxu0 %v2853_v0  ;;  %2846 = vmatpush3.bf16.msra.mxu1 %v2853_v0  ;;  %v2859_v6 = vld [vmem:[%s4698_s0 + $0x10] sm:$0xff]   ;;  %v2860_v7 = vld [vmem:[%s4698_s0 + $0x100] sm:$0xff]   ;;  %v2861_v8 = vld [vmem:[%s4698_s0 + $0x18] sm:$0xff]  }
   0x4   :  { %2710 = vmatprep.subr.bf16.mxu0 %v2854_v1  ;;  %2845 = vmatprep.subr.bf16.mxu1 %v2854_v1  ;;  %v2862_v9 = vld [vmem:[%s4698_s0 + $0x108] sm:$0xff]   ;;  %v2863_v10 = vld [vmem:[%s4698_s0 + $0x20] sm:$0xff]   ;;  %v2864_v11 = vld [vmem:[%s4698_s0 + $0x110] sm:$0xff]  }
   0x5   :  { %2712 = vmatprep.mubr.msk.bf16.mxu0 %vm437_vm0, %v2855_v2  ;;  %2772 = vmatprep.mubr.msk.bf16.mxu1 %vm437_vm0, %v2856_v3  ;;  %v2865_v12 = vld [vmem:[%s4698_s0 + $0x28] sm:$0xff]   ;;  %v2866_v13 = vld [vmem:[%s4698_s0 + $0x118] sm:$0xff]   ;;  %v2867_v14 = vld [vmem:[%s4698_s0 + $0x30] sm:$0xff]  }
   0x6   :  { %v2868_v15 = vld [vmem:[%s4698_s0 + $0x120] sm:$0xff]   ;;  %v2869_v16 = vld [vmem:[%s4698_s0 + $0x38] sm:$0xff]   ;;  %v2870_v17 = vld [vmem:[%s4698_s0 + $0x128] sm:$0xff]  }
   0x7   :  { %2711 = vmatpush3.bf16.msra.mxu0 %v2854_v1  ;;  %2847 = vmatpush3.bf16.msra.mxu1 %v2854_v1  ;;  %v2871_v18 = vld [vmem:[%s4698_s0 + $0x40] sm:$0xff]   ;;  %v2872_v19 = vld [vmem:[%s4698_s0 + $0x130] sm:$0xff]   ;;  %v2873_v20 = vld [vmem:[%s4698_s0 + $0x48] sm:$0xff]  }
   0x8   :  { %v2874_v21 = vld [vmem:[%s4698_s0 + $0x138] sm:$0xff]   ;;  %v2875_v22 = vld [vmem:[%s4698_s0 + $0x50] sm:$0xff]   ;;  %v2876_v23 = vld [vmem:[%s4698_s0 + $0x140] sm:$0xff]  }
   0x9   :  { %v2877_v24 = vld [vmem:[%s4698_s0 + $0x58] sm:$0xff]   ;;  %v2878_v25 = vld [vmem:[%s4698_s0 + $0x148] sm:$0xff]   ;;  %v2879_v26 = vld [vmem:[%s4698_s0 + $0x60] sm:$0xff]  }
   0xa   :  { %2713 = vmatmul.mubr.msk.bf16.vlgmr.msra.gmra.mrb[0].mxu0 %vm437_vm0, %v2857_v4  ;;  %2773 = vmatmul.mubr.msk.bf16.vlgmr.msra.gmra.mrb[0].mxu1 %vm437_vm0, %v2858_v5  ;;  %v2880_v27 = vld [vmem:[%s4698_s0 + $0x150] sm:$0xff]   ;;  %v2881_v28 = vld [vmem:[%s4698_s0 + $0x68] sm:$0xff]   ;;  %v2882_v29 = vld [vmem:[%s4698_s0 + $0x158] sm:$0xff]  }
   0xb   :  { %2716 = vmatprep.mubr.msk.bf16.mxu0 %vm437_vm0, %v2859_v6  ;;  %2776 = vmatprep.mubr.msk.bf16.mxu1 %vm437_vm0, %v2860_v7  ;;  %v2883_v30 = vld [vmem:[%s4698_s0 + $0x70] sm:$0xff]   ;;  %v2884_v31 = vld [vmem:[%s4698_s0 + $0x160] sm:$0xff]   ;;  %v2885_v32 = vld [vmem:[%s4698_s0 + $0x78] sm:$0xff]  }
   0xc   :  { %v2886_v33 = vld [vmem:[%s4698_s0 + $0x168] sm:$0xff]   ;;  %v2887_v34 = vld [vmem:[%s4698_s0 + $0x80] sm:$0xff]   ;;  %v2888_v35 = vld [vmem:[%s4698_s0 + $0x170] sm:$0xff]  }
  0x12   :  { %2717 = vmatmul.mubr.msk.bf16.gmra.mrb[4].mxu0 %vm437_vm0, %v2861_v8  ;;  %2777 = vmatmul.mubr.msk.bf16.gmra.mrb[4].mxu1 %vm437_vm0, %v2862_v9 }
  0x13   :  { %2720 = vmatprep.mubr.msk.bf16.mxu0 %vm437_vm0, %v2863_v10  ;;  %2780 = vmatprep.mubr.msk.bf16.mxu1 %vm437_vm0, %v2864_v11 }
  0x1a   :  { %2721 = vmatmul.mubr.msk.bf16.gmra.mrb[8].mxu0 %vm437_vm0, %v2865_v12  ;;  %2781 = vmatmul.mubr.msk.bf16.gmra.mrb[8].mxu1 %vm437_vm0, %v2866_v13 }
  0x1b   :  { %2724 = vmatprep.mubr.msk.bf16.mxu0 %vm437_vm0, %v2867_v14  ;;  %2784 = vmatprep.mubr.msk.bf16.mxu1 %vm437_vm0, %v2868_v15 }
  0x22   :  { %2725 = vmatmul.mubr.msk.bf16.gmra.mrb[12].mxu0 %vm437_vm0, %v2869_v16  ;;  %2785 = vmatmul.mubr.msk.bf16.gmra.mrb[12].mxu1 %vm437_vm0, %v2870_v17 }
  0x23   :  { %2728 = vmatprep.mubr.msk.bf16.mxu0 %vm437_vm0, %v2871_v18  ;;  %2788 = vmatprep.mubr.msk.bf16.mxu1 %vm437_vm0, %v2872_v19 }
  0x2a   :  { %2729 = vmatmul.mubr.msk.bf16.gmra.mrb[16].mxu0 %vm437_vm0, %v2873_v20  ;;  %2789 = vmatmul.mubr.msk.bf16.gmra.mrb[16].mxu1 %vm437_vm0, %v2874_v21 }
  0x2b   :  { %2732 = vmatprep.mubr.msk.bf16.mxu0 %vm437_vm0, %v2875_v22  ;;  %2792 = vmatprep.mubr.msk.bf16.mxu1 %vm437_vm0, %v2876_v23 }
  0x32   :  { %2733 = vmatmul.mubr.msk.bf16.gmra.mrb[20].mxu0 %vm437_vm0, %v2877_v24  ;;  %2793 = vmatmul.mubr.msk.bf16.gmra.mrb[20].mxu1 %vm437_vm0, %v2878_v25 }
  0x33   :  { %2736 = vmatprep.mubr.msk.bf16.mxu0 %vm437_vm0, %v2879_v26  ;;  %2796 = vmatprep.mubr.msk.bf16.mxu1 %vm437_vm0, %v2880_v27 }
  0x3a   :  { %2737 = vmatmul.mubr.msk.bf16.gmra.mrb[24].mxu0 %vm437_vm0, %v2881_v28  ;;  %2797 = vmatmul.mubr.msk.bf16.gmra.mrb[24].mxu1 %vm437_vm0, %v2882_v29 }
  0x3b   :  { %2740 = vmatprep.mubr.msk.bf16.mxu0 %vm437_vm0, %v2883_v30  ;;  %2800 = vmatprep.mubr.msk.bf16.mxu1 %vm437_vm0, %v2884_v31 }
  0x3c   :  { %10 = vsyncpa [#allocation3], 0  ;;  %v2889_v36 = vld [vmem:[%s4698_s0 + $0x88] sm:$0xff]   ;;  %v2890_v37 = vld [vmem:[%s4698_s0 + $0x178] sm:$0xff]   ;;  %vm2275_vm2 = vcmask 1041409   ;;  %vm2277_vm3 = vcmask 1042434  }
  0x3d   :  { %v2891_v38 = vld [vmem:[%s4698_s0 + $0x90] sm:$0xff]   ;;  %v2892_v39 = vld [vmem:[%s4698_s0 + $0x180] sm:$0xff]   ;;  %v2893_v40 = vld [vmem:[%s4698_s0 + $0x98] sm:$0xff]   ;;  %vm2279_vm4 = vcmask 1043459   ;;  %vm2281_vm5 = vcmask 1044484   ;;  %vm3394_vm6 = vmmov 0  }
  0x3e   :  { %v2894_v41 = vld [vmem:[%s4698_s0 + $0x188] sm:$0xff]   ;;  %v2895_v42 = vld [vmem:[%s4698_s0 + $0xa0] sm:$0xff]   ;;  %v2896_v43 = vld [vmem:[%s4698_s0 + $0x190] sm:$0xff]   ;;  %vm2283_vm7 = vcmask 1045509   ;;  %vm2285_vm8 = vcmask 1046534   ;;  %vm2287_vm9 = vcmask 1047559  }
  0x3f   :  { %v2897_v44 = vld [vmem:[%s4698_s0 + $0xa8] sm:$0xff]   ;;  %v2898_v45 = vld [vmem:[%s4698_s0 + $0x198] sm:$0xff]   ;;  %v2899_v46 = vld [vmem:[%s4698_s0 + $0xb0] sm:$0xff]   ;;  %s3395_s25 = smov [#allocation2]  }
  0x40   :  { %v2900_v47 = vld [vmem:[%s4698_s0 + $0x1a0] sm:$0xff]   ;;  %v2901_v48 = vld [vmem:[%s4698_s0 + $0xb8] sm:$0xff]   ;;  %v2902_v49 = vld [vmem:[%s4698_s0 + $0x1a8] sm:$0xff]   ;;  %s2394_s26 = sshll.u32 %s3395_s25, 4  ;;  %s2395_s26 = int_to_ptr.vmem [resolvable:$true] %s2394_s26 }
  0x41   :  { %v2903_v50 = vld [vmem:[%s4698_s0 + $0xc0] sm:$0xff]   ;;  %v2904_v51 = vld [vmem:[%s4698_s0 + $0x1b0] sm:$0xff]   ;;  %v2905_v52 = vld [vmem:[%s4698_s0 + $0xc8] sm:$0xff]   ;;  %s3369_s27 = scalar_lea.vmem %s2395_s26, 256  ;;  %p3374_p1 = scmp.lt.s32.totalorder %s2395_s26, %s2395_s26 }
  0x42   :  { %2741 = vmatmul.mubr.msk.bf16.gmra.mrb[28].mxu0 %vm437_vm0, %v2885_v32  ;;  %2801 = vmatmul.mubr.msk.bf16.gmra.mrb[28].mxu1 %vm437_vm0, %v2886_v33  ;;  %v2906_v53 = vld [vmem:[%s4698_s0 + $0x1b8] sm:$0xff]   ;;  %v2907_v54 = vld [vmem:[%s4698_s0 + $0xd0] sm:$0xff]   ;;  %v2909_v56 = vld [vmem:[%s4698_s0 + $0xe0] sm:$0xff]   ;;  %p3370_p0 = scmp.ne.s32.totalorder %s2395_s26, %s3369_s27  ;;  %p3375_p2 = scmp.lt.s32.totalorder %s3369_s27, %s3369_s27 }
  0x43   :  { %2744 = vmatprep.mubr.msk.bf16.mxu0 %vm437_vm0, %v2887_v34  ;;  %2804 = vmatprep.mubr.msk.bf16.mxu1 %vm437_vm0, %v2888_v35  ;;  %v2908_v55 = vld [vmem:[%s4698_s0 + $0xd8] sm:$0xff]   ;;  %v2910_v57 = vld [vmem:[%s4698_s0 + $0xe8] sm:$0xff]   ;;  %v3661_v58 = vld [vmem:[%s4700_s2] ss:$0 sm:$0xff] }
  0x44   :  { %p3376_p3 = por %p3375_p2, %p3374_p1 }
  0x46   :  { %p3377_p4 = pnand %p3376_p3, %p3370_p0 }
  0x4a   :  { %2745 = vmatmul.mubr.msk.bf16.gmra.mrb[32].mxu0 %vm437_vm0, %v2889_v36  ;;  %2805 = vmatmul.mubr.msk.bf16.gmra.mrb[32].mxu1 %vm437_vm0, %v2890_v37 }
  0x4b   :  { %2748 = vmatprep.mubr.msk.bf16.mxu0 %vm437_vm0, %v2891_v38  ;;  %2808 = vmatprep.mubr.msk.bf16.mxu1 %vm437_vm0, %v2892_v39 }
  0x52   :  { %2749 = vmatmul.mubr.msk.bf16.gmra.mrb[36].mxu0 %vm437_vm0, %v2893_v40  ;;  %2809 = vmatmul.mubr.msk.bf16.gmra.mrb[36].mxu1 %vm437_vm0, %v2894_v41 }
  0x53   :  { %2752 = vmatprep.mubr.msk.bf16.mxu0 %vm437_vm0, %v2895_v42  ;;  %2812 = vmatprep.mubr.msk.bf16.mxu1 %vm437_vm0, %v2896_v43 }
  0x5a   :  { %2753 = vmatmul.mubr.msk.bf16.gmra.mrb[40].mxu0 %vm437_vm0, %v2897_v44  ;;  %2813 = vmatmul.mubr.msk.bf16.gmra.mrb[40].mxu1 %vm437_vm0, %v2898_v45 }
  0x5b   :  { %2756 = vmatprep.mubr.msk.bf16.mxu0 %vm437_vm0, %v2899_v46  ;;  %2816 = vmatprep.mubr.msk.bf16.mxu1 %vm437_vm0, %v2900_v47 }
  0x62   :  { %2757 = vmatmul.mubr.msk.bf16.gmra.mrb[44].mxu0 %vm437_vm0, %v2901_v48  ;;  %2817 = vmatmul.mubr.msk.bf16.gmra.mrb[44].mxu1 %vm437_vm0, %v2902_v49 }
  0x63   :  { %2760 = vmatprep.mubr.msk.bf16.mxu0 %vm437_vm0, %v2903_v50  ;;  %2820 = vmatprep.mubr.msk.bf16.mxu1 %vm437_vm0, %v2904_v51 }
  0x6a   :  { %2761 = vmatmul.mubr.msk.bf16.gmra.mrb[48].mxu0 %vm437_vm0, %v2905_v52  ;;  %2821 = vmatmul.mubr.msk.bf16.gmra.mrb[48].mxu1 %vm437_vm0, %v2906_v53 }
  0x6b   :  { %2764 = vmatprep.mubr.msk.bf16.mxu0 %vm437_vm0, %v2907_v54 }
  0x72   :  { %2765 = vmatmul.mubr.msk.bf16.gmra.mrb[52].mxu0 %vm437_vm0, %v2908_v55 }
  0x73   :  { %2768 = vmatprep.mubr.msk.bf16.mxu0 %vm437_vm0, %v2909_v56 }
  0x7a   :  { %2769 = vmatmul.mubr.msk.bf16.gmra.mrb[56].mxu0 %vm437_vm0, %v2910_v57 }
  0xdd   :  { %v2714_v59 = vpop.f32.mrb[0].mxu0  ;;  %v2774_v60 = vpop.f32.mrb[0].mxu1 }
  0xde   :  { %v3664_v61 = vadd.f32 %v2714_v59, %v3661_v58  ;;  %v640_v62 = vpop.f32.mrb[1].mxu0  ;;  %v3666_v63 = vpop.f32.mrb[1].mxu1  ;;  %v3702_v27 = vadd.f32 %v2774_v60, %v3661_v58 }
  0xdf   :  { %4712 = vst [vmem:[#allocation5_spill] sm:$0xff] %v3666_v63  ;;  %v3669_v0 = vadd.f32 %v3661_v58, %v640_v62  ;;  %v2715_v1 = vpop.f32.mrb[2].mxu0  ;;  %v2775_v2 = vpop.f32.mrb[2].mxu1 }
  0xe0   :  { %v2522_v3 = vmul.f32 -1.442695, %v3664_v61  ;;  %v3673_v4 = vadd.f32 %v2715_v1, %v3661_v58  ;;  %v3676_v5 = vadd.f32 %v2775_v2, %v3661_v58  ;;  %v643_v6 = vpop.f32.mrb[3].mxu0  ;;  %v3678_v7 = vpop.f32.mrb[3].mxu1  ;;  %4714 = vst [vmem:[#allocation7_spill] sm:$0xff] %v3702_v27 }
  0xe1   :  { %4713 = vst [vmem:[#allocation6_spill] sm:$0xff] %v3678_v7  ;;  %v2520_v8 = vmul.f32 -1.442695, %v3669_v0  ;;  %v3682_v9 = vadd.f32 %v3661_v58, %v643_v6  ;;  %v2582_v32 = vmul.f32 -1.442695, %v3702_v27 }
  0xe2   :  { %v2523_v10 = vmul.f32 -1.442695, %v3673_v4  ;;  %2919 = vpow2.f32 %v2522_v3  ;;  %v2583_v11 = vmul.f32 -1.442695, %v3676_v5 }
  0xe3   :  { %2921 = vpow2.f32 %v2520_v8  ;;  %v2521_v12 = vmul.f32 -1.442695, %v3682_v9 }
  0xe4   :  { %2923 = vpow2.f32 %v2523_v10 }
  0xe5   :  { %v2718_v13 = vpop.f32.mrb[4].mxu0  ;;  %v2778_v14 = vpop.f32.mrb[4].mxu1  ;;  %2925 = vpow2.f32 %v2583_v11 }
  0xe6   :  { %v3688_v15 = vadd.f32 %v2718_v13, %v3661_v58  ;;  %v3691_v16 = vadd.f32 %v2778_v14, %v3661_v58  ;;  %v656_v17 = vpop.f32.mrb[5].mxu0  ;;  %v896_v18 = vpop.f32.mrb[5].mxu1  ;;  %2927 = vpow2.f32 %v2521_v12 }
  0xe7   :  { %v3694_v19 = vadd.f32 %v3661_v58, %v656_v17  ;;  %v3697_v20 = vadd.f32 %v3661_v58, %v896_v18  ;;  %v2719_v21 = vpop.f32.mrb[6].mxu0  ;;  %v2779_v22 = vpop.f32.mrb[6].mxu1 }
  0xe8   :  { %v2526_v23 = vmul.f32 -1.442695, %v3688_v15  ;;  %v2586_v24 = vmul.f32 -1.442695, %v3691_v16  ;;  %v659_v25 = vpop.f32.mrb[7].mxu0  ;;  %v899_v26 = vpop.f32.mrb[7].mxu1  ;;  %v3707_v30 = vadd.f32 %v2719_v21, %v3661_v58  ;;  %v3712_v52 = vadd.f32 %v2779_v22, %v3661_v58 }
  0xe9   :  { %v2524_v28 = vmul.f32 -1.442695, %v3694_v19  ;;  %v2584_v29 = vmul.f32 -1.442695, %v3697_v20  ;;  %v3715_v55 = vadd.f32 %v3661_v58, %v659_v25  ;;  %v3718_v59 = vadd.f32 %v3661_v58, %v899_v26 }
  0xea   :  { %2929 = vpow2.f32 %v2526_v23  ;;  %v2527_v36 = vmul.f32 -1.442695, %v3707_v30  ;;  %v2587_v12 = vmul.f32 -1.442695, %v3712_v52 }
  0xeb   :  { %2931 = vpow2.f32 %v2586_v24  ;;  %v2525_v18 = vmul.f32 -1.442695, %v3715_v55  ;;  %v2585_v23 = vmul.f32 -1.442695, %v3718_v59 }
  0xec   :  { %2933 = vpow2.f32 %v2524_v28  ;;  %v2920_v31 = vpop.eup %2919 }
  0xed   :  { %2935 = vpow2.f32 %v2584_v29  ;;  %v2722_v33 = vpop.f32.mrb[8].mxu0  ;;  %v2782_v34 = vpop.f32.mrb[8].mxu1  ;;  %v1425_v43 = vadd.f32 1.0, %v2920_v31 }
  0xee   :  { %v2922_v35 = vpop.eup %2921  ;;  %v672_v37 = vpop.f32.mrb[9].mxu0  ;;  %2937 = vpow2.f32 %v2582_v32  ;;  %v3723_v6 = vadd.f32 %v2722_v33, %v3661_v58  ;;  %v3731_v13 = vadd.f32 %v2782_v34, %v3661_v58 }
  0xef   :  { %v912_v38 = vpop.f32.mrb[9].mxu1  ;;  %v1423_v39 = vadd.f32 1.0, %v2922_v35  ;;  %v2723_v40 = vpop.f32.mrb[10].mxu0  ;;  %2939 = vpow2.f32 %v2527_v36  ;;  %v3739_v21 = vadd.f32 %v3661_v58, %v672_v37 }
  0xf0   :  { %v2783_v41 = vpop.f32.mrb[10].mxu1  ;;  %v2924_v42 = vpop.eup %2923  ;;  %v3745_v24 = vadd.f32 %v3661_v58, %v912_v38  ;;  %v2530_v26 = vmul.f32 -1.442695, %v3723_v6  ;;  %v3751_v28 = vadd.f32 %v2723_v40, %v3661_v58  ;;  %v2590_v31 = vmul.f32 -1.442695, %v3731_v13 }
  0xf1   :  { %v675_v44 = vpop.f32.mrb[11].mxu0  ;;  %v2926_v45 = vpop.eup %2925  ;;  %v1426_v48 = vadd.f32 1.0, %v2924_v42  ;;  %2941 = vrcp.f32 %v1423_v39  ;;  %v3755_v32 = vadd.f32 %v2783_v41, %v3661_v58  ;;  %v2528_v34 = vmul.f32 -1.442695, %v3739_v21 }
  0xf2   :  { %v915_v46 = vpop.f32.mrb[11].mxu1  ;;  %v2928_v47 = vpop.eup %2927  ;;  %v1486_v49 = vadd.f32 1.0, %v2926_v45  ;;  %2943 = vrcp.f32 %v1425_v43  ;;  %v3759_v35 = vadd.f32 %v3661_v58, %v675_v44  ;;  %v2588_v39 = vmul.f32 -1.442695, %v3745_v24 }
  0xf3   :  { %v1424_v50 = vadd.f32 1.0, %v2928_v47  ;;  %v3767_v40 = vadd.f32 %v3661_v58, %v915_v46  ;;  %v2531_v44 = vmul.f32 -1.442695, %v3751_v28 }
  0xf4   :  { %v2930_v51 = vpop.eup %2929 }
  0xf5   :  { %v2932_v53 = vpop.eup %2931  ;;  %2945 = vrcp.f32 %v1424_v50  ;;  %v1429_v54 = vadd.f32 1.0, %v2930_v51  ;;  %v2726_v56 = vpop.f32.mrb[12].mxu0  ;;  %v2591_v51 = vmul.f32 -1.442695, %v3755_v32 }
  0xf6   :  { %v2934_v57 = vpop.eup %2933  ;;  %2947 = vrcp.f32 %v1426_v48  ;;  %v2786_v60 = vpop.f32.mrb[12].mxu1  ;;  %v1489_v2 = vadd.f32 1.0, %v2932_v53  ;;  %v3775_v45 = vadd.f32 %v2726_v56, %v3661_v58  ;;  %v2529_v56 = vmul.f32 -1.442695, %v3759_v35 }
  0xf7   :  { %v3720_v62 = vpop.f32.mrb[13].mxu0  ;;  %v2936_v1 = vpop.eup %2935  ;;  %2949 = vrcp.f32 %v1486_v49  ;;  %v1427_v3 = vadd.f32 1.0, %v2934_v57 }
  0xf8   :  { %v3725_v8 = vpop.f32.mrb[13].mxu1  ;;  %v3727_v10 = vpop.f32.mrb[14].mxu0  ;;  %2951 = vrcp.f32 %v1429_v54  ;;  %v1487_v11 = vadd.f32 1.0, %v2936_v1  ;;  %v3790_v1 = vadd.f32 %v2786_v60, %v3661_v58 }
  0xf9   :  { %v3733_v14 = vpop.f32.mrb[14].mxu1  ;;  %v3735_v17 = vpop.f32.mrb[15].mxu0  ;;  %2953 = vrcp.f32 %v1427_v3 }
  0xfa   :  { %v3741_v22 = vpop.f32.mrb[15].mxu1  ;;  %2955 = vrcp.f32 %v1487_v11  ;;  %v3747_v25 = vpop.eup %2937  ;;  %4716 = vst [vmem:[#allocation9_spill] sm:$0xff] %v3790_v1 }
  0xfb   :  { %4715 = vst [vmem:[#allocation8_spill] sm:$0xff] %v3747_v25  ;;  %2957 = vrcp.f32 %v1489_v2  ;;  %v2940_v29 = vpop.eup %2939  ;;  %v3859_v27 = vadd.f32 %v3661_v58, %v3741_v22 }
  0xfc   :  { %2959 = vpow2.f32 %v2587_v12  ;;  %v2942_v33 = vpop.eup %2941  ;;  %v1871_v12 = vlaneseq }
  0xfd   :  { %2961 = vpow2.f32 %v2525_v18  ;;  %v3761_v36 = vpop.f32.mrb[16].mxu0  ;;  %v3763_v37 = vpop.f32.mrb[16].mxu1  ;;  %v1759_v50 = vmul.f32 %v2942_v33, %v3669_v0  ;;  %v1430_v18 = vadd.f32 1.0, %v2940_v29 }
  0xfe   :  { %v2944_v38 = vpop.eup %2943  ;;  %2963 = vpow2.f32 %v2585_v23  ;;  %v3769_v41 = vpop.f32.mrb[17].mxu0  ;;  %v2534_v23 = vmul.f32 -1.442695, %v3775_v45  ;;  %v3874_v22 = vadd.f32 %v3763_v37, %v3661_v58 }
  0xff   :  { %v3771_v42 = vpop.f32.mrb[17].mxu1  ;;  %v2946_v43 = vpop.eup %2945  ;;  %2965 = vpow2.f32 %v2530_v26  ;;  %v1761_v0 = vmul.f32 %v2944_v38, %v3664_v61 }
 0x100   :  { %v3777_v47 = vpop.f32.mrb[18].mxu0  ;;  %v3779_v48 = vpop.f32.mrb[18].mxu1  ;;  %v1760_v46 = vmul.f32 %v2946_v43, %v3682_v9  ;;  %2967 = vpow2.f32 %v2590_v31  ;;  %v2589_v9 = vmul.f32 -1.442695, %v3767_v40  ;;  %4723 = vst [vmem:[#allocation16_spill] sm:$0xff] %v3874_v22 }
 0x101   :  { %v2948_v49 = vpop.eup %2947  ;;  %v3784_v53 = vpop.f32.mrb[19].mxu0  ;;  %2969 = vpow2.f32 %v2528_v34 }
 0x102   :  { %v3786_v54 = vpop.f32.mrb[19].mxu1  ;;  %v2950_v57 = vpop.eup %2949  ;;  %v2012_v3 = vadd.f32 %v1760_v46, %v1759_v50  ;;  %2971 = vpow2.f32 %v2588_v39  ;;  %v1762_v31 = vmul.f32 %v2948_v49, %v3673_v4  ;;  %v2594_v39 = vmul.f32 -1.442695, %v3790_v1 }
 0x103   :  { %v3792_v2 = vpop.eup %2951  ;;  %2973 = vpow2.f32 %v2531_v44  ;;  %v1822_v61 = vmul.f32 %v2950_v57, %v3676_v5  ;;  %v1872_v46 = vshrl.u32 %v1871_v12, 7 }
 0x104   :  { %v2954_v11 = vpop.eup %2953  ;;  %v2013_v33 = vadd.f32 %v2012_v3, %v1761_v0  ;;  %2975 = vpow2.f32 %v2591_v51 }
 0x105   :  { %v2956_v26 = vpop.eup %2955  ;;  %v1763_v60 = vmul.f32 %v2954_v11, %v3694_v19  ;;  %2977 = vpow2.f32 %v2529_v56  ;;  %v3804_v29 = vpop.f32.mrb[20].mxu0 }
 0x106   :  { %v3799_v34 = vpop.eup %2957  ;;  %v1823_v38 = vmul.f32 %v2956_v26, %v3697_v20  ;;  %v3806_v43 = vpop.f32.mrb[20].mxu1  ;;  %v2014_v50 = vadd.f32 %v2013_v33, %v1762_v31  ;;  %2979 = vpow2.f32 %v2589_v9  ;;  %v3824_v33 = vadd.s32 48, %v1872_v46 }
 0x107   :  { %v2960_v44 = vpop.eup %2959  ;;  %v3808_v4 = vpop.f32.mrb[21].mxu0  ;;  %2981 = vpow2.f32 %v2534_v23  ;;  %v3836_v46 = vadd.f32 %v3661_v58, %v3725_v8  ;;  %v3853_v8 = vadd.f32 %v3661_v58, %v3735_v17  ;;  %v3866_v17 = vadd.f32 %v3761_v36, %v3661_v58 }
 0x108   :  { %v3810_v19 = vpop.f32.mrb[21].mxu1  ;;  %v2962_v49 = vpop.eup %2961  ;;  %v3812_v51 = vadd.f32 %v1823_v38, %v1822_v61  ;;  %v3818_v56 = vadd.f32 %v2014_v50, %v1763_v60  ;;  %2983 = vrcp.f32 %v1430_v18  ;;  %v1490_v0 = vadd.f32 1.0, %v2960_v44 }
 0x109   :  { %v3814_v5 = vpop.f32.mrb[22].mxu0  ;;  %v3816_v20 = vpop.f32.mrb[22].mxu1  ;;  %v1428_v3 = vadd.f32 1.0, %v2962_v49  ;;  %2985 = vpow2.f32 %v2594_v39  ;;  %v3828_v49 = vadd.f32 %v3661_v58, %v3720_v62  ;;  %vm1885_vm1 = vcmp.lt.s32.totalorder %v3824_v33, 49 }
 0x10a   :  { %v2964_v57 = vpop.eup %2963  ;;  %v3820_v9 = vpop.f32.mrb[23].mxu0  ;;  %v2592_v36 = vmul.f32 -1.442695, %v3836_v46  ;;  %v2533_v37 = vmul.f32 -1.442695, %v3853_v8 }
 0x10b   :  { %v3822_v11 = vpop.f32.mrb[23].mxu1  ;;  %v2966_v26 = vpop.eup %2965  ;;  %v1488_v31 = vadd.f32 1.0, %v2964_v57  ;;  %2987 = vrcp.f32 %v1428_v3  ;;  %v2532_v25 = vmul.f32 -1.442695, %v3828_v49 }
 0x10c   :  { %v2968_v12 = vpop.eup %2967  ;;  %v1433_v60 = vadd.f32 1.0, %v2966_v26 }
 0x10d   :  { %v2970_v23 = vpop.eup %2969  ;;  %2989 = vrcp.f32 %v1488_v31  ;;  %v1493_v61 = vadd.f32 1.0, %v2968_v12  ;;  %v3830_v57 = vpop.f32.mrb[24].mxu0 }
 0x10e   :  { %v2972_v38 = vpop.eup %2971  ;;  %2991 = vrcp.f32 %v1490_v0  ;;  %v1431_v18 = vadd.f32 1.0, %v2970_v23  ;;  %v3832_v39 = vpop.f32.mrb[24].mxu1  ;;  %v3840_v0 = vadd.f32 %v3727_v10, %v3661_v58  ;;  %v3849_v23 = vadd.f32 %v3733_v14, %v3661_v58 }
 0x10f   :  { %v2974_v44 = vpop.eup %2973  ;;  %2993 = vrcp.f32 %v1493_v61  ;;  %v1491_v50 = vadd.f32 1.0, %v2972_v38  ;;  %v3842_v26 = vpop.f32.mrb[25].mxu0 }
 0x110   :  { %v2976_v3 = vpop.eup %2975  ;;  %2995 = vrcp.f32 %v1431_v18  ;;  %v3844_v31 = vpop.f32.mrb[25].mxu1  ;;  %4718 = vst [vmem:[#allocation11_spill] sm:$0xff] %v3849_v23  ;;  %v1434_v38 = vadd.f32 1.0, %v2974_v44  ;;  %v2535_v63 = vmul.f32 -1.442695, %v3840_v0 }
 0x111   :  { %4717 = vst [vmem:[#allocation10_spill] sm:$0xff] %v3844_v31  ;;  %v2978_v62 = vpop.eup %2977  ;;  %2997 = vrcp.f32 %v1491_v50  ;;  %v1494_v12 = vadd.f32 1.0, %v2976_v3  ;;  %v3855_v61 = vpop.f32.mrb[26].mxu0 }
 0x112   :  { %4719 = vst [vmem:[#allocation12_spill] sm:$0xff] %v3855_v61  ;;  %v2980_v10 = vpop.eup %2979  ;;  %2999 = vrcp.f32 %v1433_v60  ;;  %v1432_v18 = vadd.f32 1.0, %v2978_v62  ;;  %v3861_v50 = vpop.f32.mrb[26].mxu1  ;;  %v3891_v61 = vadd.f32 %v3661_v58, %v3771_v42  ;;  %v1825_v42 = vmul.f32 %v3799_v34, %v3691_v16 }
 0x113   :  { %4720 = vst [vmem:[#allocation13_spill] sm:$0xff] %v3861_v50  ;;  %v2982_v3 = vpop.eup %2981  ;;  %3001 = vrcp.f32 %v1494_v12  ;;  %v1492_v14 = vadd.f32 1.0, %v2980_v10  ;;  %v3868_v7 = vpop.f32.mrb[27].mxu0  ;;  %v3878_v12 = vadd.f32 %v3661_v58, %v3769_v41 }
 0x114   :  { %4721 = vst [vmem:[#allocation14_spill] sm:$0xff] %v3868_v7  ;;  %v3870_v60 = vpop.f32.mrb[27].mxu1  ;;  %v2984_v44 = vpop.eup %2983  ;;  %3003 = vrcp.f32 %v1432_v18  ;;  %v1437_v62 = vadd.f32 1.0, %v2982_v3  ;;  %v2595_v7 = vmul.f32 -1.442695, %v3849_v23  ;;  %v1765_v18 = vmul.f32 %v3792_v2, %v3688_v15 }
 0x115   :  { %4722 = vst [vmem:[#allocation15_spill] sm:$0xff] %v3870_v60  ;;  %v2986_v10 = vpop.eup %2985  ;;  %3005 = vrcp.f32 %v1492_v14  ;;  %v2593_v3 = vmul.f32 -1.442695, %v3859_v27  ;;  %v2538_v14 = vmul.f32 -1.442695, %v3866_v17  ;;  %v3893_v31 = vpop.f32.mrb[28].mxu0 }
 0x116   :  { %v2988_v60 = vpop.eup %2987  ;;  %3007 = vrcp.f32 %v1434_v38  ;;  %4724 = vst [vmem:[#allocation17_spill] sm:$0xff] %v3893_v31  ;;  %v3895_v23 = vpop.f32.mrb[28].mxu1  ;;  %v2598_v38 = vmul.f32 -1.442695, %v3874_v22  ;;  %v2536_v1 = vmul.f32 -1.442695, %v3878_v12 }
 0x117   :  { %v2990_v50 = vpop.eup %2989  ;;  %v1764_v41 = vmul.f32 %v2988_v60, %v3715_v55  ;;  %3009 = vrcp.f32 %v1437_v62  ;;  %4725 = vst [vmem:[#allocation18_spill] sm:$0xff] %v3895_v23  ;;  %v3900_v55 = vpop.f32.mrb[29].mxu0  ;;  %v3909_v23 = vadd.f32 %v3777_v47, %v3661_v58 }
 0x118   :  { %v2992_v15 = vpop.eup %2991  ;;  %v1824_v2 = vmul.f32 %v2990_v50, %v3718_v59  ;;  %3011 = vpow2.f32 %v2532_v25  ;;  %4726 = vst [vmem:[#allocation19_spill] sm:$0xff] %v3900_v55  ;;  %v3902_v60 = vpop.f32.mrb[29].mxu1  ;;  %v1906_v55 = vsel %vm1885_vm1, %v1765_v18, 0.0 }
 0x119   :  { %4727 = vst [vmem:[#allocation20_spill] sm:$0xff] %v3902_v60  ;;  %v2994_v62 = vpop.eup %2993  ;;  %v2016_v31 = vadd.f32 %v3818_v56, %v1764_v41  ;;  %3013 = vpow2.f32 %v2592_v36  ;;  %v3911_v59 = vpop.f32.mrb[30].mxu0  ;;  %v1766_v60 = vmul.f32 %v2984_v44, %v3707_v30  ;;  %v1826_v47 = vmul.f32 %v2992_v15, %v3712_v52 }
 0x11a   :  { %4728 = vst [vmem:[#allocation21_spill] sm:$0xff] %v3911_v59  ;;  %v3913_v25 = vpop.f32.mrb[30].mxu1  ;;  %v2996_v50 = vpop.eup %2995  ;;  %v2121_v22 = vadd.f32 %v3812_v51, %v1824_v2  ;;  %3015 = vpow2.f32 %v2535_v63  ;;  %v1829_v18 = vmul.f32 %v2994_v62, %v3731_v13  ;;  %v2596_v44 = vmul.f32 -1.442695, %v3891_v61 }
 0x11b   :  { %4729 = vst [vmem:[#allocation22_spill] sm:$0xff] %v3913_v25  ;;  %v3919_v16 = vpop.f32.mrb[31].mxu0  ;;  %v3921_v34 = vpop.f32.mrb[31].mxu1  ;;  %v3924_v36 = vadd.f32 %v2016_v31, %v1906_v55  ;;  %v1767_v41 = vmul.f32 %v2996_v50, %v3739_v21  ;;  %3017 = vpow2.f32 %v2595_v7  ;;  %v2539_v2 = vmul.f32 -1.442695, %v3909_v23 }
 0x11c   :  { %v2998_v56 = vpop.eup %2997  ;;  %v2122_v59 = vadd.f32 %v2121_v22, %v1825_v42  ;;  %3019 = vpow2.f32 %v2533_v37  ;;  %v3934_v7 = vadd.f32 %v3661_v58, %v3784_v53 }
 0x11d   :  { %v3000_v25 = vpop.eup %2999  ;;  %v1827_v30 = vmul.f32 %v2998_v56, %v3745_v24  ;;  %v2024_v51 = vadd.f32 %v1767_v41, %v1766_v60  ;;  %3021 = vpow2.f32 %v2593_v3  ;;  %v1497_v24 = vadd.f32 1.0, %v2986_v10  ;;  %v3937_v22 = vpop.f32.mrb[32].mxu0 }
 0x11e   :  { %v3002_v63 = vpop.eup %3001  ;;  %v2123_v31 = vadd.f32 %v2122_v59, %v1826_v47  ;;  %3023 = vpow2.f32 %v2538_v14  ;;  %v3939_v37 = vpop.f32.mrb[32].mxu1  ;;  %v2537_v50 = vmul.f32 -1.442695, %v3934_v7 }
 0x11f   :  { %v3004_v52 = vpop.eup %3003  ;;  %v1830_v15 = vmul.f32 %v3002_v63, %v3755_v32  ;;  %3025 = vpow2.f32 %v2598_v38  ;;  %v3944_v14 = vpop.f32.mrb[33].mxu0  ;;  %v3953_v38 = vadd.f32 %v3779_v48, %v3661_v58 }
 0x120   :  { %v3006_v13 = vpop.eup %3005  ;;  %v1768_v21 = vmul.f32 %v3004_v52, %v3759_v35  ;;  %v2124_v55 = vadd.f32 %v2123_v31, %v1827_v30  ;;  %3027 = vpow2.f32 %v2536_v1  ;;  %v3946_v53 = vpop.f32.mrb[33].mxu1  ;;  %v1769_v35 = vmul.f32 %v3000_v25, %v3723_v6 }
 0x121   :  { %v3008_v3 = vpop.eup %3007  ;;  %v3941_v60 = vadd.f32 %v1830_v15, %v1829_v18  ;;  %v1828_v32 = vmul.f32 %v3006_v13, %v3767_v40  ;;  %3029 = vpow2.f32 %v2596_v44  ;;  %v3955_v42 = vpop.f32.mrb[34].mxu0 }
 0x122   :  { %v3948_v62 = vpop.eup %3009  ;;  %v2025_v10 = vadd.f32 %v2024_v51, %v1768_v21  ;;  %v3957_v59 = vpop.f32.mrb[34].mxu1  ;;  %3031 = vpow2.f32 %v2539_v2  ;;  %v1770_v47 = vmul.f32 %v3008_v3, %v3751_v28  ;;  %v2599_v2 = vmul.f32 -1.442695, %v3953_v38 }
 0x123   :  { %v3012_v40 = vpop.eup %3011  ;;  %v1969_v1 = vsel %vm1885_vm1, %v1828_v32, 0.0  ;;  %v3962_v56 = vpop.f32.mrb[35].mxu0  ;;  %3033 = vrcp.f32 %v1497_v24 }
 0x124   :  { %v3964_v6 = vpop.f32.mrb[35].mxu1  ;;  %v3014_v25 = vpop.eup %3013  ;;  %v2026_v48 = vadd.f32 %v2025_v10, %v1769_v35  ;;  %v3967_v41 = vadd.f32 %v2124_v55, %v1969_v1  ;;  %v1435_v18 = vadd.f32 1.0, %v3012_v40  ;;  %v3982_v1 = vadd.f32 %v3661_v58, %v3786_v54 }
 0x125   :  { %v3016_v30 = vpop.eup %3015  ;;  %v1495_v63 = vadd.f32 1.0, %v3014_v25  ;;  %v3972_v28 = vpop.f32.mrb[36].mxu0 }
 0x126   :  { %4730 = vst [vmem:[#allocation23_spill] sm:$0xff] %v3967_v41  ;;  %v3018_v51 = vpop.eup %3017  ;;  %3035 = vrcp.f32 %v1435_v18  ;;  %v3969_v44 = vadd.f32 %v2026_v48, %v1770_v47  ;;  %v1438_v31 = vadd.f32 1.0, %v3016_v30  ;;  %v3974_v21 = vpop.f32.mrb[36].mxu1  ;;  %v2018_v48 = vrot.slane %v3924_v36, 4 }
 0x127   :  { %v3020_v52 = vpop.eup %3019  ;;  %3037 = vrcp.f32 %v1495_v63  ;;  %v1498_v24 = vadd.f32 1.0, %v3018_v51  ;;  %v3976_v32 = vpop.f32.mrb[37].mxu0  ;;  %v3991_v18 = vadd.f32 %v3804_v29, %v3661_v58  ;;  %v3995_v30 = vadd.f32 %v3806_v43, %v3661_v58 }
 0x128   :  { %v3022_v15 = vpop.eup %3021  ;;  %v1436_v13 = vadd.f32 1.0, %v3020_v52  ;;  %3039 = vpow2.f32 %v2537_v50  ;;  %v3978_v35 = vpop.f32.mrb[37].mxu1  ;;  %v4003_v52 = vadd.f32 %v3661_v58, %v3808_v4  ;;  %v2019_v4 = vadd.f32 %v2018_v48, %v3924_v36 }
 0x129   :  { %v3024_v3 = vpop.eup %3023  ;;  %3041 = vrcp.f32 %v1438_v31  ;;  %v1496_v55 = vadd.f32 1.0, %v3022_v15  ;;  %v3984_v50 = vpop.f32.mrb[38].mxu0  ;;  %v4007_v31 = vadd.f32 %v3661_v58, %v3810_v19  ;;  %v2542_v41 = vmul.f32 -1.442695, %v3991_v18 }
 0x12a   :  { %v3026_v10 = vpop.eup %3025  ;;  %v1441_v40 = vadd.f32 1.0, %v3024_v3  ;;  %3043 = vpow2.f32 %v2599_v2  ;;  %4731 = vst [vmem:[#allocation24_spill] sm:$0xff] %v3984_v50  ;;  %v3986_v25 = vpop.f32.mrb[38].mxu1  ;;  %v2602_v19 = vmul.f32 -1.442695, %v3995_v30 }
 0x12b   :  { %4732 = vst [vmem:[#allocation25_spill] sm:$0xff] %v3986_v25  ;;  %v3028_v47 = vpop.eup %3027  ;;  %3045 = vrcp.f32 %v1436_v13  ;;  %v3997_v63 = vpop.f32.mrb[39].mxu0  ;;  %v1501_v15 = vadd.f32 1.0, %v3026_v10  ;;  %v4011_v13 = vadd.f32 %v3814_v5, %v3661_v58  ;;  %v4020_v5 = vadd.f32 %v3816_v20, %v3661_v58 }
 0x12c   :  { %4733 = vst [vmem:[#allocation26_spill] sm:$0xff] %v3997_v63  ;;  %v3999_v54 = vpop.f32.mrb[39].mxu1  ;;  %v3030_v51 = vpop.eup %3029  ;;  %3047 = vrcp.f32 %v1496_v55  ;;  %v1439_v2 = vadd.f32 1.0, %v3028_v47  ;;  %v2597_v55 = vmul.f32 -1.442695, %v3982_v1  ;;  %v4024_v10 = vadd.f32 %v3661_v58, %v3820_v9 }
 0x12d   :  { %4734 = vst [vmem:[#allocation27_spill] sm:$0xff] %v3999_v54  ;;  %v3032_v29 = vpop.eup %3031  ;;  %3049 = vrcp.f32 %v1498_v24  ;;  %v1499_v43 = vadd.f32 1.0, %v3030_v51  ;;  %v2540_v24 = vmul.f32 -1.442695, %v4003_v52  ;;  %v4028_v36 = vpop.f32.mrb[40].mxu1 }
 0x12e   :  { %3051 = vrcp.f32 %v1441_v40  ;;  %v1442_v3 = vadd.f32 1.0, %v3032_v29  ;;  %v3034_v47 = vpop.eup %3033  ;;  %v4026_v40 = vpop.f32.mrb[40].mxu0  ;;  %4736 = vst [vmem:[#allocation29_spill] sm:$0xff] %v4028_v36  ;;  %v2543_v29 = vmul.f32 -1.442695, %v4011_v13 }
 0x12f   :  { %3053 = vrcp.f32 %v1439_v2  ;;  %4735 = vst [vmem:[#allocation28_spill] sm:$0xff] %v4026_v40  ;;  %v2600_v2 = vmul.f32 -1.442695, %v4007_v31  ;;  %v4035_v20 = vpop.f32.mrb[41].mxu1  ;;  %v4040_v40 = vadd.f32 %v3661_v58, %v3822_v11  ;;  %v2603_v50 = vmul.f32 -1.442695, %v4020_v5 }
 0x130   :  { %v3036_v54 = vpop.eup %3035  ;;  %3055 = vrcp.f32 %v1499_v43  ;;  %v4033_v43 = vpop.f32.mrb[41].mxu0  ;;  %4738 = vst [vmem:[#allocation31_spill] sm:$0xff] %v4035_v20 }
 0x131   :  { %v3038_v48 = vpop.eup %3037  ;;  %v1771_v51 = vmul.f32 %v3036_v54, %v3828_v49  ;;  %3057 = vrcp.f32 %v1501_v15  ;;  %4737 = vst [vmem:[#allocation30_spill] sm:$0xff] %v4033_v43  ;;  %v4044_v49 = vadd.f32 %v3830_v57, %v3661_v58  ;;  %v4046_v54 = vpop.f32.mrb[42].mxu0  ;;  %v2020_v43 = vrot.slane %v2019_v4, 2 }
 0x132   :  { %v3040_v63 = vpop.eup %3039  ;;  %v1831_v9 = vmul.f32 %v3038_v48, %v3836_v46  ;;  %3059 = vrcp.f32 %v1442_v3  ;;  %4739 = vst [vmem:[#allocation32_spill] sm:$0xff] %v4046_v54  ;;  %v4048_v15 = vpop.f32.mrb[42].mxu1  ;;  %v1773_v48 = vmul.f32 %v3948_v62, %v3775_v45  ;;  %v4068_v45 = vadd.f32 %v3661_v58, %v3842_v26 }
 0x133   :  { %4740 = vst [vmem:[#allocation33_spill] sm:$0xff] %v4048_v15  ;;  %v3042_v36 = vpop.eup %3041  ;;  %v2028_v20 = vadd.f32 %v3969_v44, %v1771_v51  ;;  %v1440_v25 = vadd.f32 1.0, %v3040_v63  ;;  %3061 = vpow2.f32 %v2597_v55  ;;  %v4051_v46 = vpop.f32.mrb[43].mxu0  ;;  %v2541_v44 = vmul.f32 -1.442695, %v4024_v10 }
 0x134   :  { %4741 = vst [vmem:[#allocation34_spill] sm:$0xff] %v4051_v46  ;;  %v4053_v3 = vpop.f32.mrb[43].mxu1  ;;  %v3044_v11 = vpop.eup %3043  ;;  %v2133_v57 = vadd.f32 %v3941_v60, %v1831_v9  ;;  %v1774_v54 = vmul.f32 %v3042_v36, %v3840_v0  ;;  %3063 = vpow2.f32 %v2542_v41  ;;  %v4063_v63 = vadd.f32 %v3832_v39, %v3661_v58  ;;  %v4743_v36 = vld [vmem:[#allocation9_spill] sm:$0xff] }
 0x135   :  { %4742 = vst [vmem:[#allocation35_spill] sm:$0xff] %v4053_v3  ;;  %v3046_v15 = vpop.eup %3045  ;;  %3065 = vrcp.f32 %v1440_v25  ;;  %v2601_v62 = vmul.f32 -1.442695, %v4040_v40  ;;  %v2546_v41 = vmul.f32 -1.442695, %v4044_v49  ;;  %v2021_v39 = vadd.f32 %v2020_v43, %v2019_v4  ;;  %v4078_v26 = vpop.f32.mrb[44].mxu1 }
 0x136   :  { %v3048_v55 = vpop.eup %3047  ;;  %v2036_v51 = vadd.f32 %v1774_v54, %v1773_v48  ;;  %v1772_v3 = vmul.f32 %v3046_v15, %v3853_v8  ;;  %3067 = vpow2.f32 %v2602_v19  ;;  %v1833_v9 = vmul.f32 %v3034_v47, %v4743_v36  ;;  %v4076_v19 = vpop.f32.mrb[44].mxu0  ;;  %4745 = vst [vmem:[#allocation36_spill] sm:$0xff] %v4078_v26  ;;  %v4748_v43 = vld [vmem:[#allocation11_spill] sm:$0xff] }
 0x137   :  { %v3050_v0 = vpop.eup %3049  ;;  %v1832_v60 = vmul.f32 %v3048_v55, %v3859_v27  ;;  %3069 = vpow2.f32 %v2540_v24  ;;  %4744 = vst [vmem:[#allocation9_spill] sm:$0xff] %v4076_v19  ;;  %v1502_v24 = vadd.f32 1.0, %v3044_v11  ;;  %v4080_v48 = vpop.f32.mrb[45].mxu0 }
 0x138   :  { %v3052_v25 = vpop.eup %3051  ;;  %v1913_v8 = vsel %vm1885_vm1, %v1772_v3, 0.0  ;;  %3071 = vpow2.f32 %v2600_v2  ;;  %4746 = vst [vmem:[#allocation37_spill] sm:$0xff] %v4080_v48  ;;  %v4082_v55 = vpop.f32.mrb[45].mxu1  ;;  %v1834_v47 = vmul.f32 %v3050_v0, %v4748_v43  ;;  %v2606_v2 = vmul.f32 -1.442695, %v4063_v63 }
 0x139   :  { %v3054_v54 = vpop.eup %3053  ;;  %v2029_v15 = vadd.f32 %v2028_v20, %v1913_v8  ;;  %v2134_v27 = vadd.f32 %v2133_v57, %v1832_v60  ;;  %3073 = vpow2.f32 %v2543_v29  ;;  %4747 = vst [vmem:[#allocation38_spill] sm:$0xff] %v4082_v55  ;;  %v4087_v3 = vpop.f32.mrb[46].mxu0 }
 0x13a   :  { %v3056_v4 = vpop.eup %3055  ;;  %v1775_v36 = vmul.f32 %v3054_v54, %v3878_v12  ;;  %3075 = vpow2.f32 %v2603_v50  ;;  %4749 = vst [vmem:[#allocation11_spill] sm:$0xff] %v4087_v3  ;;  %v4089_v26 = vpop.f32.mrb[46].mxu1  ;;  %v2022_v12 = vrot.slane %v2021_v39, 1 }
 0x13b   :  { %4750 = vst [vmem:[#allocation39_spill] sm:$0xff] %v4089_v26  ;;  %v4091_v20 = vpop.eup %3057  ;;  %v2030_v11 = vrot.slane %v2029_v15, 4  ;;  %v2135_v29 = vadd.f32 %v2134_v27, %v1833_v9  ;;  %v1835_v57 = vmul.f32 %v3056_v4, %v3891_v61  ;;  %3077 = vpow2.f32 %v2541_v44  ;;  %v4094_v60 = vpop.f32.mrb[47].mxu0 }
 0x13c   :  { %4751 = vst [vmem:[#allocation40_spill] sm:$0xff] %v4094_v60  ;;  %v4096_v8 = vpop.f32.mrb[47].mxu1  ;;  %v3060_v0 = vpop.eup %3059  ;;  %v2037_v50 = vadd.f32 %v2036_v51, %v1775_v36  ;;  %3079 = vpow2.f32 %v2601_v62  ;;  %v2544_v61 = vmul.f32 -1.442695, %v4068_v45 }
 0x13d   :  { %4752 = vst [vmem:[#allocation41_spill] sm:$0xff] %v4096_v8  ;;  %v3062_v54 = vpop.eup %3061  ;;  %v2031_v43 = vadd.f32 %v2030_v11, %v2029_v15  ;;  %v1976_v26 = vsel %vm1885_vm1, %v1835_v57, 0.0  ;;  %v2136_v3 = vadd.f32 %v2135_v29, %v1834_v47  ;;  %3081 = vrcp.f32 %v1502_v24  ;;  %v4754_v15 = vld [vmem:[#allocation10_spill] sm:$0xff]  ;;  %v4755_v24 = vld [vmem:[#allocation12_spill] sm:$0xff]  ;;  %v4114_v11 = vpop.f32.mrb[48].mxu1 }
 0x13e   :  { %v3064_v55 = vpop.eup %3063  ;;  %v1500_v9 = vadd.f32 1.0, %v3062_v54  ;;  %3083 = vpow2.f32 %v2546_v41  ;;  %v4106_v36 = vadd.f32 %v3661_v58, %v4754_v15  ;;  %v4110_v47 = vadd.f32 %v4755_v24, %v3661_v58  ;;  %v4112_v41 = vpop.f32.mrb[48].mxu0  ;;  %4757 = vst [vmem:[#allocation12_spill] sm:$0xff] %v4114_v11 }
 0x13f   :  { %v3066_v44 = vpop.eup %3065  ;;  %v2032_v27 = vrot.slane %v2031_v43, 2  ;;  %v4101_v4 = vadd.f32 %v2136_v3, %v1976_v26  ;;  %v1445_v8 = vadd.f32 1.0, %v3064_v55  ;;  %3085 = vpow2.f32 %v2606_v2  ;;  %4756 = vst [vmem:[#allocation10_spill] sm:$0xff] %v4112_v41  ;;  %v4116_v29 = vpop.f32.mrb[49].mxu0 }
 0x140   :  { %v3068_v51 = vpop.eup %3067  ;;  %v1776_v62 = vmul.f32 %v3066_v44, %v3934_v7  ;;  %3087 = vrcp.f32 %v1500_v9  ;;  %v2023_v3 = vadd.f32 %v2022_v12, %v2021_v39  ;;  %4758 = vst [vmem:[#allocation43_spill] sm:$0xff] %v4116_v29  ;;  %v4118_v7 = vpop.f32.mrb[49].mxu1  ;;  %v1777_v54 = vmul.f32 %v3052_v25, %v3866_v17 }
 0x141   :  { %4753 = vst [vmem:[#allocation42_spill] sm:$0xff] %v4101_v4  ;;  %v3070_v26 = vpop.eup %3069  ;;  %v2033_v55 = vadd.f32 %v2032_v27, %v2031_v43  ;;  %3089 = vrcp.f32 %v1445_v8  ;;  %v1505_v2 = vadd.f32 1.0, %v3068_v51  ;;  %4759 = vst [vmem:[#allocation44_spill] sm:$0xff] %v4118_v7  ;;  %v4121_v15 = vpop.f32.mrb[50].mxu0  ;;  %v4762_v8 = vld [vmem:[#allocation13_spill] sm:$0xff]  ;;  %v1778_v25 = vmul.f32 %v3060_v0, %v3909_v23  ;;  %v4765_v23 = vld [vmem:[#allocation14_spill] sm:$0xff] }
 0x142   :  { %v3072_v57 = vpop.eup %3071  ;;  %v2038_v9 = vadd.f32 %v2037_v50, %v1776_v62  ;;  %v1443_v44 = vadd.f32 1.0, %v3070_v26  ;;  %3091 = vpow2.f32 %v2544_v61  ;;  %4760 = vst [vmem:[#allocation45_spill] sm:$0xff] %v4121_v15  ;;  %v4123_v24 = vpop.f32.mrb[50].mxu1  ;;  %v4127_v12 = vadd.f32 %v4762_v8, %v3661_v58 }
 0x143   :  { %4761 = vst [vmem:[#allocation46_spill] sm:$0xff] %v4123_v24  ;;  %v3074_v4 = vpop.eup %3073  ;;  %v2034_v11 = vrot.slane %v2033_v55, 1  ;;  %3093 = vrcp.f32 %v1505_v2  ;;  %v1503_v39 = vadd.f32 1.0, %v3072_v57  ;;  %v4129_v43 = vpop.f32.mrb[51].mxu0  ;;  %v2204_v62 = vpack.c.bf16 %v2023_v3, %v2023_v3  ;;  %v4145_v3 = vld [vmem:[%s4700_s2] ss:$0 sm:$0xff] }
 0x144   :  { %4763 = vst [vmem:[#allocation13_spill] sm:$0xff] %v4129_v43  ;;  %v4131_v27 = vpop.f32.mrb[51].mxu1  ;;  %v3076_v17 = vpop.eup %3075  ;;  %v2039_v50 = vadd.f32 %v2038_v9, %v1777_v54  ;;  %3095 = vrcp.f32 %v1443_v44  ;;  %v1446_v61 = vadd.f32 1.0, %v3074_v4  ;;  %v2604_v43 = vmul.f32 -1.442695, %v4106_v36 }
 0x145   :  { %4764 = vst [vmem:[#allocation47_spill] sm:$0xff] %v4131_v27  ;;  %v3078_v51 = vpop.eup %3077  ;;  %v2035_v26 = vadd.f32 %v2034_v11, %v2033_v55  ;;  %3097 = vrcp.f32 %v1503_v39  ;;  %v1506_v2 = vadd.f32 1.0, %v3076_v17  ;;  %v4139_v0 = vadd.f32 %v3661_v58, %v4765_v23  ;;  %v4766_v55 = vld [vmem:[#allocation15_spill] sm:$0xff]  ;;  %v4151_v9 = vpop.f32.mrb[52].mxu0  ;;  %v4768_v17 = vld [vmem:[#allocation16_spill] sm:$0xff] }
 0x146   :  { %v3080_v57 = vpop.eup %3079  ;;  %v4134_v24 = vadd.f32 %v2039_v50, %v1778_v25  ;;  %3099 = vrcp.f32 %v1446_v61  ;;  %v1444_v8 = vadd.f32 1.0, %v3078_v51  ;;  %v2547_v11 = vmul.f32 -1.442695, %v4110_v47  ;;  %4767 = vst [vmem:[#allocation14_spill] sm:$0xff] %v4151_v9  ;;  %v4155_v50 = vpop.f32.mrb[53].mxu0  ;;  %v4774_v23 = vld [vmem:[#allocation19_spill] sm:$0xff] }
 0x147   :  { %v3082_v15 = vpop.eup %3081  ;;  %v2205_v27 = vpack.c.bf16 %v2035_v26, %v2035_v26  ;;  %3101 = vrcp.f32 %v1506_v2  ;;  %v1504_v7 = vadd.f32 1.0, %v3080_v57  ;;  %v4149_v54 = vadd.f32 %v4145_v3, %v4766_v55  ;;  %4769 = vst [vmem:[#allocation15_spill] sm:$0xff] %v4155_v50  ;;  %v4770_v26 = vld [vmem:[#allocation17_spill] sm:$0xff]  ;;  %v4771_v57 = vld [vmem:[#allocation18_spill] sm:$0xff]  ;;  %v4776_v50 = vld [vmem:[#allocation20_spill] sm:$0xff] }
 0x148   :  { %v3084_v4 = vpop.eup %3083  ;;  %3103 = vrcp.f32 %v1444_v8  ;;  %v2259_v39 = vunpack.c.l.b16 %v2204_v62  ;;  %v1837_v25 = vmul.f32 %v4091_v20, %v4768_v17  ;;  %v2607_v51 = vmul.f32 -1.442695, %v4127_v12  ;;  %v4166_v62 = vpop.f32.mrb[54].mxu0  ;;  %v4777_v9 = vld [vmem:[#allocation21_spill] sm:$0xff] }
 0x149   :  { %v3086_v44 = vpop.eup %3085  ;;  %v2260_v58 = vunpack.c.l.b16 %v2205_v27  ;;  %3105 = vrcp.f32 %v1504_v7  ;;  %v4160_v2 = vadd.f32 %v4145_v3, %v4770_v26  ;;  %v4164_v8 = vadd.f32 %v4145_v3, %v4771_v57  ;;  %4773 = vst [vmem:[#allocation17_spill] sm:$0xff] %v4166_v62  ;;  %v4177_v17 = vpop.f32.mrb[55].mxu0 }
 0x14a   :  { %v3088_v61 = vpop.eup %3087  ;;  %3107 = vpow2.f32 %v2604_v43  ;;  %v2545_v43 = vmul.f32 -1.442695, %v4139_v0  ;;  %v4175_v55 = vadd.f32 %v4145_v3, %v4774_v23  ;;  %4775 = vst [vmem:[#allocation18_spill] sm:$0xff] %v4177_v17  ;;  %v2605_v57 = vmul.f32 -1.442695, %v4149_v54 }
 0x14b   :  { %4772 = vst [vmem:[#allocation16_spill] sm:$0xff] %v4164_v8  ;;  %v3090_v27 = vpop.eup %3089  ;;  %v4169_v20 = vsel %vm2275_vm2, %v2260_v58, %v2259_v39  ;;  %v1836_v7 = vmul.f32 %v3088_v61, %v3982_v1  ;;  %v4182_v62 = vadd.f32 %v4145_v3, %v4776_v50  ;;  %v4186_v39 = vadd.f32 %v4145_v3, %v4777_v9 }
 0x14c   :  { %v3092_v26 = vpop.eup %3091  ;;  %v4190_v1 = vadd.f32 %v4145_v3, %v3919_v16  ;;  %v1838_v61 = vmul.f32 %v3082_v15, %v3953_v38  ;;  %3109 = vpow2.f32 %v2547_v11  ;;  %v2550_v41 = vmul.f32 -1.442695, %v4160_v2  ;;  %v4779_v15 = vld [vmem:[#allocation22_spill] sm:$0xff] }
 0x14d   :  { %4778 = vst [vmem:[#allocation19_spill] sm:$0xff] %v4186_v39  ;;  %v3094_v58 = vpop.eup %3093  ;;  %v2144_v23 = vadd.f32 %v1837_v25, %v1836_v7  ;;  %v1447_v17 = vadd.f32 1.0, %v3092_v26  ;;  %3111 = vpow2.f32 %v2607_v51  ;;  %v2610_v50 = vmul.f32 -1.442695, %v4164_v8  ;;  %v4203_v25 = vpop.f32.mrb[56].mxu0 }
 0x14e   :  { %v3096_v29 = vpop.eup %3095  ;;  %v2548_v16 = vmul.f32 -1.442695, %v4175_v55  ;;  %v2608_v38 = vmul.f32 -1.442695, %v4182_v62  ;;  %v4201_v11 = vadd.f32 %v4145_v3, %v4779_v15  ;;  %4780 = vst [vmem:[#allocation20_spill] sm:$0xff] %v4203_v25  ;;  %v1449_v26 = vadd.f32 1.0, %v3084_v4 }
 0x14f   :  { %v3098_v60 = vpop.eup %3097  ;;  %v1779_v9 = vmul.f32 %v3096_v29, %v4003_v52  ;;  %v2145_v48 = vadd.f32 %v2144_v23, %v1838_v61  ;;  %3113 = vrcp.f32 %v1447_v17  ;;  %v2551_v29 = vmul.f32 -1.442695, %v4186_v39  ;;  %v4209_v17 = vpop.f32.mrb[57].mxu0 }
 0x150   :  { %v3100_v19 = vpop.eup %3099  ;;  %v1839_v46 = vmul.f32 %v3098_v60, %v4007_v31  ;;  %3115 = vpow2.f32 %v2545_v43  ;;  %v2549_v7 = vmul.f32 -1.442695, %v4190_v1  ;;  %4781 = vst [vmem:[#allocation21_spill] sm:$0xff] %v4209_v17  ;;  %v4212_v61 = vpop.f32.mrb[58].mxu0  ;;  %v1781_v15 = vmul.f32 %v3090_v27, %v3991_v18  ;;  %v2911_v18 = vld [vmem:[%s4701_s3] sm:$0xff]  }
 0x151   :  { %v3102_v51 = vpop.eup %3101  ;;  %v1920_v52 = vsel %vm1885_vm1, %v1779_v9, 0.0  ;;  %3117 = vpow2.f32 %v2605_v57  ;;  %v1509_v57 = vadd.f32 1.0, %v3086_v44  ;;  %v4216_v25 = vpop.f32.mrb[59].mxu0  ;;  %v1841_v17 = vmul.f32 %v3094_v58, %v3995_v30 }
 0x152   :  { %v3104_v31 = vpop.eup %3103  ;;  %v2041_v60 = vadd.f32 %v4134_v24, %v1920_v52  ;;  %v2146_v43 = vadd.f32 %v2145_v48, %v1839_v46  ;;  %3119 = vpow2.f32 %v2550_v41  ;;  %v1782_v46 = vmul.f32 %v3100_v19, %v4011_v13 }
 0x153   :  { %v3106_v23 = vpop.eup %3105  ;;  %v1780_v9 = vmul.f32 %v3104_v31, %v4024_v10  ;;  %3121 = vpow2.f32 %v2610_v50  ;;  %v1842_v48 = vmul.f32 %v3102_v51, %v4020_v5  ;;  %v3393_v19 = vmov 0.0  }
 0x154   :  { %v3108_v8 = vpop.eup %3107  ;;  %v2042_v39 = vrot.slane %v2041_v60, 4  ;;  %v1840_v24 = vmul.f32 %v3106_v23, %v4040_v40  ;;  %3123 = vpow2.f32 %v2548_v16  ;;  %v2611_v40 = vmul.f32 -1.442695, %v4201_v11  ;;  %2824 = vmatprep.subr.bf16.mxu1 %v3393_v19  ;;  %2840 = vmatprep.mubr.msk.bf16.mxu1 %vm3394_vm6, %v3393_v19 }
 0x155   :  { %v2048_v41 = vadd.f32 %v1781_v15, %v1780_v9  ;;  %3125 = vpow2.f32 %v2608_v38  ;;  %v1507_v44 = vadd.f32 1.0, %v3108_v8  ;;  %2825 = vmatpush3.bf16.msra.mxu1 %v2911_v18  ;;  %v2912_v8 = vld [vmem:[%s4701_s3 + $0x8] sm:$0xff]   ;;  %v4246_v18 = vadd.f32 %v4145_v3, %v3937_v22 }
 0x156   :  { %v2043_v10 = vadd.f32 %v2042_v39, %v2041_v60  ;;  %v2147_v4 = vadd.f32 %v2146_v43, %v1840_v24  ;;  %3127 = vpow2.f32 %v2551_v29  ;;  %v3110_v27 = vpop.eup %3109  ;;  %v1983_v39 = vsel %vm1885_vm1, %v1842_v48, 0.0  ;;  %2826 = vmatprep.subr.bf16.mxu1 %v3393_v19 }
 0x157   :  { %3129 = vrcp.f32 %v1449_v26  ;;  %v2049_v30 = vadd.f32 %v2048_v41, %v1782_v46  ;;  %v3112_v58 = vpop.eup %3111  ;;  %v1450_v5 = vadd.f32 1.0, %v3110_v27  ;;  %v4250_v27 = vadd.f32 %v4145_v3, %v3939_v37 }
 0x158   :  { %v2044_v50 = vrot.slane %v2043_v10, 2  ;;  %v2148_v13 = vadd.f32 %v2147_v4, %v1841_v17  ;;  %3131 = vrcp.f32 %v1509_v57  ;;  %v1510_v31 = vadd.f32 1.0, %v3112_v58 }
 0x159   :  { %v3114_v16 = vpop.eup %3113  ;;  %3133 = vpow2.f32 %v2549_v7  ;;  %v4238_v7 = vadd.f32 %v4145_v3, %v3921_v34  ;;  %2827 = vmatpush3.bf16.msra.mxu1 %v2912_v8  ;;  %v4254_v58 = vadd.f32 %v4145_v3, %v3944_v14  ;;  %v4266_v37 = vadd.f32 %v4145_v3, %v3957_v59 }
 0x15a   :  { %v3116_v38 = vpop.eup %3115  ;;  %v2045_v51 = vadd.f32 %v2044_v50, %v2043_v10  ;;  %v4232_v52 = vadd.f32 %v2148_v13, %v1983_v39  ;;  %v1783_v29 = vmul.f32 %v3114_v16, %v4068_v45  ;;  %3135 = vrcp.f32 %v1507_v44  ;;  %2828 = vmatprep.subr.bf16.mxu1 %v3393_v19 }
 0x15b   :  { %v3118_v17 = vpop.eup %3117  ;;  %v1448_v60 = vadd.f32 1.0, %v3116_v38  ;;  %3137 = vpow2.f32 %v2611_v40  ;;  %v2609_v41 = vmul.f32 -1.442695, %v4238_v7  ;;  %v4258_v50 = vadd.f32 %v4145_v3, %v3946_v53 }
 0x15c   :  { %v3120_v43 = vpop.eup %3119  ;;  %v2046_v26 = vrot.slane %v2045_v51, 1  ;;  %v4240_v23 = vadd.f32 %v2049_v30, %v1783_v29  ;;  %3139 = vrcp.f32 %v1450_v5  ;;  %v1508_v15 = vadd.f32 1.0, %v3118_v17 }
 0x15d   :  { %v3122_v9 = vpop.eup %3121  ;;  %3141 = vrcp.f32 %v1448_v60  ;;  %v1453_v45 = vadd.f32 1.0, %v3120_v43  ;;  %v4262_v5 = vadd.f32 %v4145_v3, %v3955_v42  ;;  %v2554_v14 = vmul.f32 -1.442695, %v4246_v18  ;;  %v2913_v42 = vld [vmem:[%s4701_s3 + $0x10] sm:$0xff]  }
 0x15e   :  { %v3124_v57 = vpop.eup %3123  ;;  %v2047_v24 = vadd.f32 %v2046_v26, %v2045_v51  ;;  %3143 = vrcp.f32 %v1508_v15  ;;  %v1513_v46 = vadd.f32 1.0, %v3122_v9  ;;  %v4271_v39 = vadd.f32 %v4145_v3, %v3962_v56  ;;  %2829 = vmatpush3.bf16.msra.mxu1 %v2913_v42 }
 0x15f   :  { %v3126_v48 = vpop.eup %3125  ;;  %3145 = vrcp.f32 %v1510_v31  ;;  %v1451_v34 = vadd.f32 1.0, %v3124_v57  ;;  %v4275_v53 = vadd.f32 %v4145_v3, %v3964_v6  ;;  %v2614_v51 = vmul.f32 -1.442695, %v4250_v27  ;;  %2830 = vmatprep.subr.bf16.mxu1 %v3393_v19 }
 0x160   :  { %v3128_v10 = vpop.eup %3127  ;;  %v2206_v4 = vpack.c.bf16 %v2047_v24, %v2047_v24  ;;  %3147 = vrcp.f32 %v1453_v45  ;;  %v1511_v44 = vadd.f32 1.0, %v3126_v48  ;;  %v2552_v56 = vmul.f32 -1.442695, %v4254_v58 }
 0x161   :  { %v3130_v30 = vpop.eup %3129  ;;  %3149 = vrcp.f32 %v1513_v46  ;;  %v1454_v40 = vadd.f32 1.0, %v3128_v10  ;;  %v2612_v17 = vmul.f32 -1.442695, %v4258_v50  ;;  %v2555_v31 = vmul.f32 -1.442695, %v4262_v5 }
 0x162   :  { %v3132_v22 = vpop.eup %3131  ;;  %v2261_v13 = vunpack.c.l.b16 %v2206_v4  ;;  %3151 = vrcp.f32 %v1511_v44  ;;  %v2615_v60 = vmul.f32 -1.442695, %v4266_v37  ;;  %v2553_v26 = vmul.f32 -1.442695, %v4271_v39 }
 0x163   :  { %v3134_v16 = vpop.eup %3133  ;;  %3153 = vrcp.f32 %v1451_v34  ;;  %v2613_v15 = vmul.f32 -1.442695, %v4275_v53  ;;  %v4296_v57 = vadd.f32 %v4145_v3, %v3972_v28  ;;  %v4300_v24 = vadd.f32 %v4145_v3, %v3974_v21 }
 0x164   :  { %v3136_v8 = vpop.eup %3135  ;;  %v4282_v59 = vsel %vm2277_vm3, %v2261_v13, %v4169_v20  ;;  %v1452_v38 = vadd.f32 1.0, %v3134_v16  ;;  %3155 = vpow2.f32 %v2609_v41  ;;  %v4306_v34 = vadd.f32 %v4145_v3, %v3976_v32 }
 0x165   :  { %v3138_v29 = vpop.eup %3137  ;;  %3157 = vrcp.f32 %v1454_v40  ;;  %v1843_v43 = vmul.f32 %v3136_v8, %v4106_v36  ;;  %v1785_v41 = vmul.f32 %v3130_v30, %v4044_v49  ;;  %v4312_v21 = vadd.f32 %v4145_v3, %v3978_v35 }
 0x166   :  { %v3140_v6 = vpop.eup %3139  ;;  %3159 = vrcp.f32 %v1452_v38  ;;  %v1514_v4 = vadd.f32 1.0, %v3138_v29  ;;  %v2618_v49 = vmul.f32 -1.442695, %v4300_v24  ;;  %v2914_v38 = vld [vmem:[%s4701_s3 + $0x18] sm:$0xff]  }
 0x167   :  { %v3142_v20 = vpop.eup %3141  ;;  %3161 = vpow2.f32 %v2554_v14  ;;  %v1786_v36 = vmul.f32 %v3140_v6, %v4110_v47  ;;  %v1845_v47 = vmul.f32 %v3132_v22, %v4063_v63  ;;  %v2556_v22 = vmul.f32 -1.442695, %v4306_v34  ;;  %2831 = vmatpush3.bf16.msra.mxu1 %v2914_v38 }
 0x168   :  { %v3144_v9 = vpop.eup %3143  ;;  %v1784_v45 = vmul.f32 %v3142_v20, %v4139_v0  ;;  %3163 = vpow2.f32 %v2614_v51  ;;  %v2616_v8 = vmul.f32 -1.442695, %v4312_v21  ;;  %2832 = vmatprep.subr.bf16.mxu1 %v3393_v19 }
 0x169   :  { %v3146_v46 = vpop.eup %3145  ;;  %v1844_v48 = vmul.f32 %v3144_v9, %v4149_v54  ;;  %3165 = vpow2.f32 %v2552_v56  ;;  %v1927_v30 = vsel %vm1885_vm1, %v1786_v36, 0.0  ;;  %v2915_v36 = vld [vmem:[%s4701_s3 + $0x20] sm:$0xff]  }
 0x16a   :  { %v3148_v0 = vpop.eup %3147  ;;  %v2051_v28 = vadd.f32 %v4240_v23, %v1784_v45  ;;  %3167 = vpow2.f32 %v2612_v17  ;;  %v1846_v32 = vmul.f32 %v3146_v46, %v4127_v12  ;;  %v4783_v46 = vld [vmem:[#allocation25_spill] sm:$0xff] }
 0x16b   :  { %v4314_v10 = vpop.eup %3149  ;;  %v2156_v54 = vadd.f32 %v1844_v48, %v1843_v43  ;;  %3169 = vpow2.f32 %v2555_v31  ;;  %v1789_v45 = vmul.f32 %v3148_v0, %v4160_v2  ;;  %2833 = vmatpush3.bf16.msra.mxu1 %v2915_v36  ;;  %v2916_v0 = vld [vmem:[%s4701_s3 + $0x28] sm:$0xff]  }
 0x16c   :  { %v3152_v44 = vpop.eup %3151  ;;  %v2052_v40 = vadd.f32 %v2051_v28, %v1785_v41  ;;  %3171 = vpow2.f32 %v2615_v60  ;;  %2834 = vmatprep.subr.bf16.mxu1 %v3393_v19 }
 0x16d   :  { %v3154_v23 = vpop.eup %3153  ;;  %v2157_v35 = vadd.f32 %v2156_v54, %v1845_v47  ;;  %v1847_v13 = vmul.f32 %v3152_v44, %v4182_v62  ;;  %3173 = vpow2.f32 %v2553_v26  ;;  %v2558_v62 = vmul.f32 -1.442695, %v4296_v57  ;;  %v4782_v26 = vld [vmem:[#allocation24_spill] sm:$0xff] }
 0x16e   :  { %v3156_v16 = vpop.eup %3155  ;;  %v2053_v63 = vadd.f32 %v2052_v40, %v1927_v30  ;;  %3175 = vpow2.f32 %v2613_v15  ;;  %v1787_v6 = vmul.f32 %v3154_v23, %v4175_v55  ;;  %v4334_v15 = vadd.f32 %v4145_v3, %v4782_v26  ;;  %v4785_v30 = vld [vmem:[#allocation26_spill] sm:$0xff] }
 0x16f   :  { %v3158_v14 = vpop.eup %3157  ;;  %v2158_v42 = vadd.f32 %v2157_v35, %v1846_v32  ;;  %3177 = vrcp.f32 %v1514_v4  ;;  %v1512_v12 = vadd.f32 1.0, %v3156_v16  ;;  %v4784_v4 = vld [vmem:[#allocation19_spill] sm:$0xff]  ;;  %v4351_v35 = vadd.f32 %v4145_v3, %v4785_v30  ;;  %2835 = vmatpush3.bf16.msra.mxu1 %v2916_v0 }
 0x170   :  { %v3160_v51 = vpop.eup %3159  ;;  %v2054_v29 = vrot.slane %v2053_v63, 4  ;;  %3179 = vpow2.f32 %v2618_v49  ;;  %v1790_v44 = vmul.f32 %v3158_v14, %v4784_v4  ;;  %2836 = vmatprep.subr.bf16.mxu1 %v3393_v19 }
 0x171   :  { %v3162_v56 = vpop.eup %3161  ;;  %v4329_v17 = vadd.f32 %v2158_v42, %v1847_v13  ;;  %v1788_v31 = vmul.f32 %v3160_v51, %v4190_v1  ;;  %3181 = vrcp.f32 %v1512_v12  ;;  %v4340_v1 = vadd.f32 %v4145_v3, %v4783_v46  ;;  %v4789_v46 = vld [vmem:[#allocation29_spill] sm:$0xff] }
 0x172   :  { %v3164_v60 = vpop.eup %3163  ;;  %v2055_v20 = vadd.f32 %v2054_v29, %v2053_v63  ;;  %v1457_v43 = vadd.f32 1.0, %v3162_v56  ;;  %3183 = vpow2.f32 %v2556_v22  ;;  %v4786_v63 = vld [vmem:[#allocation27_spill] sm:$0xff]  ;;  %v2559_v29 = vmul.f32 -1.442695, %v4334_v15 }
 0x173   :  { %v3166_v9 = vpop.eup %3165  ;;  %v2060_v55 = vadd.f32 %v1788_v31, %v1787_v6  ;;  %3185 = vpow2.f32 %v2616_v8  ;;  %v1517_v28 = vadd.f32 1.0, %v3164_v60  ;;  %v4358_v22 = vadd.f32 %v4145_v3, %v4786_v63  ;;  %v2917_v6 = vld [vmem:[%s4701_s3 + $0x30] sm:$0xff]   ;;  %v4791_v63 = vld [vmem:[#allocation31_spill] sm:$0xff] }
 0x174   :  { %v3168_v48 = vpop.eup %3167  ;;  %v2056_v41 = vrot.slane %v2055_v20, 2  ;;  %v1455_v47 = vadd.f32 1.0, %v3166_v9  ;;  %3187 = vpow2.f32 %v2558_v62  ;;  %v4787_v62 = vld [vmem:[#allocation28_spill] sm:$0xff]  ;;  %v4375_v36 = vadd.f32 %v4145_v3, %v4789_v46  ;;  %2837 = vmatpush3.bf16.msra.mxu1 %v2917_v6 }
 0x175   :  { %v3170_v54 = vpop.eup %3169  ;;  %v2061_v32 = vadd.f32 %v2060_v55, %v1789_v45  ;;  %3189 = vrcp.f32 %v1457_v43  ;;  %v1515_v2 = vadd.f32 1.0, %v3168_v48  ;;  %v4363_v56 = vadd.f32 %v4145_v3, %v4787_v62  ;;  %v4788_v9 = vld [vmem:[#allocation16_spill] sm:$0xff]  ;;  %2838 = vmatprep.subr.bf16.mxu1 %v3393_v19 }
 0x176   :  { %v3172_v40 = vpop.eup %3171  ;;  %v2057_v49 = vadd.f32 %v2056_v41, %v2055_v20  ;;  %3191 = vrcp.f32 %v1455_v47  ;;  %v1458_v23 = vadd.f32 1.0, %v3170_v54  ;;  %v2619_v20 = vmul.f32 -1.442695, %v4340_v1 }
 0x177   :  { %v3174_v13 = vpop.eup %3173  ;;  %v4354_v16 = vadd.f32 %v2061_v32, %v1790_v44  ;;  %3193 = vrcp.f32 %v1515_v2  ;;  %v1518_v12 = vadd.f32 1.0, %v3172_v40  ;;  %v2557_v43 = vmul.f32 -1.442695, %v4351_v35  ;;  %v4790_v32 = vld [vmem:[#allocation30_spill] sm:$0xff] }
 0x178   :  { %v3176_v14 = vpop.eup %3175  ;;  %v2058_v42 = vrot.slane %v2057_v49, 1  ;;  %3195 = vrcp.f32 %v1517_v28  ;;  %v1456_v8 = vadd.f32 1.0, %v3174_v13  ;;  %v1849_v45 = vmul.f32 %v4314_v10, %v4788_v9  ;;  %v2918_v2 = vld [vmem:[%s4701_s3 + $0x38] sm:$0xff]  }
 0x179   :  { %v3178_v38 = vpop.eup %3177  ;;  %3197 = vrcp.f32 %v1458_v23  ;;  %v1516_v51 = vadd.f32 1.0, %v3176_v14  ;;  %v2617_v47 = vmul.f32 -1.442695, %v4358_v22  ;;  %v2562_v44 = vmul.f32 -1.442695, %v4363_v56  ;;  %2839 = vmatpush3.bf16.msra.mxu1 %v2918_v2  ;;  %v4797_v2 = vld [vmem:[#allocation6_spill] sm:$0xff] }
 0x17a   :  { %v3180_v31 = vpop.eup %3179  ;;  %v2059_v60 = vadd.f32 %v2058_v42, %v2057_v49  ;;  %3199 = vrcp.f32 %v1456_v8  ;;  %v4382_v10 = vadd.f32 %v4145_v3, %v4790_v32  ;;  %v1990_v30 = vsel %vm1885_vm1, %v1849_v45, 0.0  ;;  %v4792_v8 = vld [vmem:[#allocation32_spill] sm:$0xff]  ;;  %v4794_v45 = vld [vmem:[#allocation34_spill] sm:$0xff] }
 0x17b   :  { %v3182_v26 = vpop.eup %3181  ;;  %3201 = vrcp.f32 %v1516_v51  ;;  %v1521_v55 = vadd.f32 1.0, %v3180_v31  ;;  %v2622_v13 = vmul.f32 -1.442695, %v4375_v36  ;;  %v4394_v14 = vadd.f32 %v4145_v3, %v4791_v63  ;;  %v4793_v31 = vld [vmem:[#allocation33_spill] sm:$0xff] }
 0x17c   :  { %v3184_v48 = vpop.eup %3183  ;;  %v2207_v41 = vpack.c.bf16 %v2059_v60, %v2059_v60  ;;  %v1848_v28 = vmul.f32 %v3182_v26, %v4238_v7  ;;  %3203 = vrcp.f32 %v1518_v12  ;;  %v4404_v51 = vadd.f32 %v4145_v3, %v4792_v8 }
 0x17d   :  { %v3186_v54 = vpop.eup %3185  ;;  %3205 = vrcp.f32 %v1521_v55  ;;  %v1459_v4 = vadd.f32 1.0, %v3184_v48  ;;  %v2560_v6 = vmul.f32 -1.442695, %v4382_v10  ;;  %v4410_v60 = vadd.f32 %v4145_v3, %v4793_v31  ;;  %v4795_v48 = vld [vmem:[#allocation35_spill] sm:$0xff] }
 0x17e   :  { %v3188_v0 = vpop.eup %3187  ;;  %v2262_v40 = vunpack.c.l.b16 %v2207_v41  ;;  %v2160_v7 = vadd.f32 %v4329_v17, %v1848_v28  ;;  %v1519_v49 = vadd.f32 1.0, %v3186_v54  ;;  %3207 = vpow2.f32 %v2559_v29  ;;  %v4796_v54 = vld [vmem:[#allocation5_spill] sm:$0xff] }
 0x17f   :  { %v3190_v23 = vpop.eup %3189  ;;  %3209 = vrcp.f32 %v1459_v4  ;;  %v1850_v26 = vmul.f32 %v3178_v38, %v4201_v11  ;;  %v4416_v55 = vadd.f32 %v4145_v3, %v4794_v45  ;;  %v4422_v41 = vadd.f32 %v4145_v3, %v4795_v48 }
 0x180   :  { %v3192_v42 = vpop.eup %3191  ;;  %v4398_v12 = vsel %vm2279_vm4, %v2262_v40, %v4282_v59  ;;  %v4400_v17 = vadd.f32 %v2160_v7, %v1990_v30  ;;  %3211 = vrcp.f32 %v1519_v49  ;;  %v1793_v11 = vmul.f32 %v3190_v23, %v4246_v18 }
 0x181   :  { %v3194_v29 = vpop.eup %3193  ;;  %v1791_v62 = vmul.f32 %v3192_v42, %v4254_v58  ;;  %3213 = vpow2.f32 %v2619_v20  ;;  %v2620_v20 = vmul.f32 -1.442695, %v4394_v14  ;;  %v4428_v4 = vadd.f32 %v4145_v3, %v4796_v54 }
 0x182   :  { %v3196_v59 = vpop.eup %3195  ;;  %v1851_v9 = vmul.f32 %v3194_v29, %v4258_v50  ;;  %3215 = vpow2.f32 %v2557_v43  ;;  %v2563_v50 = vmul.f32 -1.442695, %v4404_v51  ;;  %v4434_v40 = vadd.f32 %v4145_v3, %v4797_v2 }
 0x183   :  { %v3198_v46 = vpop.eup %3197  ;;  %v2063_v58 = vadd.f32 %v4354_v16, %v1791_v62  ;;  %3217 = vpow2.f32 %v2617_v47  ;;  %v2623_v47 = vmul.f32 -1.442695, %v4410_v60  ;;  %v1461_v23 = vadd.f32 1.0, %v3188_v0 }
 0x184   :  { %v3200_v28 = vpop.eup %3199  ;;  %v2168_v38 = vadd.f32 %v1851_v9, %v1850_v26  ;;  %3219 = vpow2.f32 %v2562_v44  ;;  %v2561_v44 = vmul.f32 -1.442695, %v4416_v55  ;;  %v1853_v63 = vmul.f32 %v3196_v59, %v4250_v27  ;;  %v4798_v59 = vld [vmem:[#allocation9_spill] sm:$0xff] }
 0x185   :  { %v3202_v43 = vpop.eup %3201  ;;  %v1792_v16 = vmul.f32 %v3200_v28, %v4271_v39  ;;  %3221 = vpow2.f32 %v2622_v13  ;;  %v2621_v39 = vmul.f32 -1.442695, %v4422_v41  ;;  %v1934_v13 = vsel %vm1885_vm1, %v1793_v11, 0.0 }
 0x186   :  { %v3204_v32 = vpop.eup %3203  ;;  %v1852_v18 = vmul.f32 %v3202_v43, %v4275_v53  ;;  %3223 = vpow2.f32 %v2560_v6  ;;  %v1794_v53 = vmul.f32 %v3198_v46, %v4262_v5  ;;  %v4455_v28 = vmul.f32 -1.442695, %v4428_v4 }
 0x187   :  { %v4438_v7 = vpop.eup %3205  ;;  %v2064_v49 = vadd.f32 %v2063_v58, %v1792_v16  ;;  %3225 = vpow2.f32 %v2620_v20  ;;  %v1854_v0 = vmul.f32 %v3204_v32, %v4266_v37  ;;  %v4450_v58 = vadd.f32 %v4145_v3, %v4798_v59  ;;  %v4799_v32 = vld [vmem:[#allocation36_spill] sm:$0xff]  ;;  %v4803_v59 = vld [vmem:[#allocation39_spill] sm:$0xff] }
 0x188   :  { %v3208_v30 = vpop.eup %3207  ;;  %v2169_v42 = vadd.f32 %v2168_v38, %v1852_v18  ;;  %3227 = vpow2.f32 %v2563_v50  ;;  %v4464_v2 = vadd.f32 %v4145_v3, %v4799_v32 }
 0x189   :  { %v3210_v8 = vpop.eup %3209  ;;  %v2065_v29 = vadd.f32 %v2064_v49, %v1934_v13  ;;  %v1462_v62 = vadd.f32 1.0, %v3208_v30  ;;  %3229 = vpow2.f32 %v2623_v47  ;;  %v2566_v49 = vmul.f32 -1.442695, %v4450_v58  ;;  %v4800_v13 = vld [vmem:[#allocation37_spill] sm:$0xff] }
 0x18a   :  { %v3212_v6 = vpop.eup %3211  ;;  %v2170_v31 = vadd.f32 %v2169_v42, %v1853_v63  ;;  %v1795_v26 = vmul.f32 %v3210_v8, %v4306_v34  ;;  %3231 = vpow2.f32 %v2561_v44  ;;  %v4469_v63 = vadd.f32 %v4145_v3, %v4800_v13 }
 0x18b   :  { %v3214_v9 = vpop.eup %3213  ;;  %v2066_v45 = vrot.slane %v2065_v29, 4  ;;  %3233 = vrcp.f32 %v1461_v23  ;;  %v1855_v27 = vmul.f32 %v3212_v6, %v4312_v21  ;;  %v4458_v21 = vmul.f32 -1.442695, %v4434_v40 }
 0x18c   :  { %v3216_v5 = vpop.eup %3215  ;;  %v4452_v46 = vadd.f32 %v1795_v26, %v1794_v53  ;;  %v2171_v20 = vadd.f32 %v2170_v31, %v1854_v0  ;;  %3235 = vrcp.f32 %v1462_v62  ;;  %v1522_v48 = vadd.f32 1.0, %v3214_v9  ;;  %v4801_v53 = vld [vmem:[#allocation38_spill] sm:$0xff]  ;;  %v4802_v62 = vld [vmem:[#allocation11_spill] sm:$0xff] }
 0x18d   :  { %v3218_v37 = vpop.eup %3217  ;;  %v2067_v34 = vadd.f32 %v2066_v45, %v2065_v29  ;;  %v1460_v11 = vadd.f32 1.0, %v3216_v5  ;;  %3237 = vpow2.f32 %v2621_v39  ;;  %v4473_v29 = vadd.f32 %v4145_v3, %v4801_v53 }
 0x18e   :  { %v3220_v38 = vpop.eup %3219  ;;  %v4460_v50 = vadd.f32 %v2171_v20, %v1855_v27  ;;  %3239 = vrcp.f32 %v1522_v48  ;;  %v1520_v43 = vadd.f32 1.0, %v3218_v37  ;;  %v4477_v6 = vadd.f32 %v4145_v3, %v4802_v62  ;;  %v4804_v20 = vld [vmem:[#allocation40_spill] sm:$0xff] }
 0x18f   :  { %v3222_v54 = vpop.eup %3221  ;;  %v2068_v16 = vrot.slane %v2067_v34, 2  ;;  %3241 = vrcp.f32 %v1460_v11  ;;  %v1465_v47 = vadd.f32 1.0, %v3220_v38  ;;  %v2626_v9 = vmul.f32 -1.442695, %v4464_v2 }
 0x190   :  { %v3224_v18 = vpop.eup %3223  ;;  %3243 = vrcp.f32 %v1520_v43  ;;  %v1525_v44 = vadd.f32 1.0, %v3222_v54  ;;  %v4482_v5 = vadd.f32 %v4145_v3, %v4803_v59  ;;  %v4486_v48 = vadd.f32 %v4145_v3, %v4804_v20 }
 0x191   :  { %v3226_v23 = vpop.eup %3225  ;;  %v2069_v39 = vadd.f32 %v2068_v16, %v2067_v34  ;;  %3245 = vrcp.f32 %v1465_v47  ;;  %v1463_v30 = vadd.f32 1.0, %v3224_v18  ;;  %v2564_v38 = vmul.f32 -1.442695, %v4469_v63  ;;  %v4805_v47 = vld [vmem:[#allocation41_spill] sm:$0xff] }
 0x192   :  { %v3228_v42 = vpop.eup %3227  ;;  %3247 = vrcp.f32 %v1525_v44  ;;  %v1523_v8 = vadd.f32 1.0, %v3226_v23  ;;  %v2624_v54 = vmul.f32 -1.442695, %v4473_v29  ;;  %v2567_v16 = vmul.f32 -1.442695, %v4477_v6 }
 0x193   :  { %v3230_v0 = vpop.eup %3229  ;;  %v2070_v31 = vrot.slane %v2069_v39, 1  ;;  %3249 = vrcp.f32 %v1463_v30  ;;  %v1466_v26 = vadd.f32 1.0, %v3228_v42  ;;  %v4493_v32 = vadd.f32 %v4145_v3, %v4805_v47 }
 0x194   :  { %v3232_v45 = vpop.eup %3231  ;;  %3251 = vrcp.f32 %v1523_v8  ;;  %v1526_v27 = vadd.f32 1.0, %v3230_v0  ;;  %v1857_v23 = vmul.f32 %v4438_v7, %v4300_v24  ;;  %v2627_v13 = vmul.f32 -1.442695, %v4482_v5  ;;  %v4806_v0 = vld [vmem:[#allocation10_spill] sm:$0xff] }
 0x195   :  { %v3234_v37 = vpop.eup %3233  ;;  %v2071_v34 = vadd.f32 %v2070_v31, %v2069_v39  ;;  %3253 = vrcp.f32 %v1466_v26  ;;  %v1464_v11 = vadd.f32 1.0, %v3232_v45  ;;  %v2565_v42 = vmul.f32 -1.442695, %v4486_v48  ;;  %v4807_v26 = vld [vmem:[#allocation43_spill] sm:$0xff] }
 0x196   :  { %v3236_v43 = vpop.eup %3235  ;;  %3255 = vrcp.f32 %v1526_v27  ;;  %v4503_v31 = vadd.f32 %v4145_v3, %v4806_v0  ;;  %v4509_v45 = vadd.f32 %v4145_v3, %v4807_v26  ;;  %v1797_v20 = vmul.f32 %v3234_v37, %v4296_v57 }
 0x197   :  { %v3238_v18 = vpop.eup %3237  ;;  %v2208_v44 = vpack.c.bf16 %v2071_v34, %v2071_v34  ;;  %3257 = vrcp.f32 %v1464_v11  ;;  %v4808_v34 = vld [vmem:[#allocation12_spill] sm:$0xff] }
 0x198   :  { %v3240_v39 = vpop.eup %3239  ;;  %v1524_v30 = vadd.f32 1.0, %v3238_v18  ;;  %3259 = vpow2.f32 %v2566_v49  ;;  %v2625_v49 = vmul.f32 -1.442695, %v4493_v32  ;;  %v4520_v11 = vadd.f32 %v4145_v3, %v4808_v34 }
 0x199   :  { %v3242_v8 = vpop.eup %3241  ;;  %v2263_v53 = vunpack.c.l.b16 %v2208_v44  ;;  %v1858_v62 = vmul.f32 %v3240_v39, %v4340_v1  ;;  %3261 = vpow2.f32 %v2626_v9  ;;  %v1798_v18 = vmul.f32 %v3236_v43, %v4334_v15  ;;  %v4809_v43 = vld [vmem:[#allocation44_spill] sm:$0xff] }
 0x19a   :  { %v3244_v24 = vpop.eup %3243  ;;  %v1796_v7 = vmul.f32 %v3242_v8, %v4351_v35  ;;  %3263 = vrcp.f32 %v1524_v30  ;;  %v2568_v15 = vmul.f32 -1.442695, %v4509_v45 }
 0x19b   :  { %v3246_v19 = vpop.eup %3245  ;;  %v4513_v27 = vsel %vm2281_vm5, %v2263_v53, %v4398_v12  ;;  %v2180_v1 = vadd.f32 %v1858_v62, %v1857_v23  ;;  %v1856_v9 = vmul.f32 %v3244_v24, %v4358_v22  ;;  %3265 = vpow2.f32 %v2564_v38 }
 0x19c   :  { %v3248_v59 = vpop.eup %3247  ;;  %v2073_v35 = vadd.f32 %v4452_v46, %v1796_v7  ;;  %3267 = vpow2.f32 %v2624_v54  ;;  %v2570_v22 = vmul.f32 -1.442695, %v4503_v31  ;;  %v4534_v23 = vadd.f32 %v4145_v3, %v4809_v43 }
 0x19d   :  { %v3250_v47 = vpop.eup %3249  ;;  %v1997_v12 = vsel %vm1885_vm1, %v1856_v9, 0.0  ;;  %3269 = vpow2.f32 %v2567_v16  ;;  %v1801_v39 = vmul.f32 %v3246_v19, %v4363_v56 }
 0x19e   :  { %v3252_v38 = vpop.eup %3251  ;;  %v2074_v44 = vadd.f32 %v2073_v35, %v1797_v20  ;;  %v4527_v57 = vadd.f32 %v4460_v50, %v1997_v12  ;;  %v1799_v46 = vmul.f32 %v3250_v47, %v4382_v10  ;;  %3271 = vpow2.f32 %v2627_v13 }
 0x19f   :  { %v3254_v37 = vpop.eup %3253  ;;  %v1859_v54 = vmul.f32 %v3252_v38, %v4394_v14  ;;  %3273 = vpow2.f32 %v2565_v42  ;;  %v2630_v13 = vmul.f32 -1.442695, %v4520_v11  ;;  %v2628_v56 = vmul.f32 -1.442695, %v4534_v23 }
 0x1a0   :  { %v3256_v16 = vpop.eup %3255  ;;  %v2075_v30 = vadd.f32 %v2074_v44, %v1798_v18  ;;  %v1802_v50 = vmul.f32 %v3254_v37, %v4404_v51  ;;  %3275 = vpow2.f32 %v2625_v49  ;;  %v4810_v49 = vld [vmem:[#allocation45_spill] sm:$0xff]  ;;  %v4811_v44 = vld [vmem:[#allocation46_spill] sm:$0xff] }
 0x1a1   :  { %v3258_v8 = vpop.eup %3257  ;;  %v2181_v10 = vadd.f32 %v2180_v1, %v1859_v54  ;;  %3277 = vpow2.f32 %v2570_v22  ;;  %v4549_v26 = vadd.f32 %v4145_v3, %v4810_v49  ;;  %v1862_v22 = vmul.f32 %v3256_v16, %v4410_v60 }
 0x1a2   :  { %v3260_v14 = vpop.eup %3259  ;;  %3279 = vpow2.f32 %v4455_v28  ;;  %v2076_v42 = vadd.f32 %v2075_v30, %v1799_v46  ;;  %v4540_v53 = vadd.f32 %v1802_v50, %v1801_v39  ;;  %v1800_v62 = vmul.f32 %v3258_v8, %v4416_v55  ;;  %v4812_v39 = vld [vmem:[#allocation13_spill] sm:$0xff] }
 0x1a3   :  { %v3262_v0 = vpop.eup %3261  ;;  %3281 = vpow2.f32 %v4458_v21  ;;  %v1861_v21 = vmul.f32 %v3248_v59, %v4375_v36  ;;  %v1469_v9 = vadd.f32 1.0, %v3260_v14  ;;  %v2571_v38 = vmul.f32 -1.442695, %v4549_v26  ;;  %v3368_v14 = vld [vmem:[%s4700_s2] ss:$0 sm:$0xff] }
 0x1a4   :  { %v3264_v51 = vpop.eup %3263  ;;  %v1941_v24 = vsel %vm1885_vm1, %v1800_v62, 0.0  ;;  %v1529_v7 = vadd.f32 1.0, %v3262_v0  ;;  %3283 = vpow2.f32 %v2568_v15  ;;  %v4561_v30 = vadd.f32 %v4145_v3, %v4812_v39 }
 0x1a5   :  { %v3266_v28 = vpop.eup %3265  ;;  %v2077_v19 = vadd.f32 %v2076_v42, %v1941_v24  ;;  %v1860_v1 = vmul.f32 %v3264_v51, %v4422_v41  ;;  %3285 = vpow2.f32 %v2630_v13  ;;  %v4557_v41 = vadd.f32 %v4145_v3, %v4811_v44  ;;  %v4813_v42 = vld [vmem:[#allocation47_spill] sm:$0xff]  ;;  %v4814_v51 = vld [vmem:[#allocation14_spill] sm:$0xff] }
 0x1a6   :  { %v3268_v55 = vpop.eup %3267  ;;  %3287 = vrcp.f32 %v1529_v7  ;;  %v1467_v20 = vadd.f32 1.0, %v3266_v28  ;;  %v4569_v62 = vadd.f32 %v3368_v14, %v4813_v42  ;;  %v4575_v24 = vadd.f32 %v3368_v14, %v4814_v51  ;;  %v4815_v28 = vld [vmem:[#allocation15_spill] sm:$0xff] }
 0x1a7   :  { %v3270_v35 = vpop.eup %3269  ;;  %v2078_v34 = vrot.slane %v2077_v19, 4  ;;  %v2182_v47 = vadd.f32 %v2181_v10, %v1860_v1  ;;  %v1527_v18 = vadd.f32 1.0, %v3268_v55  ;;  %3289 = vpow2.f32 %v2628_v56  ;;  %v4816_v1 = vld [vmem:[#allocation17_spill] sm:$0xff] }
 0x1a8   :  { %v3272_v12 = vpop.eup %3271  ;;  %3291 = vrcp.f32 %v1467_v20  ;;  %v1470_v15 = vadd.f32 1.0, %v3270_v35  ;;  %v2631_v56 = vmul.f32 -1.442695, %v4557_v41  ;;  %v2569_v49 = vmul.f32 -1.442695, %v4561_v30  ;;  %v4817_v35 = vld [vmem:[#allocation18_spill] sm:$0xff] }
 0x1a9   :  { %v3274_v46 = vpop.eup %3273  ;;  %v2079_v36 = vadd.f32 %v2078_v34, %v2077_v19  ;;  %v2183_v59 = vadd.f32 %v2182_v47, %v1861_v21  ;;  %3293 = vrcp.f32 %v1527_v18  ;;  %v1530_v37 = vadd.f32 1.0, %v3272_v12  ;;  %v4818_v12 = vld [vmem:[#allocation20_spill] sm:$0xff] }
 0x1aa   :  { %v3276_v54 = vpop.eup %3275  ;;  %3295 = vrcp.f32 %v1469_v9  ;;  %v1468_v43 = vadd.f32 1.0, %v3274_v46  ;;  %v4579_v19 = vadd.f32 %v3368_v14, %v4815_v28  ;;  %v4582_v55 = vadd.f32 %v3368_v14, %v4816_v1 }
 0x1ab   :  { %v3278_v60 = vpop.eup %3277  ;;  %v2080_v16 = vrot.slane %v2079_v36, 2  ;;  %v2184_v50 = vadd.f32 %v2183_v59, %v1862_v22  ;;  %3297 = vrcp.f32 %v1530_v37  ;;  %v1528_v8 = vadd.f32 1.0, %v3276_v54  ;;  %v4819_v59 = vld [vmem:[#allocation21_spill] sm:$0xff] }
 0x1ac   :  { %v4563_v10 = vpop.eup %3279  ;;  %3299 = vrcp.f32 %v1468_v43  ;;  %v1473_v13 = vadd.f32 1.0, %v3278_v60  ;;  %v4585_v34 = vadd.f32 %v3368_v14, %v4817_v35  ;;  %v2629_v18 = vmul.f32 -1.442695, %v4569_v62 }
 0x1ad   :  { %v4571_v0 = vpop.eup %3281  ;;  %v2081_v3 = vadd.f32 %v2080_v16, %v2079_v36  ;;  %3301 = vrcp.f32 %v1528_v8  ;;  %v4589_v22 = vadd.f32 %v3368_v14, %v4818_v12  ;;  %v2574_v36 = vmul.f32 -1.442695, %v4575_v24 }
 0x1ae   :  { %v3284_v7 = vpop.eup %3283  ;;  %3303 = vrcp.f32 %v1470_v15  ;;  %v4593_v37 = vadd.f32 %v3368_v14, %v4819_v59  ;;  %v2572_v15 = vmul.f32 -1.442695, %v4579_v19  ;;  %v2575_v43 = vmul.f32 -1.442695, %v4582_v55 }
 0x1af   :  { %v3286_v21 = vpop.eup %3285  ;;  %v2082_v9 = vrot.slane %v2081_v3, 1  ;;  %v1471_v20 = vadd.f32 1.0, %v3284_v7  ;;  %3305 = vpow2.f32 %v2571_v38  ;;  %v2573_v8 = vmul.f32 -1.442695, %v4585_v34 }
 0x1b0   :  { %v3288_v47 = vpop.eup %3287  ;;  %3307 = vrcp.f32 %v1473_v13  ;;  %v4602_v51 = vadd.f32 %v3368_v14, %v4212_v61  ;;  %v2576_v1 = vmul.f32 -1.442695, %v4593_v37 }
 0x1b1   :  { %v3290_v44 = vpop.eup %3289  ;;  %v2083_v46 = vadd.f32 %v2082_v9, %v2081_v3  ;;  %3309 = vrcp.f32 %v1471_v20  ;;  %v2578_v3 = vmul.f32 -1.442695, %v4589_v22 }
 0x1b2   :  { %v3292_v38 = vpop.eup %3291  ;;  %v1531_v54 = vadd.f32 1.0, %v3290_v44  ;;  %3311 = vpow2.f32 %v2631_v56 }
 0x1b3   :  { %v3294_v39 = vpop.eup %3293  ;;  %v2209_v60 = vpack.c.bf16 %v2083_v46, %v2083_v46  ;;  %v1803_v16 = vmul.f32 %v3292_v38, %v4469_v63  ;;  %3313 = vpow2.f32 %v2569_v49  ;;  %v1865_v49 = vmul.f32 %v3288_v47, %v4464_v2 }
 0x1b4   :  { %v3296_v13 = vpop.eup %3295  ;;  %v1863_v42 = vmul.f32 %v3294_v39, %v4473_v29  ;;  %3315 = vrcp.f32 %v1531_v54  ;;  %v4610_v29 = vadd.f32 %v3368_v14, %v4216_v25  ;;  %v1533_v47 = vadd.f32 1.0, %v3286_v21 }
 0x1b5   :  { %v3298_v56 = vpop.eup %3297  ;;  %v2264_v7 = vunpack.c.l.b16 %v2209_v60  ;;  %v2085_v28 = vadd.f32 %v4540_v53, %v1803_v16  ;;  %3317 = vpow2.f32 %v2629_v18  ;;  %v1805_v44 = vmul.f32 %v3296_v13, %v4450_v58 }
 0x1b6   :  { %v3300_v63 = vpop.eup %3299  ;;  %v2004_v9 = vsel %vm1885_vm1, %v1863_v42, 0.0  ;;  %3319 = vpow2.f32 %v2574_v36  ;;  %v2579_v14 = vmul.f32 -1.442695, %v4602_v51 }
 0x1b7   :  { %v3302_v20 = vpop.eup %3301  ;;  %v4614_v61 = vsel %vm2283_vm7, %v2264_v7, %v4513_v27  ;;  %v4616_v35 = vadd.f32 %v2184_v50, %v2004_v9  ;;  %v1804_v53 = vmul.f32 %v3300_v63, %v4486_v48  ;;  %3321 = vpow2.f32 %v2572_v15 }
 0x1b8   :  { %v3304_v18 = vpop.eup %3303  ;;  %v1864_v2 = vmul.f32 %v3302_v20, %v4493_v32  ;;  %3323 = vpow2.f32 %v2575_v43  ;;  %v1866_v27 = vmul.f32 %v3298_v56, %v4482_v5  ;;  %v2577_v48 = vmul.f32 -1.442695, %v4610_v29 }
 0x1b9   :  { %v3306_v12 = vpop.eup %3305  ;;  %v2086_v25 = vadd.f32 %v2085_v28, %v1804_v53  ;;  %3325 = vpow2.f32 %v2573_v8  ;;  %v1806_v32 = vmul.f32 %v3304_v18, %v4477_v6 }
 0x1ba   :  { %v4622_v46 = vpop.eup %3307  ;;  %v2192_v50 = vadd.f32 %v1865_v49, %v1864_v2  ;;  %3327 = vpow2.f32 %v2578_v3  ;;  %v1474_v59 = vadd.f32 1.0, %v3306_v12 }
 0x1bb   :  { %v3310_v36 = vpop.eup %3309  ;;  %v2087_v21 = vadd.f32 %v2086_v25, %v1805_v44  ;;  %3329 = vpow2.f32 %v2576_v1 }
 0x1bc   :  { %v3312_v38 = vpop.eup %3311  ;;  %3331 = vrcp.f32 %v1533_v47  ;;  %v1807_v58 = vmul.f32 %v3310_v36, %v4509_v45  ;;  %v2193_v54 = vadd.f32 %v2192_v50, %v1866_v27  ;;  %v4820_v50 = vld [vmem:[#allocation8_spill] sm:$0xff] }
 0x1bd   :  { %v3314_v15 = vpop.eup %3313  ;;  %v2088_v43 = vadd.f32 %v2087_v21, %v1806_v32  ;;  %v1534_v39 = vadd.f32 1.0, %v3312_v38  ;;  %3333 = vpow2.f32 %v2579_v14 }
 0x1be   :  { %v3316_v5 = vpop.eup %3315  ;;  %v1948_v60 = vsel %vm1885_vm1, %v1807_v58, 0.0  ;;  %v1472_v16 = vadd.f32 1.0, %v3314_v15  ;;  %3335 = vpow2.f32 %v2577_v48  ;;  %v1485_v48 = vadd.f32 1.0, %v4820_v50 }
 0x1bf   :  { %v3318_v8 = vpop.eup %3317  ;;  %v2089_v6 = vadd.f32 %v2088_v43, %v1948_v60  ;;  %v1867_v13 = vmul.f32 %v3316_v5, %v4534_v23  ;;  %3337 = vrcp.f32 %v1474_v59  ;;  %v1483_v58 = vadd.f32 1.0, %v4563_v10 }
 0x1c0   :  { %v3320_v42 = vpop.eup %3319  ;;  %3339 = vrcp.f32 %v1472_v16  ;;  %v1532_v3 = vadd.f32 1.0, %v3318_v8  ;;  %v1809_v15 = vmul.f32 %v4622_v46, %v4503_v31  ;;  %v1484_v60 = vadd.f32 1.0, %v4571_v0 }
 0x1c1   :  { %v3322_v45 = vpop.eup %3321  ;;  %v2090_v56 = vrot.slane %v2089_v6, 4  ;;  %v2194_v7 = vadd.f32 %v2193_v54, %v1867_v13  ;;  %3341 = vrcp.f32 %v1534_v39  ;;  %v1477_v28 = vadd.f32 1.0, %v3320_v42 }
 0x1c2   :  { %v3324_v1 = vpop.eup %3323  ;;  %3343 = vrcp.f32 %v1532_v3  ;;  %v1475_v63 = vadd.f32 1.0, %v3322_v45 }
 0x1c3   :  { %v3326_v49 = vpop.eup %3325  ;;  %v2091_v9 = vadd.f32 %v2090_v56, %v2089_v6  ;;  %3345 = vrcp.f32 %v1477_v28  ;;  %v1478_v20 = vadd.f32 1.0, %v3324_v1 }
 0x1c4   :  { %v3328_v53 = vpop.eup %3327  ;;  %3347 = vrcp.f32 %v1475_v63  ;;  %v1476_v18 = vadd.f32 1.0, %v3326_v49 }
 0x1c5   :  { %v3330_v23 = vpop.eup %3329  ;;  %v2092_v2 = vrot.slane %v2091_v9, 2  ;;  %3349 = vrcp.f32 %v1478_v20  ;;  %v1481_v12 = vadd.f32 1.0, %v3328_v53 }
 0x1c6   :  { %v3332_v47 = vpop.eup %3331  ;;  %3351 = vrcp.f32 %v1476_v18  ;;  %v1479_v44 = vadd.f32 1.0, %v3330_v23 }
 0x1c7   :  { %v3334_v25 = vpop.eup %3333  ;;  %v2093_v14 = vadd.f32 %v2092_v2, %v2091_v9  ;;  %v1869_v31 = vmul.f32 %v3332_v47, %v4520_v11  ;;  %v4821_v2 = vld [vmem:[#allocation23_spill] sm:$0xff] }
 0x1c8   :  { %v3336_v27 = vpop.eup %3335  ;;  %3353 = vrcp.f32 %v1479_v44  ;;  %v1482_v21 = vadd.f32 1.0, %v3334_v25 }
 0x1c9   :  { %v3338_v36 = vpop.eup %3337  ;;  %v2094_v32 = vrot.slane %v2093_v14, 1  ;;  %v1480_v59 = vadd.f32 1.0, %v3336_v27  ;;  %3355 = vrcp.f32 %v1481_v12 }
 0x1ca   :  { %v3340_v38 = vpop.eup %3339  ;;  %v1810_v16 = vmul.f32 %v3338_v36, %v4549_v26  ;;  %v2162_v36 = vrot.slane %v4400_v17, 4 }
 0x1cb   :  { %v3342_v54 = vpop.eup %3341  ;;  %v2095_v43 = vadd.f32 %v2094_v32, %v2093_v14  ;;  %v1808_v39 = vmul.f32 %v3340_v38, %v4561_v30  ;;  %3357 = vrcp.f32 %v1480_v59 }
 0x1cc   :  { %v3344_v5 = vpop.eup %3343  ;;  %3359 = vrcp.f32 %v1485_v48  ;;  %v1870_v46 = vmul.f32 %v3342_v54, %v4557_v41  ;;  %v2186_v54 = vrot.slane %v4616_v35, 4 }
 0x1cd   :  { %v3346_v8 = vpop.eup %3345  ;;  %v2210_v6 = vpack.c.bf16 %v2095_v43, %v2095_v43  ;;  %v2096_v13 = vadd.f32 %v1809_v15, %v1808_v39  ;;  %v1868_v10 = vmul.f32 %v3344_v5, %v4569_v62  ;;  %3361 = vrcp.f32 %v1482_v21 }
 0x1ce   :  { %v3348_v42 = vpop.eup %3347  ;;  %3363 = vrcp.f32 %v1483_v58  ;;  %v2011_v11 = vsel %vm1885_vm1, %v1870_v46, 0.0  ;;  %v2187_v46 = vadd.f32 %v2186_v54, %v4616_v35 }
 0x1cf   :  { %v3350_v30 = vpop.eup %3349  ;;  %v2265_v3 = vunpack.c.l.b16 %v2210_v6  ;;  %v2195_v45 = vadd.f32 %v2194_v7, %v1868_v10  ;;  %v1811_v0 = vmul.f32 %v3348_v42, %v4579_v19  ;;  %v2097_v56 = vadd.f32 %v2096_v13, %v1810_v16 }
 0x1d0   :  { %v3352_v26 = vpop.eup %3351  ;;  %3365 = vrcp.f32 %v1484_v60  ;;  %v1814_v41 = vmul.f32 %v3350_v30, %v4582_v55  ;;  %v1813_v19 = vmul.f32 %v3346_v8, %v4575_v24  ;;  %v4822_v55 = vld [vmem:[#allocation42_spill] sm:$0xff]  ;;  %v2150_v24 = vrot.slane %v4232_v52, 4  ;;  %v4823_v60 = vld [vmem:[#allocation7_spill] sm:$0xff] }
 0x1d1   :  { %v2196_v28 = vadd.f32 %v2195_v45, %v1869_v31  ;;  %v2098_v1 = vadd.f32 %v2097_v56, %v1811_v0  ;;  %v1812_v62 = vmul.f32 %v3352_v26, %v4585_v34  ;;  %v4645_v63 = vsel %vm2285_vm8, %v2265_v3, %v4614_v61 }
 0x1d2   :  { %v3354_v49 = vpop.eup %3353  ;;  %v2126_v34 = vrot.slane %v4821_v2, 4  ;;  %v1955_v61 = vsel %vm1885_vm1, %v1814_v41, 0.0  ;;  %v2138_v25 = vrot.slane %v4822_v55, 4  ;;  %v2163_v8 = vadd.f32 %v2162_v36, %v4400_v17 }
 0x1d3   :  { %v2197_v7 = vadd.f32 %v2196_v28, %v2011_v11  ;;  %v2099_v9 = vadd.f32 %v2098_v1, %v1812_v62  ;;  %v3356_v20 = vpop.eup %3355  ;;  %v1815_v47 = vmul.f32 %v3354_v49, %v4593_v37  ;;  %v2174_v37 = vrot.slane %v4527_v57, 4 }
 0x1d4   :  { %v1817_v50 = vmul.f32 %v3356_v20, %v4589_v22  ;;  %v2127_v59 = vadd.f32 %v2126_v34, %v4821_v2  ;;  %v2139_v58 = vadd.f32 %v2138_v25, %v4822_v55  ;;  %v2151_v22 = vadd.f32 %v2150_v24, %v4232_v52 }
 0x1d5   :  { %v3358_v53 = vpop.eup %3357  ;;  %v2100_v18 = vadd.f32 %v2099_v9, %v1813_v19  ;;  %v2198_v39 = vrot.slane %v2197_v7, 4  ;;  %v2175_v10 = vadd.f32 %v2174_v37, %v4527_v57  ;;  %v2164_v0 = vrot.slane %v2163_v8, 2 }
 0x1d6   :  { %v3360_v23 = vpop.eup %3359  ;;  %v1816_v12 = vmul.f32 %v3358_v53, %v4610_v29  ;;  %v2140_v31 = vrot.slane %v2139_v58, 2  ;;  %v2188_v1 = vrot.slane %v2187_v46, 2 }
 0x1d7   :  { %v3362_v44 = vpop.eup %3361  ;;  %v2101_v14 = vadd.f32 %v2100_v18, %v1955_v61  ;;  %v1821_v16 = vmul.f32 %v3360_v23, %v4823_v60  ;;  %v2199_v3 = vadd.f32 %v2198_v39, %v2197_v7  ;;  %v2176_v26 = vrot.slane %v2175_v10, 2 }
 0x1d8   :  { %v3364_v27 = vpop.eup %3363  ;;  %v2108_v48 = vadd.f32 %v1816_v12, %v1815_v47  ;;  %v1818_v29 = vmul.f32 %v3362_v44, %v4602_v51  ;;  %v2128_v51 = vrot.slane %v2127_v59, 2  ;;  %v2165_v49 = vadd.f32 %v2164_v0, %v2163_v8 }
 0x1d9   :  { %v2102_v32 = vrot.slane %v2101_v14, 4  ;;  %v1819_v43 = vmul.f32 %v3364_v27, %v4428_v4  ;;  %v2152_v4 = vrot.slane %v2151_v22, 2  ;;  %v1962_v45 = vsel %vm1885_vm1, %v1821_v16, 0.0 }
 0x1da   :  { %v3366_v21 = vpop.eup %3365  ;;  %v2109_v38 = vadd.f32 %v2108_v48, %v1817_v50  ;;  %v2129_v17 = vadd.f32 %v2128_v51, %v2127_v59  ;;  %v2200_v11 = vrot.slane %v2199_v3, 2  ;;  %v2177_v9 = vadd.f32 %v2176_v26, %v2175_v10 }
 0x1db   :  { %v2103_v15 = vadd.f32 %v2102_v32, %v2101_v14  ;;  %v1820_v13 = vmul.f32 %v3366_v21, %v4434_v40  ;;  %v2141_v40 = vadd.f32 %v2140_v31, %v2139_v58  ;;  %v2153_v57 = vadd.f32 %v2152_v4, %v2151_v22 }
 0x1dc   :  { %v2110_v5 = vadd.f32 %v2109_v38, %v1818_v29  ;;  %v2130_v19 = vrot.slane %v2129_v17, 1  ;;  %v2189_v33 = vadd.f32 %v2188_v1, %v2187_v46  ;;  %v2201_v23 = vadd.f32 %v2200_v11, %v2199_v3  ;;  %v2632_v3 = vld [vmem:[%s4702_s4] ss:$0 sm:$0xff] }
 0x1dd   :  { %v2104_v6 = vrot.slane %v2103_v15, 2  ;;  %v2142_v20 = vrot.slane %v2141_v40, 1  ;;  %v2154_v18 = vrot.slane %v2153_v57, 1  ;;  %v2166_v34 = vrot.slane %v2165_v49, 1 }
 0x1de   :  { %v2111_v42 = vadd.f32 %v2110_v5, %v1819_v43  ;;  %v2131_v47 = vadd.f32 %v2130_v19, %v2129_v17  ;;  %v2178_v12 = vrot.slane %v2177_v9, 1  ;;  %v2190_v25 = vrot.slane %v2189_v33, 1 }
 0x1df   :  { %v2105_v30 = vadd.f32 %v2104_v6, %v2103_v15  ;;  %v2143_v55 = vadd.f32 %v2142_v20, %v2141_v40  ;;  %v2155_v14 = vadd.f32 %v2154_v18, %v2153_v57  ;;  %v2202_v27 = vrot.slane %v2201_v23, 1 }
 0x1e0   :  { %v2112_v52 = vadd.f32 %v2111_v42, %v1820_v13  ;;  %v2167_v50 = vadd.f32 %v2166_v34, %v2165_v49  ;;  %v2213_v48 = vpack.c.bf16 %v2131_v47, %v2131_v47  ;;  %v2179_v36 = vadd.f32 %v2178_v12, %v2177_v9 }
 0x1e1   :  { %v2106_v56 = vrot.slane %v2105_v30, 1  ;;  %v2214_v21 = vpack.c.bf16 %v2143_v55, %v2143_v55  ;;  %v2191_v59 = vadd.f32 %v2190_v25, %v2189_v33  ;;  %v2215_v37 = vpack.c.bf16 %v2155_v14, %v2155_v14 }
 0x1e2   :  { %v2113_v28 = vadd.f32 %v2112_v52, %v1962_v45  ;;  %v2203_v29 = vadd.f32 %v2202_v27, %v2201_v23  ;;  %v2216_v58 = vpack.c.bf16 %v2167_v50, %v2167_v50  ;;  %v2268_v54 = vunpack.c.l.b16 %v2213_v48 }
 0x1e3   :  { %v2107_v62 = vadd.f32 %v2106_v56, %v2105_v30  ;;  %v2269_v43 = vunpack.c.l.b16 %v2214_v21  ;;  %v2218_v22 = vpack.c.bf16 %v2191_v59, %v2191_v59  ;;  %v2270_v39 = vunpack.c.l.b16 %v2215_v37 }
 0x1e4   :  { %v2114_v41 = vrot.slane %v2113_v28, 4  ;;  %v2219_v5 = vpack.c.bf16 %v2203_v29, %v2203_v29  ;;  %v2271_v16 = vunpack.c.l.b16 %v2216_v58 }
 0x1e5   :  { %v2211_v35 = vpack.c.bf16 %v2107_v62, %v2107_v62  ;;  %v2273_v51 = vunpack.c.l.b16 %v2218_v22 }
 0x1e6   :  { %v2115_v7 = vadd.f32 %v2114_v41, %v2113_v28  ;;  %v2274_v42 = vunpack.c.l.b16 %v2219_v5 }
 0x1e7   :  { %v2266_v53 = vunpack.c.l.b16 %v2211_v35 }
 0x1e8   :  { %v2116_v2 = vrot.slane %v2115_v7, 2 }
 0x1e9   :  { %v2288_v61 = vsel %vm2287_vm9, %v2266_v53, %v4645_v63  ;;  %v2217_v63 = vpack.c.bf16 %v2179_v36, %v2179_v36 }
 0x1ea   :  { %v2117_v44 = vadd.f32 %v2116_v2, %v2115_v7 }
 0x1eb   :  { %v2272_v6 = vunpack.c.l.b16 %v2217_v63 }
 0x1ec   :  { %v2118_v24 = vrot.slane %v2117_v44, 1 }
 0x1ee   :  { %v2119_v32 = vadd.f32 %v2118_v24, %v2117_v44 }
 0x1f0   :  { %v2212_v38 = vpack.c.bf16 %v2119_v32, %v2119_v32 }
 0x1f2   :  { %v2267_v15 = vunpack.c.l.b16 %v2212_v38 }
 0x1f4   :  { %v2289_v60 = vsel %vm2275_vm2, %v2268_v54, %v2267_v15 }
 0x1f5   :  { %v2290_v8 = vsel %vm2277_vm3, %v2269_v43, %v2289_v60 }
 0x1f6   :  { %v2291_v13 = vsel %vm2279_vm4, %v2270_v39, %v2290_v8 }
 0x1f7   :  { %v2292_v10 = vsel %vm2281_vm5, %v2271_v16, %v2291_v13 }
 0x1f8   :  { %v2293_v31 = vsel %vm2283_vm7, %v2272_v6, %v2292_v10 }
 0x1f9   :  { %v2294_v46 = vsel %vm2285_vm8, %v2273_v51, %v2293_v31 }
 0x1fa   :  { %v2295_v30 = vsel %vm2287_vm9, %v2274_v42, %v2294_v46 }
 0x1fb   :  { %v2296_v4 = vpack.c.b16 %v2295_v30, %v2288_v61 }
 0x1fd   :  { %2841 = vmatmul.mubr.bf16.vlgmr.msra.gmra.mrb[52].mxu1 %v2296_v4 }
 0x2d0   :  { %v2380_v52 = vpop.f32.mrb[52].mxu1 }
 0x2d1   :  { %v2381_v45 = vadd.f32 %v2632_v3, %v2380_v52  ;;  %v2842_v0 = vpop.f32.mrb[53].mxu1 }
 0x2d2   :  { %v2383_v56 = vpop.f32.mrb[54].mxu1 }
 0x2d3   :  { %2387 = vst [vmem:[#allocation2] sm:$0xff] %v2381_v45  ;;  %v2384_v17 = vadd.f32 %v2632_v3, %v2383_v56  ;;  %v2843_v26 = vpop.f32.mrb[55].mxu1 }
 0x2d5   :  { %2388 = vst [vmem:[#allocation2 + $0x8] sm:$0xff] %v2384_v17 }
 0x2d6   :  { %3380 = shalt.err (!%p3377_p4)
}
 0x2d7   :  { %s3381_s28 = scalar_lea.hbm %s4703_s5, 256 }
 0x2d8   :  { %p3382_p5 = scmp.ne.s32.totalorder %s4703_s5, %s3381_s28  ;;  %p3385_p6 = scmp.lt.u32.totalorder %s3381_s28, %s4703_s5 }
 0x2da   :  { %p3387_p7 = pnand %p3385_p6, %p3382_p5 }
 0x2dc   :  { %3390 = shalt.err (!%p3387_p7)
}
 0x2dd   :  { %s3396_s7 = smov 128   ;;  %s3397_s8 = smov 8  }
 0x2de   :  { %2400 = dma.vmem_to_hbm [thread:$0]  %s2395_s26, 256, %s4703_s5, [#allocation3], %s3396_s7, %s3396_s7, %s3397_s8  }
 0x2df   :  { %3391 = dma.done.wait [#allocation3], 256  }
 0x2e0   :  { %3392 = vsyncadd [#allocation3], 4294967040 }
 0x2e1   :  { %2404 = vsyncpa [#allocation3], 1 }

// kernel: effnet_forward.1
= control target key start
LH: loop header
LB: loop body
LE: loop exit
PB: predicated region body
PF: predicated region fallthrough
CT: control target
= control target key end

     0   :  { %vm437_vm0 = vcmask 261120   ;;  %s4698_s0 = inlined_call_operand.vmem [shape: bf16[896,32], index: 0, kind: input, shape index: {}]   ;;  %s4699_s1 = inlined_call_operand.vmem [shape: bf16[32,128], index: 1, kind: input, shape index: {}]   ;;  %s4700_s2 = inlined_call_operand.vmem [shape: f32[1,128], index: 2, kind: input, shape index: {}]   ;;  %s4701_s3 = inlined_call_operand.vmem [shape: bf16[128,128], index: 3, kind: input, shape index: {}]   ;;  %s4702_s4 = inlined_call_operand.vmem [shape: f32[1,128], index: 4, kind: input, shape index: {}]   ;;  %s4703_s5 = inlined_call_operand.hbm [shape: f32[16,128], index: 5, kind: output, shape index: {}]  }
   0x1   :  { %v2853_v0 = vld [vmem:[%s4699_s1] sm:$0xff]   ;;  %v2854_v1 = vld [vmem:[%s4699_s1 + $0x8] sm:$0xff]   ;;  %v2856_v3 = vld [vmem:[%s4698_s0 + $0xf0] sm:$0xff]  }
   0x2   :  { %2708 = vmatprep.subr.bf16.mxu0 %v2853_v0  ;;  %2844 = vmatprep.subr.bf16.mxu1 %v2853_v0  ;;  %v2855_v2 = vld [vmem:[%s4698_s0] sm:$0xff]   ;;  %v2857_v4 = vld [vmem:[%s4698_s0 + $0x8] sm:$0xff]   ;;  %v2858_v5 = vld [vmem:[%s4698_s0 + $0xf8] sm:$0xff]  }
   0x3   :  { %2709 = vmatpush3.bf16.msra.mxu0 %v2853_v0  ;;  %2846 = vmatpush3.bf16.msra.mxu1 %v2853_v0  ;;  %v2859_v6 = vld [vmem:[%s4698_s0 + $0x10] sm:$0xff]   ;;  %v2860_v7 = vld [vmem:[%s4698_s0 + $0x100] sm:$0xff]   ;;  %v2861_v8 = vld [vmem:[%s4698_s0 + $0x18] sm:$0xff]  }
   0x4   :  { %2710 = vmatprep.subr.bf16.mxu0 %v2854_v1  ;;  %2845 = vmatprep.subr.bf16.mxu1 %v2854_v1  ;;  %v2862_v9 = vld [vmem:[%s4698_s0 + $0x108] sm:$0xff]   ;;  %v2863_v10 = vld [vmem:[%s4698_s0 + $0x20] sm:$0xff]   ;;  %v2864_v11 = vld [vmem:[%s4698_s0 + $0x110] sm:$0xff]  }
   0x5   :  { %2712 = vmatprep.mubr.msk.bf16.mxu0 %vm437_vm0, %v2855_v2  ;;  %2772 = vmatprep.mubr.msk.bf16.mxu1 %vm437_vm0, %v2856_v3  ;;  %v2865_v12 = vld [vmem:[%s4698_s0 + $0x28] sm:$0xff]   ;;  %v2866_v13 = vld [vmem:[%s4698_s0 + $0x118] sm:$0xff]   ;;  %v2867_v14 = vld [vmem:[%s4698_s0 + $0x30] sm:$0xff]  }
   0x6   :  { %v2868_v15 = vld [vmem:[%s4698_s0 + $0x120] sm:$0xff]   ;;  %v2869_v16 = vld [vmem:[%s4698_s0 + $0x38] sm:$0xff]   ;;  %v2870_v17 = vld [vmem:[%s4698_s0 + $0x128] sm:$0xff]  }
   0x7   :  { %2711 = vmatpush3.bf16.msra.mxu0 %v2854_v1  ;;  %2847 = vmatpush3.bf16.msra.mxu1 %v2854_v1  ;;  %v2871_v18 = vld [vmem:[%s4698_s0 + $0x40] sm:$0xff]   ;;  %v2872_v19 = vld [vmem:[%s4698_s0 + $0x130] sm:$0xff]   ;;  %v2873_v20 = vld [vmem:[%s4698_s0 + $0x48] sm:$0xff]  }
   0x8   :  { %v2874_v21 = vld [vmem:[%s4698_s0 + $0x138] sm:$0xff]   ;;  %v2875_v22 = vld [vmem:[%s4698_s0 + $0x50] sm:$0xff]   ;;  %v2876_v23 = vld [vmem:[%s4698_s0 + $0x140] sm:$0xff]  }
   0x9   :  { %v2877_v24 = vld [vmem:[%s4698_s0 + $0x58] sm:$0xff]   ;;  %v2878_v25 = vld [vmem:[%s4698_s0 + $0x148] sm:$0xff]   ;;  %v2879_v26 = vld [vmem:[%s4698_s0 + $0x60] sm:$0xff]  }
   0xa   :  { %2713 = vmatmul.mubr.msk.bf16.vlgmr.msra.gmra.mrb[0].mxu0 %vm437_vm0, %v2857_v4  ;;  %2773 = vmatmul.mubr.msk.bf16.vlgmr.msra.gmra.mrb[0].mxu1 %vm437_vm0, %v2858_v5  ;;  %v2880_v27 = vld [vmem:[%s4698_s0 + $0x150] sm:$0xff]   ;;  %v2881_v28 = vld [vmem:[%s4698_s0 + $0x68] sm:$0xff]   ;;  %v2882_v29 = vld [vmem:[%s4698_s0 + $0x158] sm:$0xff]  }
   0xb   :  { %2716 = vmatprep.mubr.msk.bf16.mxu0 %vm437_vm0, %v2859_v6  ;;  %2776 = vmatprep.mubr.msk.bf16.mxu1 %vm437_vm0, %v2860_v7  ;;  %v2883_v30 = vld [vmem:[%s4698_s0 + $0x70] sm:$0xff]   ;;  %v2884_v31 = vld [vmem:[%s4698_s0 + $0x160] sm:$0xff]   ;;  %v2885_v32 = vld [vmem:[%s4698_s0 + $0x78] sm:$0xff]  }
   0xc   :  { %v2886_v33 = vld [vmem:[%s4698_s0 + $0x168] sm:$0xff]   ;;  %v2887_v34 = vld [vmem:[%s4698_s0 + $0x80] sm:$0xff]   ;;  %v2888_v35 = vld [vmem:[%s4698_s0 + $0x170] sm:$0xff]  }
  0x12   :  { %2717 = vmatmul.mubr.msk.bf16.gmra.mrb[4].mxu0 %vm437_vm0, %v2861_v8  ;;  %2777 = vmatmul.mubr.msk.bf16.gmra.mrb[4].mxu1 %vm437_vm0, %v2862_v9 }
  0x13   :  { %2720 = vmatprep.mubr.msk.bf16.mxu0 %vm437_vm0, %v2863_v10  ;;  %2780 = vmatprep.mubr.msk.bf16.mxu1 %vm437_vm0, %v2864_v11 }
  0x1a   :  { %2721 = vmatmul.mubr.msk.bf16.gmra.mrb[8].mxu0 %vm437_vm0, %v2865_v12  ;;  %2781 = vmatmul.mubr.msk.bf16.gmra.mrb[8].mxu1 %vm437_vm0, %v2866_v13 }
  0x1b   :  { %2724 = vmatprep.mubr.msk.bf16.mxu0 %vm437_vm0, %v2867_v14  ;;  %2784 = vmatprep.mubr.msk.bf16.mxu1 %vm437_vm0, %v2868_v15 }
  0x22   :  { %2725 = vmatmul.mubr.msk.bf16.gmra.mrb[12].mxu0 %vm437_vm0, %v2869_v16  ;;  %2785 = vmatmul.mubr.msk.bf16.gmra.mrb[12].mxu1 %vm437_vm0, %v2870_v17 }
  0x23   :  { %2728 = vmatprep.mubr.msk.bf16.mxu0 %vm437_vm0, %v2871_v18  ;;  %2788 = vmatprep.mubr.msk.bf16.mxu1 %vm437_vm0, %v2872_v19 }
  0x2a   :  { %2729 = vmatmul.mubr.msk.bf16.gmra.mrb[16].mxu0 %vm437_vm0, %v2873_v20  ;;  %2789 = vmatmul.mubr.msk.bf16.gmra.mrb[16].mxu1 %vm437_vm0, %v2874_v21 }
  0x2b   :  { %2732 = vmatprep.mubr.msk.bf16.mxu0 %vm437_vm0, %v2875_v22  ;;  %2792 = vmatprep.mubr.msk.bf16.mxu1 %vm437_vm0, %v2876_v23 }
  0x32   :  { %2733 = vmatmul.mubr.msk.bf16.gmra.mrb[20].mxu0 %vm437_vm0, %v2877_v24  ;;  %2793 = vmatmul.mubr.msk.bf16.gmra.mrb[20].mxu1 %vm437_vm0, %v2878_v25 }
  0x33   :  { %2736 = vmatprep.mubr.msk.bf16.mxu0 %vm437_vm0, %v2879_v26  ;;  %2796 = vmatprep.mubr.msk.bf16.mxu1 %vm437_vm0, %v2880_v27 }
  0x3a   :  { %2737 = vmatmul.mubr.msk.bf16.gmra.mrb[24].mxu0 %vm437_vm0, %v2881_v28  ;;  %2797 = vmatmul.mubr.msk.bf16.gmra.mrb[24].mxu1 %vm437_vm0, %v2882_v29 }
  0x3b   :  { %2740 = vmatprep.mubr.msk.bf16.mxu0 %vm437_vm0, %v2883_v30  ;;  %2800 = vmatprep.mubr.msk.bf16.mxu1 %vm437_vm0, %v2884_v31 }
  0x3c   :  { %10 = vsyncpa [#allocation3], 0  ;;  %v2889_v36 = vld [vmem:[%s4698_s0 + $0x88] sm:$0xff]   ;;  %v2890_v37 = vld [vmem:[%s4698_s0 + $0x178] sm:$0xff]   ;;  %vm2275_vm2 = vcmask 1041409   ;;  %vm2277_vm3 = vcmask 1042434  }
  0x3d   :  { %v2891_v38 = vld [vmem:[%s4698_s0 + $0x90] sm:$0xff]   ;;  %v2892_v39 = vld [vmem:[%s4698_s0 + $0x180] sm:$0xff]   ;;  %v2893_v40 = vld [vmem:[%s4698_s0 + $0x98] sm:$0xff]   ;;  %vm2279_vm4 = vcmask 1043459   ;;  %vm2281_vm5 = vcmask 1044484   ;;  %vm3394_vm6 = vmmov 0  }
  0x3e   :  { %v2894_v41 = vld [vmem:[%s4698_s0 + $0x188] sm:$0xff]   ;;  %v2895_v42 = vld [vmem:[%s4698_s0 + $0xa0] sm:$0xff]   ;;  %v2896_v43 = vld [vmem:[%s4698_s0 + $0x190] sm:$0xff]   ;;  %vm2283_vm7 = vcmask 1045509   ;;  %vm2285_vm8 = vcmask 1046534   ;;  %vm2287_vm9 = vcmask 1047559  }
  0x3f   :  { %v2897_v44 = vld [vmem:[%s4698_s0 + $0xa8] sm:$0xff]   ;;  %v2898_v45 = vld [vmem:[%s4698_s0 + $0x198] sm:$0xff]   ;;  %v2899_v46 = vld [vmem:[%s4698_s0 + $0xb0] sm:$0xff]   ;;  %s3395_s25 = smov [#allocation2]  }
  0x40   :  { %v2900_v47 = vld [vmem:[%s4698_s0 + $0x1a0] sm:$0xff]   ;;  %v2901_v48 = vld [vmem:[%s4698_s0 + $0xb8] sm:$0xff]   ;;  %v2902_v49 = vld [vmem:[%s4698_s0 + $0x1a8] sm:$0xff]   ;;  %s2394_s26 = sshll.u32 %s3395_s25, 4  ;;  %s2395_s26 = int_to_ptr.vmem [resolvable:$true] %s2394_s26 }
  0x41   :  { %v2903_v50 = vld [vmem:[%s4698_s0 + $0xc0] sm:$0xff]   ;;  %v2904_v51 = vld [vmem:[%s4698_s0 + $0x1b0] sm:$0xff]   ;;  %v2905_v52 = vld [vmem:[%s4698_s0 + $0xc8] sm:$0xff]   ;;  %s3369_s27 = scalar_lea.vmem %s2395_s26, 256  ;;  %p3374_p1 = scmp.lt.s32.totalorder %s2395_s26, %s2395_s26 }
  0x42   :  { %2741 = vmatmul.mubr.msk.bf16.gmra.mrb[28].mxu0 %vm437_vm0, %v2885_v32  ;;  %2801 = vmatmul.mubr.msk.bf16.gmra.mrb[28].mxu1 %vm437_vm0, %v2886_v33  ;;  %v2906_v53 = vld [vmem:[%s4698_s0 + $0x1b8] sm:$0xff]   ;;  %v2907_v54 = vld [vmem:[%s4698_s0 + $0xd0] sm:$0xff]   ;;  %v2909_v56 = vld [vmem:[%s4698_s0 + $0xe0] sm:$0xff]   ;;  %p3370_p0 = scmp.ne.s32.totalorder %s2395_s26, %s3369_s27  ;;  %p3375_p2 = scmp.lt.s32.totalorder %s3369_s27, %s3369_s27 }
  0x43   :  { %2744 = vmatprep.mubr.msk.bf16.mxu0 %vm437_vm0, %v2887_v34  ;;  %2804 = vmatprep.mubr.msk.bf16.mxu1 %vm437_vm0, %v2888_v35  ;;  %v2908_v55 = vld [vmem:[%s4698_s0 + $0xd8] sm:$0xff]   ;;  %v2910_v57 = vld [vmem:[%s4698_s0 + $0xe8] sm:$0xff]   ;;  %v3661_v58 = vld [vmem:[%s4700_s2] ss:$0 sm:$0xff] }
  0x44   :  { %p3376_p3 = por %p3375_p2, %p3374_p1 }
  0x46   :  { %p3377_p4 = pnand %p3376_p3, %p3370_p0 }
  0x4a   :  { %2745 = vmatmul.mubr.msk.bf16.gmra.mrb[32].mxu0 %vm437_vm0, %v2889_v36  ;;  %2805 = vmatmul.mubr.msk.bf16.gmra.mrb[32].mxu1 %vm437_vm0, %v2890_v37 }
  0x4b   :  { %2748 = vmatprep.mubr.msk.bf16.mxu0 %vm437_vm0, %v2891_v38  ;;  %2808 = vmatprep.mubr.msk.bf16.mxu1 %vm437_vm0, %v2892_v39 }
  0x52   :  { %2749 = vmatmul.mubr.msk.bf16.gmra.mrb[36].mxu0 %vm437_vm0, %v2893_v40  ;;  %2809 = vmatmul.mubr.msk.bf16.gmra.mrb[36].mxu1 %vm437_vm0, %v2894_v41 }
  0x53   :  { %2752 = vmatprep.mubr.msk.bf16.mxu0 %vm437_vm0, %v2895_v42  ;;  %2812 = vmatprep.mubr.msk.bf16.mxu1 %vm437_vm0, %v2896_v43 }
  0x5a   :  { %2753 = vmatmul.mubr.msk.bf16.gmra.mrb[40].mxu0 %vm437_vm0, %v2897_v44  ;;  %2813 = vmatmul.mubr.msk.bf16.gmra.mrb[40].mxu1 %vm437_vm0, %v2898_v45 }
  0x5b   :  { %2756 = vmatprep.mubr.msk.bf16.mxu0 %vm437_vm0, %v2899_v46  ;;  %2816 = vmatprep.mubr.msk.bf16.mxu1 %vm437_vm0, %v2900_v47 }
  0x62   :  { %2757 = vmatmul.mubr.msk.bf16.gmra.mrb[44].mxu0 %vm437_vm0, %v2901_v48  ;;  %2817 = vmatmul.mubr.msk.bf16.gmra.mrb[44].mxu1 %vm437_vm0, %v2902_v49 }
  0x63   :  { %2760 = vmatprep.mubr.msk.bf16.mxu0 %vm437_vm0, %v2903_v50  ;;  %2820 = vmatprep.mubr.msk.bf16.mxu1 %vm437_vm0, %v2904_v51 }
  0x6a   :  { %2761 = vmatmul.mubr.msk.bf16.gmra.mrb[48].mxu0 %vm437_vm0, %v2905_v52  ;;  %2821 = vmatmul.mubr.msk.bf16.gmra.mrb[48].mxu1 %vm437_vm0, %v2906_v53 }
  0x6b   :  { %2764 = vmatprep.mubr.msk.bf16.mxu0 %vm437_vm0, %v2907_v54 }
  0x72   :  { %2765 = vmatmul.mubr.msk.bf16.gmra.mrb[52].mxu0 %vm437_vm0, %v2908_v55 }
  0x73   :  { %2768 = vmatprep.mubr.msk.bf16.mxu0 %vm437_vm0, %v2909_v56 }
  0x7a   :  { %2769 = vmatmul.mubr.msk.bf16.gmra.mrb[56].mxu0 %vm437_vm0, %v2910_v57 }
  0xdd   :  { %v2714_v59 = vpop.f32.mrb[0].mxu0  ;;  %v2774_v60 = vpop.f32.mrb[0].mxu1 }
  0xde   :  { %v3664_v61 = vadd.f32 %v2714_v59, %v3661_v58  ;;  %v640_v62 = vpop.f32.mrb[1].mxu0  ;;  %v3666_v63 = vpop.f32.mrb[1].mxu1  ;;  %v3702_v27 = vadd.f32 %v2774_v60, %v3661_v58 }
  0xdf   :  { %4712 = vst [vmem:[#allocation5_spill] sm:$0xff] %v3666_v63  ;;  %v3669_v0 = vadd.f32 %v3661_v58, %v640_v62  ;;  %v2715_v1 = vpop.f32.mrb[2].mxu0  ;;  %v2775_v2 = vpop.f32.mrb[2].mxu1 }
  0xe0   :  { %v2522_v3 = vmul.f32 -1.442695, %v3664_v61  ;;  %v3673_v4 = vadd.f32 %v2715_v1, %v3661_v58  ;;  %v3676_v5 = vadd.f32 %v2775_v2, %v3661_v58  ;;  %v643_v6 = vpop.f32.mrb[3].mxu0  ;;  %v3678_v7 = vpop.f32.mrb[3].mxu1  ;;  %4714 = vst [vmem:[#allocation7_spill] sm:$0xff] %v3702_v27 }
  0xe1   :  { %4713 = vst [vmem:[#allocation6_spill] sm:$0xff] %v3678_v7  ;;  %v2520_v8 = vmul.f32 -1.442695, %v3669_v0  ;;  %v3682_v9 = vadd.f32 %v3661_v58, %v643_v6  ;;  %v2582_v32 = vmul.f32 -1.442695, %v3702_v27 }
  0xe2   :  { %v2523_v10 = vmul.f32 -1.442695, %v3673_v4  ;;  %2919 = vpow2.f32 %v2522_v3  ;;  %v2583_v11 = vmul.f32 -1.442695, %v3676_v5 }
  0xe3   :  { %2921 = vpow2.f32 %v2520_v8  ;;  %v2521_v12 = vmul.f32 -1.442695, %v3682_v9 }
  0xe4   :  { %2923 = vpow2.f32 %v2523_v10 }
  0xe5   :  { %v2718_v13 = vpop.f32.mrb[4].mxu0  ;;  %v2778_v14 = vpop.f32.mrb[4].mxu1  ;;  %2925 = vpow2.f32 %v2583_v11 }
  0xe6   :  { %v3688_v15 = vadd.f32 %v2718_v13, %v3661_v58  ;;  %v3691_v16 = vadd.f32 %v2778_v14, %v3661_v58  ;;  %v656_v17 = vpop.f32.mrb[5].mxu0  ;;  %v896_v18 = vpop.f32.mrb[5].mxu1  ;;  %2927 = vpow2.f32 %v2521_v12 }
  0xe7   :  { %v3694_v19 = vadd.f32 %v3661_v58, %v656_v17  ;;  %v3697_v20 = vadd.f32 %v3661_v58, %v896_v18  ;;  %v2719_v21 = vpop.f32.mrb[6].mxu0  ;;  %v2779_v22 = vpop.f32.mrb[6].mxu1 }
  0xe8   :  { %v2526_v23 = vmul.f32 -1.442695, %v3688_v15  ;;  %v2586_v24 = vmul.f32 -1.442695, %v3691_v16  ;;  %v659_v25 = vpop.f32.mrb[7].mxu0  ;;  %v899_v26 = vpop.f32.mrb[7].mxu1  ;;  %v3707_v30 = vadd.f32 %v2719_v21, %v3661_v58  ;;  %v3712_v52 = vadd.f32 %v2779_v22, %v3661_v58 }
  0xe9   :  { %v2524_v28 = vmul.f32 -1.442695, %v3694_v19  ;;  %v2584_v29 = vmul.f32 -1.442695, %v3697_v20  ;;  %v3715_v55 = vadd.f32 %v3661_v58, %v659_v25  ;;  %v3718_v59 = vadd.f32 %v3661_v58, %v899_v26 }
  0xea   :  { %2929 = vpow2.f32 %v2526_v23  ;;  %v2527_v36 = vmul.f32 -1.442695, %v3707_v30  ;;  %v2587_v12 = vmul.f32 -1.442695, %v3712_v52 }
  0xeb   :  { %2931 = vpow2.f32 %v2586_v24  ;;  %v2525_v18 = vmul.f32 -1.442695, %v3715_v55  ;;  %v2585_v23 = vmul.f32 -1.442695, %v3718_v59 }
  0xec   :  { %2933 = vpow2.f32 %v2524_v28  ;;  %v2920_v31 = vpop.eup %2919 }
  0xed   :  { %2935 = vpow2.f32 %v2584_v29  ;;  %v2722_v33 = vpop.f32.mrb[8].mxu0  ;;  %v2782_v34 = vpop.f32.mrb[8].mxu1  ;;  %v1425_v43 = vadd.f32 1.0, %v2920_v31 }
  0xee   :  { %v2922_v35 = vpop.eup %2921  ;;  %v672_v37 = vpop.f32.mrb[9].mxu0  ;;  %2937 = vpow2.f32 %v2582_v32  ;;  %v3723_v6 = vadd.f32 %v2722_v33, %v3661_v58  ;;  %v3731_v13 = vadd.f32 %v2782_v34, %v3661_v58 }
  0xef   :  { %v912_v38 = vpop.f32.mrb[9].mxu1  ;;  %v1423_v39 = vadd.f32 1.0, %v2922_v35  ;;  %v2723_v40 = vpop.f32.mrb[10].mxu0  ;;  %2939 = vpow2.f32 %v2527_v36  ;;  %v3739_v21 = vadd.f32 %v3661_v58, %v672_v37 }
  0xf0   :  { %v2783_v41 = vpop.f32.mrb[10].mxu1  ;;  %v2924_v42 = vpop.eup %2923  ;;  %v3745_v24 = vadd.f32 %v3661_v58, %v912_v38  ;;  %v2530_v26 = vmul.f32 -1.442695, %v3723_v6  ;;  %v3751_v28 = vadd.f32 %v2723_v40, %v3661_v58  ;;  %v2590_v31 = vmul.f32 -1.442695, %v3731_v13 }
  0xf1   :  { %v675_v44 = vpop.f32.mrb[11].mxu0  ;;  %v2926_v45 = vpop.eup %2925  ;;  %v1426_v48 = vadd.f32 1.0, %v2924_v42  ;;  %2941 = vrcp.f32 %v1423_v39  ;;  %v3755_v32 = vadd.f32 %v2783_v41, %v3661_v58  ;;  %v2528_v34 = vmul.f32 -1.442695, %v3739_v21 }
  0xf2   :  { %v915_v46 = vpop.f32.mrb[11].mxu1  ;;  %v2928_v47 = vpop.eup %2927  ;;  %v1486_v49 = vadd.f32 1.0, %v2926_v45  ;;  %2943 = vrcp.f32 %v1425_v43  ;;  %v3759_v35 = vadd.f32 %v3661_v58, %v675_v44  ;;  %v2588_v39 = vmul.f32 -1.442695, %v3745_v24 }
  0xf3   :  { %v1424_v50 = vadd.f32 1.0, %v2928_v47  ;;  %v3767_v40 = vadd.f32 %v3661_v58, %v915_v46  ;;  %v2531_v44 = vmul.f32 -1.442695, %v3751_v28 }
  0xf4   :  { %v2930_v51 = vpop.eup %2929 }
  0xf5   :  { %v2932_v53 = vpop.eup %2931  ;;  %2945 = vrcp.f32 %v1424_v50  ;;  %v1429_v54 = vadd.f32 1.0, %v2930_v51  ;;  %v2726_v56 = vpop.f32.mrb[12].mxu0  ;;  %v2591_v51 = vmul.f32 -1.442695, %v3755_v32 }
  0xf6   :  { %v2934_v57 = vpop.eup %2933  ;;  %2947 = vrcp.f32 %v1426_v48  ;;  %v2786_v60 = vpop.f32.mrb[12].mxu1  ;;  %v1489_v2 = vadd.f32 1.0, %v2932_v53  ;;  %v3775_v45 = vadd.f32 %v2726_v56, %v3661_v58  ;;  %v2529_v56 = vmul.f32 -1.442695, %v3759_v35 }
  0xf7   :  { %v3720_v62 = vpop.f32.mrb[13].mxu0  ;;  %v2936_v1 = vpop.eup %2935  ;;  %2949 = vrcp.f32 %v1486_v49  ;;  %v1427_v3 = vadd.f32 1.0, %v2934_v57 }
  0xf8   :  { %v3725_v8 = vpop.f32.mrb[13].mxu1  ;;  %v3727_v10 = vpop.f32.mrb[14].mxu0  ;;  %2951 = vrcp.f32 %v1429_v54  ;;  %v1487_v11 = vadd.f32 1.0, %v2936_v1  ;;  %v3790_v1 = vadd.f32 %v2786_v60, %v3661_v58 }
  0xf9   :  { %v3733_v14 = vpop.f32.mrb[14].mxu1  ;;  %v3735_v17 = vpop.f32.mrb[15].mxu0  ;;  %2953 = vrcp.f32 %v1427_v3 }
  0xfa   :  { %v3741_v22 = vpop.f32.mrb[15].mxu1  ;;  %2955 = vrcp.f32 %v1487_v11  ;;  %v3747_v25 = vpop.eup %2937  ;;  %4716 = vst [vmem:[#allocation9_spill] sm:$0xff] %v3790_v1 }
  0xfb   :  { %4715 = vst [vmem:[#allocation8_spill] sm:$0xff] %v3747_v25  ;;  %2957 = vrcp.f32 %v1489_v2  ;;  %v2940_v29 = vpop.eup %2939  ;;  %v3859_v27 = vadd.f32 %v3661_v58, %v3741_v22 }
  0xfc   :  { %2959 = vpow2.f32 %v2587_v12  ;;  %v2942_v33 = vpop.eup %2941  ;;  %v1871_v12 = vlaneseq }
  0xfd   :  { %2961 = vpow2.f32 %v2525_v18  ;;  %v3761_v36 = vpop.f32.mrb[16].mxu0  ;;  %v3763_v37 = vpop.f32.mrb[16].mxu1  ;;  %v1759_v50 = vmul.f32 %v2942_v33, %v3669_v0  ;;  %v1430_v18 = vadd.f32 1.0, %v2940_v29 }
  0xfe   :  { %v2944_v38 = vpop.eup %2943  ;;  %2963 = vpow2.f32 %v2585_v23  ;;  %v3769_v41 = vpop.f32.mrb[17].mxu0  ;;  %v2534_v23 = vmul.f32 -1.442695, %v3775_v45  ;;  %v3874_v22 = vadd.f32 %v3763_v37, %v3661_v58 }
  0xff   :  { %v3771_v42 = vpop.f32.mrb[17].mxu1  ;;  %v2946_v43 = vpop.eup %2945  ;;  %2965 = vpow2.f32 %v2530_v26  ;;  %v1761_v0 = vmul.f32 %v2944_v38, %v3664_v61 }
 0x100   :  { %v3777_v47 = vpop.f32.mrb[18].mxu0  ;;  %v3779_v48 = vpop.f32.mrb[18].mxu1  ;;  %v1760_v46 = vmul.f32 %v2946_v43, %v3682_v9  ;;  %2967 = vpow2.f32 %v2590_v31  ;;  %v2589_v9 = vmul.f32 -1.442695, %v3767_v40  ;;  %4723 = vst [vmem:[#allocation16_spill] sm:$0xff] %v3874_v22 }
 0x101   :  { %v2948_v49 = vpop.eup %2947  ;;  %v3784_v53 = vpop.f32.mrb[19].mxu0  ;;  %2969 = vpow2.f32 %v2528_v34 }
 0x102   :  { %v3786_v54 = vpop.f32.mrb[19].mxu1  ;;  %v2950_v57 = vpop.eup %2949  ;;  %v2012_v3 = vadd.f32 %v1760_v46, %v1759_v50  ;;  %2971 = vpow2.f32 %v2588_v39  ;;  %v1762_v31 = vmul.f32 %v2948_v49, %v3673_v4  ;;  %v2594_v39 = vmul.f32 -1.442695, %v3790_v1 }
 0x103   :  { %v3792_v2 = vpop.eup %2951  ;;  %2973 = vpow2.f32 %v2531_v44  ;;  %v1822_v61 = vmul.f32 %v2950_v57, %v3676_v5  ;;  %v1872_v46 = vshrl.u32 %v1871_v12, 7 }
 0x104   :  { %v2954_v11 = vpop.eup %2953  ;;  %v2013_v33 = vadd.f32 %v2012_v3, %v1761_v0  ;;  %2975 = vpow2.f32 %v2591_v51 }
 0x105   :  { %v2956_v26 = vpop.eup %2955  ;;  %v1763_v60 = vmul.f32 %v2954_v11, %v3694_v19  ;;  %2977 = vpow2.f32 %v2529_v56  ;;  %v3804_v29 = vpop.f32.mrb[20].mxu0 }
 0x106   :  { %v3799_v34 = vpop.eup %2957  ;;  %v1823_v38 = vmul.f32 %v2956_v26, %v3697_v20  ;;  %v3806_v43 = vpop.f32.mrb[20].mxu1  ;;  %v2014_v50 = vadd.f32 %v2013_v33, %v1762_v31  ;;  %2979 = vpow2.f32 %v2589_v9  ;;  %v3824_v33 = vadd.s32 48, %v1872_v46 }
 0x107   :  { %v2960_v44 = vpop.eup %2959  ;;  %v3808_v4 = vpop.f32.mrb[21].mxu0  ;;  %2981 = vpow2.f32 %v2534_v23  ;;  %v3836_v46 = vadd.f32 %v3661_v58, %v3725_v8  ;;  %v3853_v8 = vadd.f32 %v3661_v58, %v3735_v17  ;;  %v3866_v17 = vadd.f32 %v3761_v36, %v3661_v58 }
 0x108   :  { %v3810_v19 = vpop.f32.mrb[21].mxu1  ;;  %v2962_v49 = vpop.eup %2961  ;;  %v3812_v51 = vadd.f32 %v1823_v38, %v1822_v61  ;;  %v3818_v56 = vadd.f32 %v2014_v50, %v1763_v60  ;;  %2983 = vrcp.f32 %v1430_v18  ;;  %v1490_v0 = vadd.f32 1.0, %v2960_v44 }
 0x109   :  { %v3814_v5 = vpop.f32.mrb[22].mxu0  ;;  %v3816_v20 = vpop.f32.mrb[22].mxu1  ;;  %v1428_v3 = vadd.f32 1.0, %v2962_v49  ;;  %2985 = vpow2.f32 %v2594_v39  ;;  %v3828_v49 = vadd.f32 %v3661_v58, %v3720_v62  ;;  %vm1885_vm1 = vcmp.lt.s32.totalorder %v3824_v33, 49 }
 0x10a   :  { %v2964_v57 = vpop.eup %2963  ;;  %v3820_v9 = vpop.f32.mrb[23].mxu0  ;;  %v2592_v36 = vmul.f32 -1.442695, %v3836_v46  ;;  %v2533_v37 = vmul.f32 -1.442695, %v3853_v8 }
 0x10b   :  { %v3822_v11 = vpop.f32.mrb[23].mxu1  ;;  %v2966_v26 = vpop.eup %2965  ;;  %v1488_v31 = vadd.f32 1.0, %v2964_v57  ;;  %2987 = vrcp.f32 %v1428_v3  ;;  %v2532_v25 = vmul.f32 -1.442695, %v3828_v49 }
 0x10c   :  { %v2968_v12 = vpop.eup %2967  ;;  %v1433_v60 = vadd.f32 1.0, %v2966_v26 }
 0x10d   :  { %v2970_v23 = vpop.eup %2969  ;;  %2989 = vrcp.f32 %v1488_v31  ;;  %v1493_v61 = vadd.f32 1.0, %v2968_v12  ;;  %v3830_v57 = vpop.f32.mrb[24].mxu0 }
 0x10e   :  { %v2972_v38 = vpop.eup %2971  ;;  %2991 = vrcp.f32 %v1490_v0  ;;  %v1431_v18 = vadd.f32 1.0, %v2970_v23  ;;  %v3832_v39 = vpop.f32.mrb[24].mxu1  ;;  %v3840_v0 = vadd.f32 %v3727_v10, %v3661_v58  ;;  %v3849_v23 = vadd.f32 %v3733_v14, %v3661_v58 }
 0x10f   :  { %v2974_v44 = vpop.eup %2973  ;;  %2993 = vrcp.f32 %v1493_v61  ;;  %v1491_v50 = vadd.f32 1.0, %v2972_v38  ;;  %v3842_v26 = vpop.f32.mrb[25].mxu0 }
 0x110   :  { %v2976_v3 = vpop.eup %2975  ;;  %2995 = vrcp.f32 %v1431_v18  ;;  %v3844_v31 = vpop.f32.mrb[25].mxu1  ;;  %4718 = vst [vmem:[#allocation11_spill] sm:$0xff] %v3849_v23  ;;  %v1434_v38 = vadd.f32 1.0, %v2974_v44  ;;  %v2535_v63 = vmul.f32 -1.442695, %v3840_v0 }
 0x111   :  { %4717 = vst [vmem:[#allocation10_spill] sm:$0xff] %v3844_v31  ;;  %v2978_v62 = vpop.eup %2977  ;;  %2997 = vrcp.f32 %v1491_v50  ;;  %v1494_v12 = vadd.f32 1.0, %v2976_v3  ;;  %v3855_v61 = vpop.f32.mrb[26].mxu0 }
 0x112   :  { %4719 = vst [vmem:[#allocation12_spill] sm:$0xff] %v3855_v61  ;;  %v2980_v10 = vpop.eup %2979  ;;  %2999 = vrcp.f32 %v1433_v60  ;;  %v1432_v18 = vadd.f32 1.0, %v2978_v62  ;;  %v3861_v50 = vpop.f32.mrb[26].mxu1  ;;  %v3891_v61 = vadd.f32 %v3661_v58, %v3771_v42  ;;  %v1825_v42 = vmul.f32 %v3799_v34, %v3691_v16 }
 0x113   :  { %4720 = vst [vmem:[#allocation13_spill] sm:$0xff] %v3861_v50  ;;  %v2982_v3 = vpop.eup %2981  ;;  %3001 = vrcp.f32 %v1494_v12  ;;  %v1492_v14 = vadd.f32 1.0, %v2980_v10  ;;  %v3868_v7 = vpop.f32.mrb[27].mxu0  ;;  %v3878_v12 = vadd.f32 %v3661_v58, %v3769_v41 }
 0x114   :  { %4721 = vst [vmem:[#allocation14_spill] sm:$0xff] %v3868_v7  ;;  %v3870_v60 = vpop.f32.mrb[27].mxu1  ;;  %v2984_v44 = vpop.eup %2983  ;;  %3003 = vrcp.f32 %v1432_v18  ;;  %v1437_v62 = vadd.f32 1.0, %v2982_v3  ;;  %v2595_v7 = vmul.f32 -1.442695, %v3849_v23  ;;  %v1765_v18 = vmul.f32 %v3792_v2, %v3688_v15 }
 0x115   :  { %4722 = vst [vmem:[#allocation15_spill] sm:$0xff] %v3870_v60  ;;  %v2986_v10 = vpop.eup %2985  ;;  %3005 = vrcp.f32 %v1492_v14  ;;  %v2593_v3 = vmul.f32 -1.442695, %v3859_v27  ;;  %v2538_v14 = vmul.f32 -1.442695, %v3866_v17  ;;  %v3893_v31 = vpop.f32.mrb[28].mxu0 }
 0x116   :  { %v2988_v60 = vpop.eup %2987  ;;  %3007 = vrcp.f32 %v1434_v38  ;;  %4724 = vst [vmem:[#allocation17_spill] sm:$0xff] %v3893_v31  ;;  %v3895_v23 = vpop.f32.mrb[28].mxu1  ;;  %v2598_v38 = vmul.f32 -1.442695, %v3874_v22  ;;  %v2536_v1 = vmul.f32 -1.442695, %v3878_v12 }
 0x117   :  { %v2990_v50 = vpop.eup %2989  ;;  %v1764_v41 = vmul.f32 %v2988_v60, %v3715_v55  ;;  %3009 = vrcp.f32 %v1437_v62  ;;  %4725 = vst [vmem:[#allocation18_spill] sm:$0xff] %v3895_v23  ;;  %v3900_v55 = vpop.f32.mrb[29].mxu0  ;;  %v3909_v23 = vadd.f32 %v3777_v47, %v3661_v58 }
 0x118   :  { %v2992_v15 = vpop.eup %2991  ;;  %v1824_v2 = vmul.f32 %v2990_v50, %v3718_v59  ;;  %3011 = vpow2.f32 %v2532_v25  ;;  %4726 = vst [vmem:[#allocation19_spill] sm:$0xff] %v3900_v55  ;;  %v3902_v60 = vpop.f32.mrb[29].mxu1  ;;  %v1906_v55 = vsel %vm1885_vm1, %v1765_v18, 0.0 }
 0x119   :  { %4727 = vst [vmem:[#allocation20_spill] sm:$0xff] %v3902_v60  ;;  %v2994_v62 = vpop.eup %2993  ;;  %v2016_v31 = vadd.f32 %v3818_v56, %v1764_v41  ;;  %3013 = vpow2.f32 %v2592_v36  ;;  %v3911_v59 = vpop.f32.mrb[30].mxu0  ;;  %v1766_v60 = vmul.f32 %v2984_v44, %v3707_v30  ;;  %v1826_v47 = vmul.f32 %v2992_v15, %v3712_v52 }
 0x11a   :  { %4728 = vst [vmem:[#allocation21_spill] sm:$0xff] %v3911_v59  ;;  %v3913_v25 = vpop.f32.mrb[30].mxu1  ;;  %v2996_v50 = vpop.eup %2995  ;;  %v2121_v22 = vadd.f32 %v3812_v51, %v1824_v2  ;;  %3015 = vpow2.f32 %v2535_v63  ;;  %v1829_v18 = vmul.f32 %v2994_v62, %v3731_v13  ;;  %v2596_v44 = vmul.f32 -1.442695, %v3891_v61 }
 0x11b   :  { %4729 = vst [vmem:[#allocation22_spill] sm:$0xff] %v3913_v25  ;;  %v3919_v16 = vpop.f32.mrb[31].mxu0  ;;  %v3921_v34 = vpop.f32.mrb[31].mxu1  ;;  %v3924_v36 = vadd.f32 %v2016_v31, %v1906_v55  ;;  %v1767_v41 = vmul.f32 %v2996_v50, %v3739_v21  ;;  %3017 = vpow2.f32 %v2595_v7  ;;  %v2539_v2 = vmul.f32 -1.442695, %v3909_v23 }
 0x11c   :  { %v2998_v56 = vpop.eup %2997  ;;  %v2122_v59 = vadd.f32 %v2121_v22, %v1825_v42  ;;  %3019 = vpow2.f32 %v2533_v37  ;;  %v3934_v7 = vadd.f32 %v3661_v58, %v3784_v53 }
 0x11d   :  { %v3000_v25 = vpop.eup %2999  ;;  %v1827_v30 = vmul.f32 %v2998_v56, %v3745_v24  ;;  %v2024_v51 = vadd.f32 %v1767_v41, %v1766_v60  ;;  %3021 = vpow2.f32 %v2593_v3  ;;  %v1497_v24 = vadd.f32 1.0, %v2986_v10  ;;  %v3937_v22 = vpop.f32.mrb[32].mxu0 }
 0x11e   :  { %v3002_v63 = vpop.eup %3001  ;;  %v2123_v31 = vadd.f32 %v2122_v59, %v1826_v47  ;;  %3023 = vpow2.f32 %v2538_v14  ;;  %v3939_v37 = vpop.f32.mrb[32].mxu1  ;;  %v2537_v50 = vmul.f32 -1.442695, %v3934_v7 }
 0x11f   :  { %v3004_v52 = vpop.eup %3003  ;;  %v1830_v15 = vmul.f32 %v3002_v63, %v3755_v32  ;;  %3025 = vpow2.f32 %v2598_v38  ;;  %v3944_v14 = vpop.f32.mrb[33].mxu0  ;;  %v3953_v38 = vadd.f32 %v3779_v48, %v3661_v58 }
 0x120   :  { %v3006_v13 = vpop.eup %3005  ;;  %v1768_v21 = vmul.f32 %v3004_v52, %v3759_v35  ;;  %v2124_v55 = vadd.f32 %v2123_v31, %v1827_v30  ;;  %3027 = vpow2.f32 %v2536_v1  ;;  %v3946_v53 = vpop.f32.mrb[33].mxu1  ;;  %v1769_v35 = vmul.f32 %v3000_v25, %v3723_v6 }
 0x121   :  { %v3008_v3 = vpop.eup %3007  ;;  %v3941_v60 = vadd.f32 %v1830_v15, %v1829_v18  ;;  %v1828_v32 = vmul.f32 %v3006_v13, %v3767_v40  ;;  %3029 = vpow2.f32 %v2596_v44  ;;  %v3955_v42 = vpop.f32.mrb[34].mxu0 }
 0x122   :  { %v3948_v62 = vpop.eup %3009  ;;  %v2025_v10 = vadd.f32 %v2024_v51, %v1768_v21  ;;  %v3957_v59 = vpop.f32.mrb[34].mxu1  ;;  %3031 = vpow2.f32 %v2539_v2  ;;  %v1770_v47 = vmul.f32 %v3008_v3, %v3751_v28  ;;  %v2599_v2 = vmul.f32 -1.442695, %v3953_v38 }
 0x123   :  { %v3012_v40 = vpop.eup %3011  ;;  %v1969_v1 = vsel %vm1885_vm1, %v1828_v32, 0.0  ;;  %v3962_v56 = vpop.f32.mrb[35].mxu0  ;;  %3033 = vrcp.f32 %v1497_v24 }
 0x124   :  { %v3964_v6 = vpop.f32.mrb[35].mxu1  ;;  %v3014_v25 = vpop.eup %3013  ;;  %v2026_v48 = vadd.f32 %v2025_v10, %v1769_v35  ;;  %v3967_v41 = vadd.f32 %v2124_v55, %v1969_v1  ;;  %v1435_v18 = vadd.f32 1.0, %v3012_v40  ;;  %v3982_v1 = vadd.f32 %v3661_v58, %v3786_v54 }
 0x125   :  { %v3016_v30 = vpop.eup %3015  ;;  %v1495_v63 = vadd.f32 1.0, %v3014_v25  ;;  %v3972_v28 = vpop.f32.mrb[36].mxu0 }
 0x126   :  { %4730 = vst [vmem:[#allocation23_spill] sm:$0xff] %v3967_v41  ;;  %v3018_v51 = vpop.eup %3017  ;;  %3035 = vrcp.f32 %v1435_v18  ;;  %v3969_v44 = vadd.f32 %v2026_v48, %v1770_v47  ;;  %v1438_v31 = vadd.f32 1.0, %v3016_v30  ;;  %v3974_v21 = vpop.f32.mrb[36].mxu1  ;;  %v2018_v48 = vrot.slane %v3924_v36, 4 }
 0x127   :  { %v3020_v52 = vpop.eup %3019  ;;  %3037 = vrcp.f32 %v1495_v63  ;;  %v1498_v24 = vadd.f32 1.0, %v3018_v51  ;;  %v3976_v32 = vpop.f32.mrb[37].mxu0  ;;  %v3991_v18 = vadd.f32 %v3804_v29, %v3661_v58  ;;  %v3995_v30 = vadd.f32 %v3806_v43, %v3661_v58 }
 0x128   :  { %v3022_v15 = vpop.eup %3021  ;;  %v1436_v13 = vadd.f32 1.0, %v3020_v52  ;;  %3039 = vpow2.f32 %v2537_v50  ;;  %v3978_v35 = vpop.f32.mrb[37].mxu1  ;;  %v4003_v52 = vadd.f32 %v3661_v58, %v3808_v4  ;;  %v2019_v4 = vadd.f32 %v2018_v48, %v3924_v36 }
 0x129   :  { %v3024_v3 = vpop.eup %3023  ;;  %3041 = vrcp.f32 %v1438_v31  ;;  %v1496_v55 = vadd.f32 1.0, %v3022_v15  ;;  %v3984_v50 = vpop.f32.mrb[38].mxu0  ;;  %v4007_v31 = vadd.f32 %v3661_v58, %v3810_v19  ;;  %v2542_v41 = vmul.f32 -1.442695, %v3991_v18 }
 0x12a   :  { %v3026_v10 = vpop.eup %3025  ;;  %v1441_v40 = vadd.f32 1.0, %v3024_v3  ;;  %3043 = vpow2.f32 %v2599_v2  ;;  %4731 = vst [vmem:[#allocation24_spill] sm:$0xff] %v3984_v50  ;;  %v3986_v25 = vpop.f32.mrb[38].mxu1  ;;  %v2602_v19 = vmul.f32 -1.442695, %v3995_v30 }
 0x12b   :  { %4732 = vst [vmem:[#allocation25_spill] sm:$0xff] %v3986_v25  ;;  %v3028_v47 = vpop.eup %3027  ;;  %3045 = vrcp.f32 %v1436_v13  ;;  %v3997_v63 = vpop.f32.mrb[39].mxu0  ;;  %v1501_v15 = vadd.f32 1.0, %v3026_v10  ;;  %v4011_v13 = vadd.f32 %v3814_v5, %v3661_v58  ;;  %v4020_v5 = vadd.f32 %v3816_v20, %v3661_v58 }
 0x12c   :  { %4733 = vst [vmem:[#allocation26_spill] sm:$0xff] %v3997_v63  ;;  %v3999_v54 = vpop.f32.mrb[39].mxu1  ;;  %v3030_v51 = vpop.eup %3029  ;;  %3047 = vrcp.f32 %v1496_v55  ;;  %v1439_v2 = vadd.f32 1.0, %v3028_v47  ;;  %v2597_v55 = vmul.f32 -1.442695, %v3982_v1  ;;  %v4024_v10 = vadd.f32 %v3661_v58, %v3820_v9 }
 0x12d   :  { %4734 = vst [vmem:[#allocation27_spill] sm:$0xff] %v3999_v54  ;;  %v3032_v29 = vpop.eup %3031  ;;  %3049 = vrcp.f32 %v1498_v24  ;;  %v1499_v43 = vadd.f32 1.0, %v3030_v51  ;;  %v2540_v24 = vmul.f32 -1.442695, %v4003_v52  ;;  %v4028_v36 = vpop.f32.mrb[40].mxu1 }
 0x12e   :  { %3051 = vrcp.f32 %v1441_v40  ;;  %v1442_v3 = vadd.f32 1.0, %v3032_v29  ;;  %v3034_v47 = vpop.eup %3033  ;;  %v4026_v40 = vpop.f32.mrb[40].mxu0  ;;  %4736 = vst [vmem:[#allocation29_spill] sm:$0xff] %v4028_v36  ;;  %v2543_v29 = vmul.f32 -1.442695, %v4011_v13 }
 0x12f   :  { %3053 = vrcp.f32 %v1439_v2  ;;  %4735 = vst [vmem:[#allocation28_spill] sm:$0xff] %v4026_v40  ;;  %v2600_v2 = vmul.f32 -1.442695, %v4007_v31  ;;  %v4035_v20 = vpop.f32.mrb[41].mxu1  ;;  %v4040_v40 = vadd.f32 %v3661_v58, %v3822_v11  ;;  %v2603_v50 = vmul.f32 -1.442695, %v4020_v5 }
 0x130   :  { %v3036_v54 = vpop.eup %3035  ;;  %3055 = vrcp.f32 %v1499_v43  ;;  %v4033_v43 = vpop.f32.mrb[41].mxu0  ;;  %4738 = vst [vmem:[#allocation31_spill] sm:$0xff] %v4035_v20 }
 0x131   :  { %v3038_v48 = vpop.eup %3037  ;;  %v1771_v51 = vmul.f32 %v3036_v54, %v3828_v49  ;;  %3057 = vrcp.f32 %v1501_v15  ;;  %4737 = vst [vmem:[#allocation30_spill] sm:$0xff] %v4033_v43  ;;  %v4044_v49 = vadd.f32 %v3830_v57, %v3661_v58  ;;  %v4046_v54 = vpop.f32.mrb[42].mxu0  ;;  %v2020_v43 = vrot.slane %v2019_v4, 2 }
 0x132   :  { %v3040_v63 = vpop.eup %3039  ;;  %v1831_v9 = vmul.f32 %v3038_v48, %v3836_v46  ;;  %3059 = vrcp.f32 %v1442_v3  ;;  %4739 = vst [vmem:[#allocation32_spill] sm:$0xff] %v4046_v54  ;;  %v4048_v15 = vpop.f32.mrb[42].mxu1  ;;  %v1773_v48 = vmul.f32 %v3948_v62, %v3775_v45  ;;  %v4068_v45 = vadd.f32 %v3661_v58, %v3842_v26 }
 0x133   :  { %4740 = vst [vmem:[#allocation33_spill] sm:$0xff] %v4048_v15  ;;  %v3042_v36 = vpop.eup %3041  ;;  %v2028_v20 = vadd.f32 %v3969_v44, %v1771_v51  ;;  %v1440_v25 = vadd.f32 1.0, %v3040_v63  ;;  %3061 = vpow2.f32 %v2597_v55  ;;  %v4051_v46 = vpop.f32.mrb[43].mxu0  ;;  %v2541_v44 = vmul.f32 -1.442695, %v4024_v10 }
 0x134   :  { %4741 = vst [vmem:[#allocation34_spill] sm:$0xff] %v4051_v46  ;;  %v4053_v3 = vpop.f32.mrb[43].mxu1  ;;  %v3044_v11 = vpop.eup %3043  ;;  %v2133_v57 = vadd.f32 %v3941_v60, %v1831_v9  ;;  %v1774_v54 = vmul.f32 %v3042_v36, %v3840_v0  ;;  %3063 = vpow2.f32 %v2542_v41  ;;  %v4063_v63 = vadd.f32 %v3832_v39, %v3661_v58  ;;  %v4743_v36 = vld [vmem:[#allocation9_spill] sm:$0xff] }
 0x135   :  { %4742 = vst [vmem:[#allocation35_spill] sm:$0xff] %v4053_v3  ;;  %v3046_v15 = vpop.eup %3045  ;;  %3065 = vrcp.f32 %v1440_v25  ;;  %v2601_v62 = vmul.f32 -1.442695, %v4040_v40  ;;  %v2546_v41 = vmul.f32 -1.442695, %v4044_v49  ;;  %v2021_v39 = vadd.f32 %v2020_v43, %v2019_v4  ;;  %v4078_v26 = vpop.f32.mrb[44].mxu1 }
 0x136   :  { %v3048_v55 = vpop.eup %3047  ;;  %v2036_v51 = vadd.f32 %v1774_v54, %v1773_v48  ;;  %v1772_v3 = vmul.f32 %v3046_v15, %v3853_v8  ;;  %3067 = vpow2.f32 %v2602_v19  ;;  %v1833_v9 = vmul.f32 %v3034_v47, %v4743_v36  ;;  %v4076_v19 = vpop.f32.mrb[44].mxu0  ;;  %4745 = vst [vmem:[#allocation36_spill] sm:$0xff] %v4078_v26  ;;  %v4748_v43 = vld [vmem:[#allocation11_spill] sm:$0xff] }
 0x137   :  { %v3050_v0 = vpop.eup %3049  ;;  %v1832_v60 = vmul.f32 %v3048_v55, %v3859_v27  ;;  %3069 = vpow2.f32 %v2540_v24  ;;  %4744 = vst [vmem:[#allocation9_spill] sm:$0xff] %v4076_v19  ;;  %v1502_v24 = vadd.f32 1.0, %v3044_v11  ;;  %v4080_v48 = vpop.f32.mrb[45].mxu0 }
 0x138   :  { %v3052_v25 = vpop.eup %3051  ;;  %v1913_v8 = vsel %vm1885_vm1, %v1772_v3, 0.0  ;;  %3071 = vpow2.f32 %v2600_v2  ;;  %4746 = vst [vmem:[#allocation37_spill] sm:$0xff] %v4080_v48  ;;  %v4082_v55 = vpop.f32.mrb[45].mxu1  ;;  %v1834_v47 = vmul.f32 %v3050_v0, %v4748_v43  ;;  %v2606_v2 = vmul.f32 -1.442695, %v4063_v63 }
 0x139   :  { %v3054_v54 = vpop.eup %3053  ;;  %v2029_v15 = vadd.f32 %v2028_v20, %v1913_v8  ;;  %v2134_v27 = vadd.f32 %v2133_v57, %v1832_v60  ;;  %3073 = vpow2.f32 %v2543_v29  ;;  %4747 = vst [vmem:[#allocation38_spill] sm:$0xff] %v4082_v55  ;;  %v4087_v3 = vpop.f32.mrb[46].mxu0 }
 0x13a   :  { %v3056_v4 = vpop.eup %3055  ;;  %v1775_v36 = vmul.f32 %v3054_v54, %v3878_v12  ;;  %3075 = vpow2.f32 %v2603_v50  ;;  %4749 = vst [vmem:[#allocation11_spill] sm:$0xff] %v4087_v3  ;;  %v4089_v26 = vpop.f32.mrb[46].mxu1  ;;  %v2022_v12 = vrot.slane %v2021_v39, 1 }
 0x13b   :  { %4750 = vst [vmem:[#allocation39_spill] sm:$0xff] %v4089_v26  ;;  %v4091_v20 = vpop.eup %3057  ;;  %v2030_v11 = vrot.slane %v2029_v15, 4  ;;  %v2135_v29 = vadd.f32 %v2134_v27, %v1833_v9  ;;  %v1835_v57 = vmul.f32 %v3056_v4, %v3891_v61  ;;  %3077 = vpow2.f32 %v2541_v44  ;;  %v4094_v60 = vpop.f32.mrb[47].mxu0 }
 0x13c   :  { %4751 = vst [vmem:[#allocation40_spill] sm:$0xff] %v4094_v60  ;;  %v4096_v8 = vpop.f32.mrb[47].mxu1  ;;  %v3060_v0 = vpop.eup %3059  ;;  %v2037_v50 = vadd.f32 %v2036_v51, %v1775_v36  ;;  %3079 = vpow2.f32 %v2601_v62  ;;  %v2544_v61 = vmul.f32 -1.442695, %v4068_v45 }
 0x13d   :  { %4752 = vst [vmem:[#allocation41_spill] sm:$0xff] %v4096_v8  ;;  %v3062_v54 = vpop.eup %3061  ;;  %v2031_v43 = vadd.f32 %v2030_v11, %v2029_v15  ;;  %v1976_v26 = vsel %vm1885_vm1, %v1835_v57, 0.0  ;;  %v2136_v3 = vadd.f32 %v2135_v29, %v1834_v47  ;;  %3081 = vrcp.f32 %v1502_v24  ;;  %v4754_v15 = vld [vmem:[#allocation10_spill] sm:$0xff]  ;;  %v4755_v24 = vld [vmem:[#allocation12_spill] sm:$0xff]  ;;  %v4114_v11 = vpop.f32.mrb[48].mxu1 }
 0x13e   :  { %v3064_v55 = vpop.eup %3063  ;;  %v1500_v9 = vadd.f32 1.0, %v3062_v54  ;;  %3083 = vpow2.f32 %v2546_v41  ;;  %v4106_v36 = vadd.f32 %v3661_v58, %v4754_v15  ;;  %v4110_v47 = vadd.f32 %v4755_v24, %v3661_v58  ;;  %v4112_v41 = vpop.f32.mrb[48].mxu0  ;;  %4757 = vst [vmem:[#allocation12_spill] sm:$0xff] %v4114_v11 }
 0x13f   :  { %v3066_v44 = vpop.eup %3065  ;;  %v2032_v27 = vrot.slane %v2031_v43, 2  ;;  %v4101_v4 = vadd.f32 %v2136_v3, %v1976_v26  ;;  %v1445_v8 = vadd.f32 1.0, %v3064_v55  ;;  %3085 = vpow2.f32 %v2606_v2  ;;  %4756 = vst [vmem:[#allocation10_spill] sm:$0xff] %v4112_v41  ;;  %v4116_v29 = vpop.f32.mrb[49].mxu0 }
 0x140   :  { %v3068_v51 = vpop.eup %3067  ;;  %v1776_v62 = vmul.f32 %v3066_v44, %v3934_v7  ;;  %3087 = vrcp.f32 %v1500_v9  ;;  %v2023_v3 = vadd.f32 %v2022_v12, %v2021_v39  ;;  %4758 = vst [vmem:[#allocation43_spill] sm:$0xff] %v4116_v29  ;;  %v4118_v7 = vpop.f32.mrb[49].mxu1  ;;  %v1777_v54 = vmul.f32 %v3052_v25, %v3866_v17 }
 0x141   :  { %4753 = vst [vmem:[#allocation42_spill] sm:$0xff] %v4101_v4  ;;  %v3070_v26 = vpop.eup %3069  ;;  %v2033_v55 = vadd.f32 %v2032_v27, %v2031_v43  ;;  %3089 = vrcp.f32 %v1445_v8  ;;  %v1505_v2 = vadd.f32 1.0, %v3068_v51  ;;  %4759 = vst [vmem:[#allocation44_spill] sm:$0xff] %v4118_v7  ;;  %v4121_v15 = vpop.f32.mrb[50].mxu0  ;;  %v4762_v8 = vld [vmem:[#allocation13_spill] sm:$0xff]  ;;  %v1778_v25 = vmul.f32 %v3060_v0, %v3909_v23  ;;  %v4765_v23 = vld [vmem:[#allocation14_spill] sm:$0xff] }
 0x142   :  { %v3072_v57 = vpop.eup %3071  ;;  %v2038_v9 = vadd.f32 %v2037_v50, %v1776_v62  ;;  %v1443_v44 = vadd.f32 1.0, %v3070_v26  ;;  %3091 = vpow2.f32 %v2544_v61  ;;  %4760 = vst [vmem:[#allocation45_spill] sm:$0xff] %v4121_v15  ;;  %v4123_v24 = vpop.f32.mrb[50].mxu1  ;;  %v4127_v12 = vadd.f32 %v4762_v8, %v3661_v58 }
 0x143   :  { %4761 = vst [vmem:[#allocation46_spill] sm:$0xff] %v4123_v24  ;;  %v3074_v4 = vpop.eup %3073  ;;  %v2034_v11 = vrot.slane %v2033_v55, 1  ;;  %3093 = vrcp.f32 %v1505_v2  ;;  %v1503_v39 = vadd.f32 1.0, %v3072_v57  ;;  %v4129_v43 = vpop.f32.mrb[51].mxu0  ;;  %v2204_v62 = vpack.c.bf16 %v2023_v3, %v2023_v3  ;;  %v4145_v3 = vld [vmem:[%s4700_s2] ss:$0 sm:$0xff] }
 0x144   :  { %4763 = vst [vmem:[#allocation13_spill] sm:$0xff] %v4129_v43  ;;  %v4131_v27 = vpop.f32.mrb[51].mxu1  ;;  %v3076_v17 = vpop.eup %3075  ;;  %v2039_v50 = vadd.f32 %v2038_v9, %v1777_v54  ;;  %3095 = vrcp.f32 %v1443_v44  ;;  %v1446_v61 = vadd.f32 1.0, %v3074_v4  ;;  %v2604_v43 = vmul.f32 -1.442695, %v4106_v36 }
 0x145   :  { %4764 = vst [vmem:[#allocation47_spill] sm:$0xff] %v4131_v27  ;;  %v3078_v51 = vpop.eup %3077  ;;  %v2035_v26 = vadd.f32 %v2034_v11, %v2033_v55  ;;  %3097 = vrcp.f32 %v1503_v39  ;;  %v1506_v2 = vadd.f32 1.0, %v3076_v17  ;;  %v4139_v0 = vadd.f32 %v3661_v58, %v4765_v23  ;;  %v4766_v55 = vld [vmem:[#allocation15_spill] sm:$0xff]  ;;  %v4151_v9 = vpop.f32.mrb[52].mxu0  ;;  %v4768_v17 = vld [vmem:[#allocation16_spill] sm:$0xff] }
 0x146   :  { %v3080_v57 = vpop.eup %3079  ;;  %v4134_v24 = vadd.f32 %v2039_v50, %v1778_v25  ;;  %3099 = vrcp.f32 %v1446_v61  ;;  %v1444_v8 = vadd.f32 1.0, %v3078_v51  ;;  %v2547_v11 = vmul.f32 -1.442695, %v4110_v47  ;;  %4767 = vst [vmem:[#allocation14_spill] sm:$0xff] %v4151_v9  ;;  %v4155_v50 = vpop.f32.mrb[53].mxu0  ;;  %v4774_v23 = vld [vmem:[#allocation19_spill] sm:$0xff] }
 0x147   :  { %v3082_v15 = vpop.eup %3081  ;;  %v2205_v27 = vpack.c.bf16 %v2035_v26, %v2035_v26  ;;  %3101 = vrcp.f32 %v1506_v2  ;;  %v1504_v7 = vadd.f32 1.0, %v3080_v57  ;;  %v4149_v54 = vadd.f32 %v4145_v3, %v4766_v55  ;;  %4769 = vst [vmem:[#allocation15_spill] sm:$0xff] %v4155_v50  ;;  %v4770_v26 = vld [vmem:[#allocation17_spill] sm:$0xff]  ;;  %v4771_v57 = vld [vmem:[#allocation18_spill] sm:$0xff]  ;;  %v4776_v50 = vld [vmem:[#allocation20_spill] sm:$0xff] }
 0x148   :  { %v3084_v4 = vpop.eup %3083  ;;  %3103 = vrcp.f32 %v1444_v8  ;;  %v2259_v39 = vunpack.c.l.b16 %v2204_v62  ;;  %v1837_v25 = vmul.f32 %v4091_v20, %v4768_v17  ;;  %v2607_v51 = vmul.f32 -1.442695, %v4127_v12  ;;  %v4166_v62 = vpop.f32.mrb[54].mxu0  ;;  %v4777_v9 = vld [vmem:[#allocation21_spill] sm:$0xff] }
 0x149   :  { %v3086_v44 = vpop.eup %3085  ;;  %v2260_v58 = vunpack.c.l.b16 %v2205_v27  ;;  %3105 = vrcp.f32 %v1504_v7  ;;  %v4160_v2 = vadd.f32 %v4145_v3, %v4770_v26  ;;  %v4164_v8 = vadd.f32 %v4145_v3, %v4771_v57  ;;  %4773 = vst [vmem:[#allocation17_spill] sm:$0xff] %v4166_v62  ;;  %v4177_v17 = vpop.f32.mrb[55].mxu0 }
 0x14a   :  { %v3088_v61 = vpop.eup %3087  ;;  %3107 = vpow2.f32 %v2604_v43  ;;  %v2545_v43 = vmul.f32 -1.442695, %v4139_v0  ;;  %v4175_v55 = vadd.f32 %v4145_v3, %v4774_v23  ;;  %4775 = vst [vmem:[#allocation18_spill] sm:$0xff] %v4177_v17  ;;  %v2605_v57 = vmul.f32 -1.442695, %v4149_v54 }
 0x14b   :  { %4772 = vst [vmem:[#allocation16_spill] sm:$0xff] %v4164_v8  ;;  %v3090_v27 = vpop.eup %3089  ;;  %v4169_v20 = vsel %vm2275_vm2, %v2260_v58, %v2259_v39  ;;  %v1836_v7 = vmul.f32 %v3088_v61, %v3982_v1  ;;  %v4182_v62 = vadd.f32 %v4145_v3, %v4776_v50  ;;  %v4186_v39 = vadd.f32 %v4145_v3, %v4777_v9 }
 0x14c   :  { %v3092_v26 = vpop.eup %3091  ;;  %v4190_v1 = vadd.f32 %v4145_v3, %v3919_v16  ;;  %v1838_v61 = vmul.f32 %v3082_v15, %v3953_v38  ;;  %3109 = vpow2.f32 %v2547_v11  ;;  %v2550_v41 = vmul.f32 -1.442695, %v4160_v2  ;;  %v4779_v15 = vld [vmem:[#allocation22_spill] sm:$0xff] }
 0x14d   :  { %4778 = vst [vmem:[#allocation19_spill] sm:$0xff] %v4186_v39  ;;  %v3094_v58 = vpop.eup %3093  ;;  %v2144_v23 = vadd.f32 %v1837_v25, %v1836_v7  ;;  %v1447_v17 = vadd.f32 1.0, %v3092_v26  ;;  %3111 = vpow2.f32 %v2607_v51  ;;  %v2610_v50 = vmul.f32 -1.442695, %v4164_v8  ;;  %v4203_v25 = vpop.f32.mrb[56].mxu0 }
 0x14e   :  { %v3096_v29 = vpop.eup %3095  ;;  %v2548_v16 = vmul.f32 -1.442695, %v4175_v55  ;;  %v2608_v38 = vmul.f32 -1.442695, %v4182_v62  ;;  %v4201_v11 = vadd.f32 %v4145_v3, %v4779_v15  ;;  %4780 = vst [vmem:[#allocation20_spill] sm:$0xff] %v4203_v25  ;;  %v1449_v26 = vadd.f32 1.0, %v3084_v4 }
 0x14f   :  { %v3098_v60 = vpop.eup %3097  ;;  %v1779_v9 = vmul.f32 %v3096_v29, %v4003_v52  ;;  %v2145_v48 = vadd.f32 %v2144_v23, %v1838_v61  ;;  %3113 = vrcp.f32 %v1447_v17  ;;  %v2551_v29 = vmul.f32 -1.442695, %v4186_v39  ;;  %v4209_v17 = vpop.f32.mrb[57].mxu0 }
 0x150   :  { %v3100_v19 = vpop.eup %3099  ;;  %v1839_v46 = vmul.f32 %v3098_v60, %v4007_v31  ;;  %3115 = vpow2.f32 %v2545_v43  ;;  %v2549_v7 = vmul.f32 -1.442695, %v4190_v1  ;;  %4781 = vst [vmem:[#allocation21_spill] sm:$0xff] %v4209_v17  ;;  %v4212_v61 = vpop.f32.mrb[58].mxu0  ;;  %v1781_v15 = vmul.f32 %v3090_v27, %v3991_v18  ;;  %v2911_v18 = vld [vmem:[%s4701_s3] sm:$0xff]  }
 0x151   :  { %v3102_v51 = vpop.eup %3101  ;;  %v1920_v52 = vsel %vm1885_vm1, %v1779_v9, 0.0  ;;  %3117 = vpow2.f32 %v2605_v57  ;;  %v1509_v57 = vadd.f32 1.0, %v3086_v44  ;;  %v4216_v25 = vpop.f32.mrb[59].mxu0  ;;  %v1841_v17 = vmul.f32 %v3094_v58, %v3995_v30 }
 0x152   :  { %v3104_v31 = vpop.eup %3103  ;;  %v2041_v60 = vadd.f32 %v4134_v24, %v1920_v52  ;;  %v2146_v43 = vadd.f32 %v2145_v48, %v1839_v46  ;;  %3119 = vpow2.f32 %v2550_v41  ;;  %v1782_v46 = vmul.f32 %v3100_v19, %v4011_v13 }
 0x153   :  { %v3106_v23 = vpop.eup %3105  ;;  %v1780_v9 = vmul.f32 %v3104_v31, %v4024_v10  ;;  %3121 = vpow2.f32 %v2610_v50  ;;  %v1842_v48 = vmul.f32 %v3102_v51, %v4020_v5  ;;  %v3393_v19 = vmov 0.0  }
 0x154   :  { %v3108_v8 = vpop.eup %3107  ;;  %v2042_v39 = vrot.slane %v2041_v60, 4  ;;  %v1840_v24 = vmul.f32 %v3106_v23, %v4040_v40  ;;  %3123 = vpow2.f32 %v2548_v16  ;;  %v2611_v40 = vmul.f32 -1.442695, %v4201_v11  ;;  %2824 = vmatprep.subr.bf16.mxu1 %v3393_v19  ;;  %2840 = vmatprep.mubr.msk.bf16.mxu1 %vm3394_vm6, %v3393_v19 }
 0x155   :  { %v2048_v41 = vadd.f32 %v1781_v15, %v1780_v9  ;;  %3125 = vpow2.f32 %v2608_v38  ;;  %v1507_v44 = vadd.f32 1.0, %v3108_v8  ;;  %2825 = vmatpush3.bf16.msra.mxu1 %v2911_v18  ;;  %v2912_v8 = vld [vmem:[%s4701_s3 + $0x8] sm:$0xff]   ;;  %v4246_v18 = vadd.f32 %v4145_v3, %v3937_v22 }
 0x156   :  { %v2043_v10 = vadd.f32 %v2042_v39, %v2041_v60  ;;  %v2147_v4 = vadd.f32 %v2146_v43, %v1840_v24  ;;  %3127 = vpow2.f32 %v2551_v29  ;;  %v3110_v27 = vpop.eup %3109  ;;  %v1983_v39 = vsel %vm1885_vm1, %v1842_v48, 0.0  ;;  %2826 = vmatprep.subr.bf16.mxu1 %v3393_v19 }
 0x157   :  { %3129 = vrcp.f32 %v1449_v26  ;;  %v2049_v30 = vadd.f32 %v2048_v41, %v1782_v46  ;;  %v3112_v58 = vpop.eup %3111  ;;  %v1450_v5 = vadd.f32 1.0, %v3110_v27  ;;  %v4250_v27 = vadd.f32 %v4145_v3, %v3939_v37 }
 0x158   :  { %v2044_v50 = vrot.slane %v2043_v10, 2  ;;  %v2148_v13 = vadd.f32 %v2147_v4, %v1841_v17  ;;  %3131 = vrcp.f32 %v1509_v57  ;;  %v1510_v31 = vadd.f32 1.0, %v3112_v58 }
 0x159   :  { %v3114_v16 = vpop.eup %3113  ;;  %3133 = vpow2.f32 %v2549_v7  ;;  %v4238_v7 = vadd.f32 %v4145_v3, %v3921_v34  ;;  %2827 = vmatpush3.bf16.msra.mxu1 %v2912_v8  ;;  %v4254_v58 = vadd.f32 %v4145_v3, %v3944_v14  ;;  %v4266_v37 = vadd.f32 %v4145_v3, %v3957_v59 }
 0x15a   :  { %v3116_v38 = vpop.eup %3115  ;;  %v2045_v51 = vadd.f32 %v2044_v50, %v2043_v10  ;;  %v4232_v52 = vadd.f32 %v2148_v13, %v1983_v39  ;;  %v1783_v29 = vmul.f32 %v3114_v16, %v4068_v45  ;;  %3135 = vrcp.f32 %v1507_v44  ;;  %2828 = vmatprep.subr.bf16.mxu1 %v3393_v19 }
 0x15b   :  { %v3118_v17 = vpop.eup %3117  ;;  %v1448_v60 = vadd.f32 1.0, %v3116_v38  ;;  %3137 = vpow2.f32 %v2611_v40  ;;  %v2609_v41 = vmul.f32 -1.442695, %v4238_v7  ;;  %v4258_v50 = vadd.f32 %v4145_v3, %v3946_v53 }
 0x15c   :  { %v3120_v43 = vpop.eup %3119  ;;  %v2046_v26 = vrot.slane %v2045_v51, 1  ;;  %v4240_v23 = vadd.f32 %v2049_v30, %v1783_v29  ;;  %3139 = vrcp.f32 %v1450_v5  ;;  %v1508_v15 = vadd.f32 1.0, %v3118_v17 }
 0x15d   :  { %v3122_v9 = vpop.eup %3121  ;;  %3141 = vrcp.f32 %v1448_v60  ;;  %v1453_v45 = vadd.f32 1.0, %v3120_v43  ;;  %v4262_v5 = vadd.f32 %v4145_v3, %v3955_v42  ;;  %v2554_v14 = vmul.f32 -1.442695, %v4246_v18  ;;  %v2913_v42 = vld [vmem:[%s4701_s3 + $0x10] sm:$0xff]  }
 0x15e   :  { %v3124_v57 = vpop.eup %3123  ;;  %v2047_v24 = vadd.f32 %v2046_v26, %v2045_v51  ;;  %3143 = vrcp.f32 %v1508_v15  ;;  %v1513_v46 = vadd.f32 1.0, %v3122_v9  ;;  %v4271_v39 = vadd.f32 %v4145_v3, %v3962_v56  ;;  %2829 = vmatpush3.bf16.msra.mxu1 %v2913_v42 }
 0x15f   :  { %v3126_v48 = vpop.eup %3125  ;;  %3145 = vrcp.f32 %v1510_v31  ;;  %v1451_v34 = vadd.f32 1.0, %v3124_v57  ;;  %v4275_v53 = vadd.f32 %v4145_v3, %v3964_v6  ;;  %v2614_v51 = vmul.f32 -1.442695, %v4250_v27  ;;  %2830 = vmatprep.subr.bf16.mxu1 %v3393_v19 }
 0x160   :  { %v3128_v10 = vpop.eup %3127  ;;  %v2206_v4 = vpack.c.bf16 %v2047_v24, %v2047_v24  ;;  %3147 = vrcp.f32 %v1453_v45  ;;  %v1511_v44 = vadd.f32 1.0, %v3126_v48  ;;  %v2552_v56 = vmul.f32 -1.442695, %v4254_v58 }
 0x161   :  { %v3130_v30 = vpop.eup %3129  ;;  %3149 = vrcp.f32 %v1513_v46  ;;  %v1454_v40 = vadd.f32 1.0, %v3128_v10  ;;  %v2612_v17 = vmul.f32 -1.442695, %v4258_v50  ;;  %v2555_v31 = vmul.f32 -1.442695, %v4262_v5 }
 0x162   :  { %v3132_v22 = vpop.eup %3131  ;;  %v2261_v13 = vunpack.c.l.b16 %v2206_v4  ;;  %3151 = vrcp.f32 %v1511_v44  ;;  %v2615_v60 = vmul.f32 -1.442695, %v4266_v37  ;;  %v2553_v26 = vmul.f32 -1.442695, %v4271_v39 }
 0x163   :  { %v3134_v16 = vpop.eup %3133  ;;  %3153 = vrcp.f32 %v1451_v34  ;;  %v2613_v15 = vmul.f32 -1.442695, %v4275_v53  ;;  %v4296_v57 = vadd.f32 %v4145_v3, %v3972_v28  ;;  %v4300_v24 = vadd.f32 %v4145_v3, %v3974_v21 }
 0x164   :  { %v3136_v8 = vpop.eup %3135  ;;  %v4282_v59 = vsel %vm2277_vm3, %v2261_v13, %v4169_v20  ;;  %v1452_v38 = vadd.f32 1.0, %v3134_v16  ;;  %3155 = vpow2.f32 %v2609_v41  ;;  %v4306_v34 = vadd.f32 %v4145_v3, %v3976_v32 }
 0x165   :  { %v3138_v29 = vpop.eup %3137  ;;  %3157 = vrcp.f32 %v1454_v40  ;;  %v1843_v43 = vmul.f32 %v3136_v8, %v4106_v36  ;;  %v1785_v41 = vmul.f32 %v3130_v30, %v4044_v49  ;;  %v4312_v21 = vadd.f32 %v4145_v3, %v3978_v35 }
 0x166   :  { %v3140_v6 = vpop.eup %3139  ;;  %3159 = vrcp.f32 %v1452_v38  ;;  %v1514_v4 = vadd.f32 1.0, %v3138_v29  ;;  %v2618_v49 = vmul.f32 -1.442695, %v4300_v24  ;;  %v2914_v38 = vld [vmem:[%s4701_s3 + $0x18] sm:$0xff]  }
 0x167   :  { %v3142_v20 = vpop.eup %3141  ;;  %3161 = vpow2.f32 %v2554_v14  ;;  %v1786_v36 = vmul.f32 %v3140_v6, %v4110_v47  ;;  %v1845_v47 = vmul.f32 %v3132_v22, %v4063_v63  ;;  %v2556_v22 = vmul.f32 -1.442695, %v4306_v34  ;;  %2831 = vmatpush3.bf16.msra.mxu1 %v2914_v38 }
 0x168   :  { %v3144_v9 = vpop.eup %3143  ;;  %v1784_v45 = vmul.f32 %v3142_v20, %v4139_v0  ;;  %3163 = vpow2.f32 %v2614_v51  ;;  %v2616_v8 = vmul.f32 -1.442695, %v4312_v21  ;;  %2832 = vmatprep.subr.bf16.mxu1 %v3393_v19 }
 0x169   :  { %v3146_v46 = vpop.eup %3145  ;;  %v1844_v48 = vmul.f32 %v3144_v9, %v4149_v54  ;;  %3165 = vpow2.f32 %v2552_v56  ;;  %v1927_v30 = vsel %vm1885_vm1, %v1786_v36, 0.0  ;;  %v2915_v36 = vld [vmem:[%s4701_s3 + $0x20] sm:$0xff]  }
 0x16a   :  { %v3148_v0 = vpop.eup %3147  ;;  %v2051_v28 = vadd.f32 %v4240_v23, %v1784_v45  ;;  %3167 = vpow2.f32 %v2612_v17  ;;  %v1846_v32 = vmul.f32 %v3146_v46, %v4127_v12  ;;  %v4783_v46 = vld [vmem:[#allocation25_spill] sm:$0xff] }
 0x16b   :  { %v4314_v10 = vpop.eup %3149  ;;  %v2156_v54 = vadd.f32 %v1844_v48, %v1843_v43  ;;  %3169 = vpow2.f32 %v2555_v31  ;;  %v1789_v45 = vmul.f32 %v3148_v0, %v4160_v2  ;;  %2833 = vmatpush3.bf16.msra.mxu1 %v2915_v36  ;;  %v2916_v0 = vld [vmem:[%s4701_s3 + $0x28] sm:$0xff]  }
 0x16c   :  { %v3152_v44 = vpop.eup %3151  ;;  %v2052_v40 = vadd.f32 %v2051_v28, %v1785_v41  ;;  %3171 = vpow2.f32 %v2615_v60  ;;  %2834 = vmatprep.subr.bf16.mxu1 %v3393_v19 }
 0x16d   :  { %v3154_v23 = vpop.eup %3153  ;;  %v2157_v35 = vadd.f32 %v2156_v54, %v1845_v47  ;;  %v1847_v13 = vmul.f32 %v3152_v44, %v4182_v62  ;;  %3173 = vpow2.f32 %v2553_v26  ;;  %v2558_v62 = vmul.f32 -1.442695, %v4296_v57  ;;  %v4782_v26 = vld [vmem:[#allocation24_spill] sm:$0xff] }
 0x16e   :  { %v3156_v16 = vpop.eup %3155  ;;  %v2053_v63 = vadd.f32 %v2052_v40, %v1927_v30  ;;  %3175 = vpow2.f32 %v2613_v15  ;;  %v1787_v6 = vmul.f32 %v3154_v23, %v4175_v55  ;;  %v4334_v15 = vadd.f32 %v4145_v3, %v4782_v26  ;;  %v4785_v30 = vld [vmem:[#allocation26_spill] sm:$0xff] }
 0x16f   :  { %v3158_v14 = vpop.eup %3157  ;;  %v2158_v42 = vadd.f32 %v2157_v35, %v1846_v32  ;;  %3177 = vrcp.f32 %v1514_v4  ;;  %v1512_v12 = vadd.f32 1.0, %v3156_v16  ;;  %v4784_v4 = vld [vmem:[#allocation19_spill] sm:$0xff]  ;;  %v4351_v35 = vadd.f32 %v4145_v3, %v4785_v30  ;;  %2835 = vmatpush3.bf16.msra.mxu1 %v2916_v0 }
 0x170   :  { %v3160_v51 = vpop.eup %3159  ;;  %v2054_v29 = vrot.slane %v2053_v63, 4  ;;  %3179 = vpow2.f32 %v2618_v49  ;;  %v1790_v44 = vmul.f32 %v3158_v14, %v4784_v4  ;;  %2836 = vmatprep.subr.bf16.mxu1 %v3393_v19 }
 0x171   :  { %v3162_v56 = vpop.eup %3161  ;;  %v4329_v17 = vadd.f32 %v2158_v42, %v1847_v13  ;;  %v1788_v31 = vmul.f32 %v3160_v51, %v4190_v1  ;;  %3181 = vrcp.f32 %v1512_v12  ;;  %v4340_v1 = vadd.f32 %v4145_v3, %v4783_v46  ;;  %v4789_v46 = vld [vmem:[#allocation29_spill] sm:$0xff] }
 0x172   :  { %v3164_v60 = vpop.eup %3163  ;;  %v2055_v20 = vadd.f32 %v2054_v29, %v2053_v63  ;;  %v1457_v43 = vadd.f32 1.0, %v3162_v56  ;;  %3183 = vpow2.f32 %v2556_v22  ;;  %v4786_v63 = vld [vmem:[#allocation27_spill] sm:$0xff]  ;;  %v2559_v29 = vmul.f32 -1.442695, %v4334_v15 }
 0x173   :  { %v3166_v9 = vpop.eup %3165  ;;  %v2060_v55 = vadd.f32 %v1788_v31, %v1787_v6  ;;  %3185 = vpow2.f32 %v2616_v8  ;;  %v1517_v28 = vadd.f32 1.0, %v3164_v60  ;;  %v4358_v22 = vadd.f32 %v4145_v3, %v4786_v63  ;;  %v2917_v6 = vld [vmem:[%s4701_s3 + $0x30] sm:$0xff]   ;;  %v4791_v63 = vld [vmem:[#allocation31_spill] sm:$0xff] }
 0x174   :  { %v3168_v48 = vpop.eup %3167  ;;  %v2056_v41 = vrot.slane %v2055_v20, 2  ;;  %v1455_v47 = vadd.f32 1.0, %v3166_v9  ;;  %3187 = vpow2.f32 %v2558_v62  ;;  %v4787_v62 = vld [vmem:[#allocation28_spill] sm:$0xff]  ;;  %v4375_v36 = vadd.f32 %v4145_v3, %v4789_v46  ;;  %2837 = vmatpush3.bf16.msra.mxu1 %v2917_v6 }
 0x175   :  { %v3170_v54 = vpop.eup %3169  ;;  %v2061_v32 = vadd.f32 %v2060_v55, %v1789_v45  ;;  %3189 = vrcp.f32 %v1457_v43  ;;  %v1515_v2 = vadd.f32 1.0, %v3168_v48  ;;  %v4363_v56 = vadd.f32 %v4145_v3, %v4787_v62  ;;  %v4788_v9 = vld [vmem:[#allocation16_spill] sm:$0xff]  ;;  %2838 = vmatprep.subr.bf16.mxu1 %v3393_v19 }
 0x176   :  { %v3172_v40 = vpop.eup %3171  ;;  %v2057_v49 = vadd.f32 %v2056_v41, %v2055_v20  ;;  %3191 = vrcp.f32 %v1455_v47  ;;  %v1458_v23 = vadd.f32 1.0, %v3170_v54  ;;  %v2619_v20 = vmul.f32 -1.442695, %v4340_v1 }
 0x177   :  { %v3174_v13 = vpop.eup %3173  ;;  %v4354_v16 = vadd.f32 %v2061_v32, %v1790_v44  ;;  %3193 = vrcp.f32 %v1515_v2  ;;  %v1518_v12 = vadd.f32 1.0, %v3172_v40  ;;  %v2557_v43 = vmul.f32 -1.442695, %v4351_v35  ;;  %v4790_v32 = vld [vmem:[#allocation30_spill] sm:$0xff] }
 0x178   :  { %v3176_v14 = vpop.eup %3175  ;;  %v2058_v42 = vrot.slane %v2057_v49, 1  ;;  %3195 = vrcp.f32 %v1517_v28  ;;  %v1456_v8 = vadd.f32 1.0, %v3174_v13  ;;  %v1849_v45 = vmul.f32 %v4314_v10, %v4788_v9  ;;  %v2918_v2 = vld [vmem:[%s4701_s3 + $0x38] sm:$0xff]  }
 0x179   :  { %v3178_v38 = vpop.eup %3177  ;;  %3197 = vrcp.f32 %v1458_v23  ;;  %v1516_v51 = vadd.f32 1.0, %v3176_v14  ;;  %v2617_v47 = vmul.f32 -1.442695, %v4358_v22  ;;  %v2562_v44 = vmul.f32 -1.442695, %v4363_v56  ;;  %2839 = vmatpush3.bf16.msra.mxu1 %v2918_v2  ;;  %v4797_v2 = vld [vmem:[#allocation6_spill] sm:$0xff] }
 0x17a   :  { %v3180_v31 = vpop.eup %3179  ;;  %v2059_v60 = vadd.f32 %v2058_v42, %v2057_v49  ;;  %3199 = vrcp.f32 %v1456_v8  ;;  %v4382_v10 = vadd.f32 %v4145_v3, %v4790_v32  ;;  %v1990_v30 = vsel %vm1885_vm1, %v1849_v45, 0.0  ;;  %v4792_v8 = vld [vmem:[#allocation32_spill] sm:$0xff]  ;;  %v4794_v45 = vld [vmem:[#allocation34_spill] sm:$0xff] }
 0x17b   :  { %v3182_v26 = vpop.eup %3181  ;;  %3201 = vrcp.f32 %v1516_v51  ;;  %v1521_v55 = vadd.f32 1.0, %v3180_v31  ;;  %v2622_v13 = vmul.f32 -1.442695, %v4375_v36  ;;  %v4394_v14 = vadd.f32 %v4145_v3, %v4791_v63  ;;  %v4793_v31 = vld [vmem:[#allocation33_spill] sm:$0xff] }
 0x17c   :  { %v3184_v48 = vpop.eup %3183  ;;  %v2207_v41 = vpack.c.bf16 %v2059_v60, %v2059_v60  ;;  %v1848_v28 = vmul.f32 %v3182_v26, %v4238_v7  ;;  %3203 = vrcp.f32 %v1518_v12  ;;  %v4404_v51 = vadd.f32 %v4145_v3, %v4792_v8 }
 0x17d   :  { %v3186_v54 = vpop.eup %3185  ;;  %3205 = vrcp.f32 %v1521_v55  ;;  %v1459_v4 = vadd.f32 1.0, %v3184_v48  ;;  %v2560_v6 = vmul.f32 -1.442695, %v4382_v10  ;;  %v4410_v60 = vadd.f32 %v4145_v3, %v4793_v31  ;;  %v4795_v48 = vld [vmem:[#allocation35_spill] sm:$0xff] }
 0x17e   :  { %v3188_v0 = vpop.eup %3187  ;;  %v2262_v40 = vunpack.c.l.b16 %v2207_v41  ;;  %v2160_v7 = vadd.f32 %v4329_v17, %v1848_v28  ;;  %v1519_v49 = vadd.f32 1.0, %v3186_v54  ;;  %3207 = vpow2.f32 %v2559_v29  ;;  %v4796_v54 = vld [vmem:[#allocation5_spill] sm:$0xff] }
 0x17f   :  { %v3190_v23 = vpop.eup %3189  ;;  %3209 = vrcp.f32 %v1459_v4  ;;  %v1850_v26 = vmul.f32 %v3178_v38, %v4201_v11  ;;  %v4416_v55 = vadd.f32 %v4145_v3, %v4794_v45  ;;  %v4422_v41 = vadd.f32 %v4145_v3, %v4795_v48 }
 0x180   :  { %v3192_v42 = vpop.eup %3191  ;;  %v4398_v12 = vsel %vm2279_vm4, %v2262_v40, %v4282_v59  ;;  %v4400_v17 = vadd.f32 %v2160_v7, %v1990_v30  ;;  %3211 = vrcp.f32 %v1519_v49  ;;  %v1793_v11 = vmul.f32 %v3190_v23, %v4246_v18 }
 0x181   :  { %v3194_v29 = vpop.eup %3193  ;;  %v1791_v62 = vmul.f32 %v3192_v42, %v4254_v58  ;;  %3213 = vpow2.f32 %v2619_v20  ;;  %v2620_v20 = vmul.f32 -1.442695, %v4394_v14  ;;  %v4428_v4 = vadd.f32 %v4145_v3, %v4796_v54 }
 0x182   :  { %v3196_v59 = vpop.eup %3195  ;;  %v1851_v9 = vmul.f32 %v3194_v29, %v4258_v50  ;;  %3215 = vpow2.f32 %v2557_v43  ;;  %v2563_v50 = vmul.f32 -1.442695, %v4404_v51  ;;  %v4434_v40 = vadd.f32 %v4145_v3, %v4797_v2 }
 0x183   :  { %v3198_v46 = vpop.eup %3197  ;;  %v2063_v58 = vadd.f32 %v4354_v16, %v1791_v62  ;;  %3217 = vpow2.f32 %v2617_v47  ;;  %v2623_v47 = vmul.f32 -1.442695, %v4410_v60  ;;  %v1461_v23 = vadd.f32 1.0, %v3188_v0 }
 0x184   :  { %v3200_v28 = vpop.eup %3199  ;;  %v2168_v38 = vadd.f32 %v1851_v9, %v1850_v26  ;;  %3219 = vpow2.f32 %v2562_v44  ;;  %v2561_v44 = vmul.f32 -1.442695, %v4416_v55  ;;  %v1853_v63 = vmul.f32 %v3196_v59, %v4250_v27  ;;  %v4798_v59 = vld [vmem:[#allocation9_spill] sm:$0xff] }
 0x185   :  { %v3202_v43 = vpop.eup %3201  ;;  %v1792_v16 = vmul.f32 %v3200_v28, %v4271_v39  ;;  %3221 = vpow2.f32 %v2622_v13  ;;  %v2621_v39 = vmul.f32 -1.442695, %v4422_v41  ;;  %v1934_v13 = vsel %vm1885_vm1, %v1793_v11, 0.0 }
 0x186   :  { %v3204_v32 = vpop.eup %3203  ;;  %v1852_v18 = vmul.f32 %v3202_v43, %v4275_v53  ;;  %3223 = vpow2.f32 %v2560_v6  ;;  %v1794_v53 = vmul.f32 %v3198_v46, %v4262_v5  ;;  %v4455_v28 = vmul.f32 -1.442695, %v4428_v4 }
 0x187   :  { %v4438_v7 = vpop.eup %3205  ;;  %v2064_v49 = vadd.f32 %v2063_v58, %v1792_v16  ;;  %3225 = vpow2.f32 %v2620_v20  ;;  %v1854_v0 = vmul.f32 %v3204_v32, %v4266_v37  ;;  %v4450_v58 = vadd.f32 %v4145_v3, %v4798_v59  ;;  %v4799_v32 = vld [vmem:[#allocation36_spill] sm:$0xff]  ;;  %v4803_v59 = vld [vmem:[#allocation39_spill] sm:$0xff] }
 0x188   :  { %v3208_v30 = vpop.eup %3207  ;;  %v2169_v42 = vadd.f32 %v2168_v38, %v1852_v18  ;;  %3227 = vpow2.f32 %v2563_v50  ;;  %v4464_v2 = vadd.f32 %v4145_v3, %v4799_v32 }
 0x189   :  { %v3210_v8 = vpop.eup %3209  ;;  %v2065_v29 = vadd.f32 %v2064_v49, %v1934_v13  ;;  %v1462_v62 = vadd.f32 1.0, %v3208_v30  ;;  %3229 = vpow2.f32 %v2623_v47  ;;  %v2566_v49 = vmul.f32 -1.442695, %v4450_v58  ;;  %v4800_v13 = vld [vmem:[#allocation37_spill] sm:$0xff] }
 0x18a   :  { %v3212_v6 = vpop.eup %3211  ;;  %v2170_v31 = vadd.f32 %v2169_v42, %v1853_v63  ;;  %v1795_v26 = vmul.f32 %v3210_v8, %v4306_v34  ;;  %3231 = vpow2.f32 %v2561_v44  ;;  %v4469_v63 = vadd.f32 %v4145_v3, %v4800_v13 }
 0x18b   :  { %v3214_v9 = vpop.eup %3213  ;;  %v2066_v45 = vrot.slane %v2065_v29, 4  ;;  %3233 = vrcp.f32 %v1461_v23  ;;  %v1855_v27 = vmul.f32 %v3212_v6, %v4312_v21  ;;  %v4458_v21 = vmul.f32 -1.442695, %v4434_v40 }
 0x18c   :  { %v3216_v5 = vpop.eup %3215  ;;  %v4452_v46 = vadd.f32 %v1795_v26, %v1794_v53  ;;  %v2171_v20 = vadd.f32 %v2170_v31, %v1854_v0  ;;  %3235 = vrcp.f32 %v1462_v62  ;;  %v1522_v48 = vadd.f32 1.0, %v3214_v9  ;;  %v4801_v53 = vld [vmem:[#allocation38_spill] sm:$0xff]  ;;  %v4802_v62 = vld [vmem:[#allocation11_spill] sm:$0xff] }
 0x18d   :  { %v3218_v37 = vpop.eup %3217  ;;  %v2067_v34 = vadd.f32 %v2066_v45, %v2065_v29  ;;  %v1460_v11 = vadd.f32 1.0, %v3216_v5  ;;  %3237 = vpow2.f32 %v2621_v39  ;;  %v4473_v29 = vadd.f32 %v4145_v3, %v4801_v53 }
 0x18e   :  { %v3220_v38 = vpop.eup %3219  ;;  %v4460_v50 = vadd.f32 %v2171_v20, %v1855_v27  ;;  %3239 = vrcp.f32 %v1522_v48  ;;  %v1520_v43 = vadd.f32 1.0, %v3218_v37  ;;  %v4477_v6 = vadd.f32 %v4145_v3, %v4802_v62  ;;  %v4804_v20 = vld [vmem:[#allocation40_spill] sm:$0xff] }
 0x18f   :  { %v3222_v54 = vpop.eup %3221  ;;  %v2068_v16 = vrot.slane %v2067_v34, 2  ;;  %3241 = vrcp.f32 %v1460_v11  ;;  %v1465_v47 = vadd.f32 1.0, %v3220_v38  ;;  %v2626_v9 = vmul.f32 -1.442695, %v4464_v2 }
 0x190   :  { %v3224_v18 = vpop.eup %3223  ;;  %3243 = vrcp.f32 %v1520_v43  ;;  %v1525_v44 = vadd.f32 1.0, %v3222_v54  ;;  %v4482_v5 = vadd.f32 %v4145_v3, %v4803_v59  ;;  %v4486_v48 = vadd.f32 %v4145_v3, %v4804_v20 }
 0x191   :  { %v3226_v23 = vpop.eup %3225  ;;  %v2069_v39 = vadd.f32 %v2068_v16, %v2067_v34  ;;  %3245 = vrcp.f32 %v1465_v47  ;;  %v1463_v30 = vadd.f32 1.0, %v3224_v18  ;;  %v2564_v38 = vmul.f32 -1.442695, %v4469_v63  ;;  %v4805_v47 = vld [vmem:[#allocation41_spill] sm:$0xff] }
 0x192   :  { %v3228_v42 = vpop.eup %3227  ;;  %3247 = vrcp.f32 %v1525_v44  ;;  %v1523_v8 = vadd.f32 1.0, %v3226_v23  ;;  %v2624_v54 = vmul.f32 -1.442695, %v4473_v29  ;;  %v2567_v16 = vmul.f32 -1.442695, %v4477_v6 }
 0x193   :  { %v3230_v0 = vpop.eup %3229  ;;  %v2070_v31 = vrot.slane %v2069_v39, 1  ;;  %3249 = vrcp.f32 %v1463_v30  ;;  %v1466_v26 = vadd.f32 1.0, %v3228_v42  ;;  %v4493_v32 = vadd.f32 %v4145_v3, %v4805_v47 }
 0x194   :  { %v3232_v45 = vpop.eup %3231  ;;  %3251 = vrcp.f32 %v1523_v8  ;;  %v1526_v27 = vadd.f32 1.0, %v3230_v0  ;;  %v1857_v23 = vmul.f32 %v4438_v7, %v4300_v24  ;;  %v2627_v13 = vmul.f32 -1.442695, %v4482_v5  ;;  %v4806_v0 = vld [vmem:[#allocation10_spill] sm:$0xff] }
 0x195   :  { %v3234_v37 = vpop.eup %3233  ;;  %v2071_v34 = vadd.f32 %v2070_v31, %v2069_v39  ;;  %3253 = vrcp.f32 %v1466_v26  ;;  %v1464_v11 = vadd.f32 1.0, %v3232_v45  ;;  %v2565_v42 = vmul.f32 -1.442695, %v4486_v48  ;;  %v4807_v26 = vld [vmem:[#allocation43_spill] sm:$0xff] }
 0x196   :  { %v3236_v43 = vpop.eup %3235  ;;  %3255 = vrcp.f32 %v1526_v27  ;;  %v4503_v31 = vadd.f32 %v4145_v3, %v4806_v0  ;;  %v4509_v45 = vadd.f32 %v4145_v3, %v4807_v26  ;;  %v1797_v20 = vmul.f32 %v3234_v37, %v4296_v57 }
 0x197   :  { %v3238_v18 = vpop.eup %3237  ;;  %v2208_v44 = vpack.c.bf16 %v2071_v34, %v2071_v34  ;;  %3257 = vrcp.f32 %v1464_v11  ;;  %v4808_v34 = vld [vmem:[#allocation12_spill] sm:$0xff] }
 0x198   :  { %v3240_v39 = vpop.eup %3239  ;;  %v1524_v30 = vadd.f32 1.0, %v3238_v18  ;;  %3259 = vpow2.f32 %v2566_v49  ;;  %v2625_v49 = vmul.f32 -1.442695, %v4493_v32  ;;  %v4520_v11 = vadd.f32 %v4145_v3, %v4808_v34 }
 0x199   :  { %v3242_v8 = vpop.eup %3241  ;;  %v2263_v53 = vunpack.c.l.b16 %v2208_v44  ;;  %v1858_v62 = vmul.f32 %v3240_v39, %v4340_v1  ;;  %3261 = vpow2.f32 %v2626_v9  ;;  %v1798_v18 = vmul.f32 %v3236_v43, %v4334_v15  ;;  %v4809_v43 = vld [vmem:[#allocation44_spill] sm:$0xff] }
 0x19a   :  { %v3244_v24 = vpop.eup %3243  ;;  %v1796_v7 = vmul.f32 %v3242_v8, %v4351_v35  ;;  %3263 = vrcp.f32 %v1524_v30  ;;  %v2568_v15 = vmul.f32 -1.442695, %v4509_v45 }
 0x19b   :  { %v3246_v19 = vpop.eup %3245  ;;  %v4513_v27 = vsel %vm2281_vm5, %v2263_v53, %v4398_v12  ;;  %v2180_v1 = vadd.f32 %v1858_v62, %v1857_v23  ;;  %v1856_v9 = vmul.f32 %v3244_v24, %v4358_v22  ;;  %3265 = vpow2.f32 %v2564_v38 }
 0x19c   :  { %v3248_v59 = vpop.eup %3247  ;;  %v2073_v35 = vadd.f32 %v4452_v46, %v1796_v7  ;;  %3267 = vpow2.f32 %v2624_v54  ;;  %v2570_v22 = vmul.f32 -1.442695, %v4503_v31  ;;  %v4534_v23 = vadd.f32 %v4145_v3, %v4809_v43 }
 0x19d   :  { %v3250_v47 = vpop.eup %3249  ;;  %v1997_v12 = vsel %vm1885_vm1, %v1856_v9, 0.0  ;;  %3269 = vpow2.f32 %v2567_v16  ;;  %v1801_v39 = vmul.f32 %v3246_v19, %v4363_v56 }
 0x19e   :  { %v3252_v38 = vpop.eup %3251  ;;  %v2074_v44 = vadd.f32 %v2073_v35, %v1797_v20  ;;  %v4527_v57 = vadd.f32 %v4460_v50, %v1997_v12  ;;  %v1799_v46 = vmul.f32 %v3250_v47, %v4382_v10  ;;  %3271 = vpow2.f32 %v2627_v13 }
 0x19f   :  { %v3254_v37 = vpop.eup %3253  ;;  %v1859_v54 = vmul.f32 %v3252_v38, %v4394_v14  ;;  %3273 = vpow2.f32 %v2565_v42  ;;  %v2630_v13 = vmul.f32 -1.442695, %v4520_v11  ;;  %v2628_v56 = vmul.f32 -1.442695, %v4534_v23 }
 0x1a0   :  { %v3256_v16 = vpop.eup %3255  ;;  %v2075_v30 = vadd.f32 %v2074_v44, %v1798_v18  ;;  %v1802_v50 = vmul.f32 %v3254_v37, %v4404_v51  ;;  %3275 = vpow2.f32 %v2625_v49  ;;  %v4810_v49 = vld [vmem:[#allocation45_spill] sm:$0xff]  ;;  %v4811_v44 = vld [vmem:[#allocation46_spill] sm:$0xff] }
 0x1a1   :  { %v3258_v8 = vpop.eup %3257  ;;  %v2181_v10 = vadd.f32 %v2180_v1, %v1859_v54  ;;  %3277 = vpow2.f32 %v2570_v22  ;;  %v4549_v26 = vadd.f32 %v4145_v3, %v4810_v49  ;;  %v1862_v22 = vmul.f32 %v3256_v16, %v4410_v60 }
 0x1a2   :  { %v3260_v14 = vpop.eup %3259  ;;  %3279 = vpow2.f32 %v4455_v28  ;;  %v2076_v42 = vadd.f32 %v2075_v30, %v1799_v46  ;;  %v4540_v53 = vadd.f32 %v1802_v50, %v1801_v39  ;;  %v1800_v62 = vmul.f32 %v3258_v8, %v4416_v55  ;;  %v4812_v39 = vld [vmem:[#allocation13_spill] sm:$0xff] }
 0x1a3   :  { %v3262_v0 = vpop.eup %3261  ;;  %3281 = vpow2.f32 %v4458_v21  ;;  %v1861_v21 = vmul.f32 %v3248_v59, %v4375_v36  ;;  %v1469_v9 = vadd.f32 1.0, %v3260_v14  ;;  %v2571_v38 = vmul.f32 -1.442695, %v4549_v26  ;;  %v3368_v14 = vld [vmem:[%s4700_s2] ss:$0 sm:$0xff] }
 0x1a4   :  { %v3264_v51 = vpop.eup %3263  ;;  %v1941_v24 = vsel %vm1885_vm1, %v1800_v62, 0.0  ;;  %v1529_v7 = vadd.f32 1.0, %v3262_v0  ;;  %3283 = vpow2.f32 %v2568_v15  ;;  %v4561_v30 = vadd.f32 %v4145_v3, %v4812_v39 }
 0x1a5   :  { %v3266_v28 = vpop.eup %3265  ;;  %v2077_v19 = vadd.f32 %v2076_v42, %v1941_v24  ;;  %v1860_v1 = vmul.f32 %v3264_v51, %v4422_v41  ;;  %3285 = vpow2.f32 %v2630_v13  ;;  %v4557_v41 = vadd.f32 %v4145_v3, %v4811_v44  ;;  %v4813_v42 = vld [vmem:[#allocation47_spill] sm:$0xff]  ;;  %v4814_v51 = vld [vmem:[#allocation14_spill] sm:$0xff] }
 0x1a6   :  { %v3268_v55 = vpop.eup %3267  ;;  %3287 = vrcp.f32 %v1529_v7  ;;  %v1467_v20 = vadd.f32 1.0, %v3266_v28  ;;  %v4569_v62 = vadd.f32 %v3368_v14, %v4813_v42  ;;  %v4575_v24 = vadd.f32 %v3368_v14, %v4814_v51  ;;  %v4815_v28 = vld [vmem:[#allocation15_spill] sm:$0xff] }
 0x1a7   :  { %v3270_v35 = vpop.eup %3269  ;;  %v2078_v34 = vrot.slane %v2077_v19, 4  ;;  %v2182_v47 = vadd.f32 %v2181_v10, %v1860_v1  ;;  %v1527_v18 = vadd.f32 1.0, %v3268_v55  ;;  %3289 = vpow2.f32 %v2628_v56  ;;  %v4816_v1 = vld [vmem:[#allocation17_spill] sm:$0xff] }
 0x1a8   :  { %v3272_v12 = vpop.eup %3271  ;;  %3291 = vrcp.f32 %v1467_v20  ;;  %v1470_v15 = vadd.f32 1.0, %v3270_v35  ;;  %v2631_v56 = vmul.f32 -1.442695, %v4557_v41  ;;  %v2569_v49 = vmul.f32 -1.442695, %v4561_v30  ;;  %v4817_v35 = vld [vmem:[#allocation18_spill] sm:$0xff] }
 0x1a9   :  { %v3274_v46 = vpop.eup %3273  ;;  %v2079_v36 = vadd.f32 %v2078_v34, %v2077_v19  ;;  %v2183_v59 = vadd.f32 %v2182_v47, %v1861_v21  ;;  %3293 = vrcp.f32 %v1527_v18  ;;  %v1530_v37 = vadd.f32 1.0, %v3272_v12  ;;  %v4818_v12 = vld [vmem:[#allocation20_spill] sm:$0xff] }
 0x1aa   :  { %v3276_v54 = vpop.eup %3275  ;;  %3295 = vrcp.f32 %v1469_v9  ;;  %v1468_v43 = vadd.f32 1.0, %v3274_v46  ;;  %v4579_v19 = vadd.f32 %v3368_v14, %v4815_v28  ;;  %v4582_v55 = vadd.f32 %v3368_v14, %v4816_v1 }
 0x1ab   :  { %v3278_v60 = vpop.eup %3277  ;;  %v2080_v16 = vrot.slane %v2079_v36, 2  ;;  %v2184_v50 = vadd.f32 %v2183_v59, %v1862_v22  ;;  %3297 = vrcp.f32 %v1530_v37  ;;  %v1528_v8 = vadd.f32 1.0, %v3276_v54  ;;  %v4819_v59 = vld [vmem:[#allocation21_spill] sm:$0xff] }
 0x1ac   :  { %v4563_v10 = vpop.eup %3279  ;;  %3299 = vrcp.f32 %v1468_v43  ;;  %v1473_v13 = vadd.f32 1.0, %v3278_v60  ;;  %v4585_v34 = vadd.f32 %v3368_v14, %v4817_v35  ;;  %v2629_v18 = vmul.f32 -1.442695, %v4569_v62 }
 0x1ad   :  { %v4571_v0 = vpop.eup %3281  ;;  %v2081_v3 = vadd.f32 %v2080_v16, %v2079_v36  ;;  %3301 = vrcp.f32 %v1528_v8  ;;  %v4589_v22 = vadd.f32 %v3368_v14, %v4818_v12  ;;  %v2574_v36 = vmul.f32 -1.442695, %v4575_v24 }
 0x1ae   :  { %v3284_v7 = vpop.eup %3283  ;;  %3303 = vrcp.f32 %v1470_v15  ;;  %v4593_v37 = vadd.f32 %v3368_v14, %v4819_v59  ;;  %v2572_v15 = vmul.f32 -1.442695, %v4579_v19  ;;  %v2575_v43 = vmul.f32 -1.442695, %v4582_v55 }
 0x1af   :  { %v3286_v21 = vpop.eup %3285  ;;  %v2082_v9 = vrot.slane %v2081_v3, 1  ;;  %v1471_v20 = vadd.f32 1.0, %v3284_v7  ;;  %3305 = vpow2.f32 %v2571_v38  ;;  %v2573_v8 = vmul.f32 -1.442695, %v4585_v34 }
 0x1b0   :  { %v3288_v47 = vpop.eup %3287  ;;  %3307 = vrcp.f32 %v1473_v13  ;;  %v4602_v51 = vadd.f32 %v3368_v14, %v4212_v61  ;;  %v2576_v1 = vmul.f32 -1.442695, %v4593_v37 }
 0x1b1   :  { %v3290_v44 = vpop.eup %3289  ;;  %v2083_v46 = vadd.f32 %v2082_v9, %v2081_v3  ;;  %3309 = vrcp.f32 %v1471_v20  ;;  %v2578_v3 = vmul.f32 -1.442695, %v4589_v22 }
 0x1b2   :  { %v3292_v38 = vpop.eup %3291  ;;  %v1531_v54 = vadd.f32 1.0, %v3290_v44  ;;  %3311 = vpow2.f32 %v2631_v56 }
 0x1b3   :  { %v3294_v39 = vpop.eup %3293  ;;  %v2209_v60 = vpack.c.bf16 %v2083_v46, %v2083_v46  ;;  %v1803_v16 = vmul.f32 %v3292_v38, %v4469_v63  ;;  %3313 = vpow2.f32 %v2569_v49  ;;  %v1865_v49 = vmul.f32 %v3288_v47, %v4464_v2 }
 0x1b4   :  { %v3296_v13 = vpop.eup %3295  ;;  %v1863_v42 = vmul.f32 %v3294_v39, %v4473_v29  ;;  %3315 = vrcp.f32 %v1531_v54  ;;  %v4610_v29 = vadd.f32 %v3368_v14, %v4216_v25  ;;  %v1533_v47 = vadd.f32 1.0, %v3286_v21 }
 0x1b5   :  { %v3298_v56 = vpop.eup %3297  ;;  %v2264_v7 = vunpack.c.l.b16 %v2209_v60  ;;  %v2085_v28 = vadd.f32 %v4540_v53, %v1803_v16  ;;  %3317 = vpow2.f32 %v2629_v18  ;;  %v1805_v44 = vmul.f32 %v3296_v13, %v4450_v58 }
 0x1b6   :  { %v3300_v63 = vpop.eup %3299  ;;  %v2004_v9 = vsel %vm1885_vm1, %v1863_v42, 0.0  ;;  %3319 = vpow2.f32 %v2574_v36  ;;  %v2579_v14 = vmul.f32 -1.442695, %v4602_v51 }
 0x1b7   :  { %v3302_v20 = vpop.eup %3301  ;;  %v4614_v61 = vsel %vm2283_vm7, %v2264_v7, %v4513_v27  ;;  %v4616_v35 = vadd.f32 %v2184_v50, %v2004_v9  ;;  %v1804_v53 = vmul.f32 %v3300_v63, %v4486_v48  ;;  %3321 = vpow2.f32 %v2572_v15 }
 0x1b8   :  { %v3304_v18 = vpop.eup %3303  ;;  %v1864_v2 = vmul.f32 %v3302_v20, %v4493_v32  ;;  %3323 = vpow2.f32 %v2575_v43  ;;  %v1866_v27 = vmul.f32 %v3298_v56, %v4482_v5  ;;  %v2577_v48 = vmul.f32 -1.442695, %v4610_v29 }
 0x1b9   :  { %v3306_v12 = vpop.eup %3305  ;;  %v2086_v25 = vadd.f32 %v2085_v28, %v1804_v53  ;;  %3325 = vpow2.f32 %v2573_v8  ;;  %v1806_v32 = vmul.f32 %v3304_v18, %v4477_v6 }
 0x1ba   :  { %v4622_v46 = vpop.eup %3307  ;;  %v2192_v50 = vadd.f32 %v1865_v49, %v1864_v2  ;;  %3327 = vpow2.f32 %v2578_v3  ;;  %v1474_v59 = vadd.f32 1.0, %v3306_v12 }
 0x1bb   :  { %v3310_v36 = vpop.eup %3309  ;;  %v2087_v21 = vadd.f32 %v2086_v25, %v1805_v44  ;;  %3329 = vpow2.f32 %v2576_v1 }
 0x1bc   :  { %v3312_v38 = vpop.eup %3311  ;;  %3331 = vrcp.f32 %v1533_v47  ;;  %v1807_v58 = vmul.f32 %v3310_v36, %v4509_v45  ;;  %v2193_v54 = vadd.f32 %v2192_v50, %v1866_v27  ;;  %v4820_v50 = vld [vmem:[#allocation8_spill] sm:$0xff] }
 0x1bd   :  { %v3314_v15 = vpop.eup %3313  ;;  %v2088_v43 = vadd.f32 %v2087_v21, %v1806_v32  ;;  %v1534_v39 = vadd.f32 1.0, %v3312_v38  ;;  %3333 = vpow2.f32 %v2579_v14 }
 0x1be   :  { %v3316_v5 = vpop.eup %3315  ;;  %v1948_v60 = vsel %vm1885_vm1, %v1807_v58, 0.0  ;;  %v1472_v16 = vadd.f32 1.0, %v3314_v15  ;;  %3335 = vpow2.f32 %v2577_v48  ;;  %v1485_v48 = vadd.f32 1.0, %v4820_v50 }
 0x1bf   :  { %v3318_v8 = vpop.eup %3317  ;;  %v2089_v6 = vadd.f32 %v2088_v43, %v1948_v60  ;;  %v1867_v13 = vmul.f32 %v3316_v5, %v4534_v23  ;;  %3337 = vrcp.f32 %v1474_v59  ;;  %v1483_v58 = vadd.f32 1.0, %v4563_v10 }
 0x1c0   :  { %v3320_v42 = vpop.eup %3319  ;;  %3339 = vrcp.f32 %v1472_v16  ;;  %v1532_v3 = vadd.f32 1.0, %v3318_v8  ;;  %v1809_v15 = vmul.f32 %v4622_v46, %v4503_v31  ;;  %v1484_v60 = vadd.f32 1.0, %v4571_v0 }
 0x1c1   :  { %v3322_v45 = vpop.eup %3321  ;;  %v2090_v56 = vrot.slane %v2089_v6, 4  ;;  %v2194_v7 = vadd.f32 %v2193_v54, %v1867_v13  ;;  %3341 = vrcp.f32 %v1534_v39  ;;  %v1477_v28 = vadd.f32 1.0, %v3320_v42 }
 0x1c2   :  { %v3324_v1 = vpop.eup %3323  ;;  %3343 = vrcp.f32 %v1532_v3  ;;  %v1475_v63 = vadd.f32 1.0, %v3322_v45 }
 0x1c3   :  { %v3326_v49 = vpop.eup %3325  ;;  %v2091_v9 = vadd.f32 %v2090_v56, %v2089_v6  ;;  %3345 = vrcp.f32 %v1477_v28  ;;  %v1478_v20 = vadd.f32 1.0, %v3324_v1 }
 0x1c4   :  { %v3328_v53 = vpop.eup %3327  ;;  %3347 = vrcp.f32 %v1475_v63  ;;  %v1476_v18 = vadd.f32 1.0, %v3326_v49 }
 0x1c5   :  { %v3330_v23 = vpop.eup %3329  ;;  %v2092_v2 = vrot.slane %v2091_v9, 2  ;;  %3349 = vrcp.f32 %v1478_v20  ;;  %v1481_v12 = vadd.f32 1.0, %v3328_v53 }
 0x1c6   :  { %v3332_v47 = vpop.eup %3331  ;;  %3351 = vrcp.f32 %v1476_v18  ;;  %v1479_v44 = vadd.f32 1.0, %v3330_v23 }
 0x1c7   :  { %v3334_v25 = vpop.eup %3333  ;;  %v2093_v14 = vadd.f32 %v2092_v2, %v2091_v9  ;;  %v1869_v31 = vmul.f32 %v3332_v47, %v4520_v11  ;;  %v4821_v2 = vld [vmem:[#allocation23_spill] sm:$0xff] }
 0x1c8   :  { %v3336_v27 = vpop.eup %3335  ;;  %3353 = vrcp.f32 %v1479_v44  ;;  %v1482_v21 = vadd.f32 1.0, %v3334_v25 }
 0x1c9   :  { %v3338_v36 = vpop.eup %3337  ;;  %v2094_v32 = vrot.slane %v2093_v14, 1  ;;  %v1480_v59 = vadd.f32 1.0, %v3336_v27  ;;  %3355 = vrcp.f32 %v1481_v12 }
 0x1ca   :  { %v3340_v38 = vpop.eup %3339  ;;  %v1810_v16 = vmul.f32 %v3338_v36, %v4549_v26  ;;  %v2162_v36 = vrot.slane %v4400_v17, 4 }
 0x1cb   :  { %v3342_v54 = vpop.eup %3341  ;;  %v2095_v43 = vadd.f32 %v2094_v32, %v2093_v14  ;;  %v1808_v39 = vmul.f32 %v3340_v38, %v4561_v30  ;;  %3357 = vrcp.f32 %v1480_v59 }
 0x1cc   :  { %v3344_v5 = vpop.eup %3343  ;;  %3359 = vrcp.f32 %v1485_v48  ;;  %v1870_v46 = vmul.f32 %v3342_v54, %v4557_v41  ;;  %v2186_v54 = vrot.slane %v4616_v35, 4 }
 0x1cd   :  { %v3346_v8 = vpop.eup %3345  ;;  %v2210_v6 = vpack.c.bf16 %v2095_v43, %v2095_v43  ;;  %v2096_v13 = vadd.f32 %v1809_v15, %v1808_v39  ;;  %v1868_v10 = vmul.f32 %v3344_v5, %v4569_v62  ;;  %3361 = vrcp.f32 %v1482_v21 }
 0x1ce   :  { %v3348_v42 = vpop.eup %3347  ;;  %3363 = vrcp.f32 %v1483_v58  ;;  %v2011_v11 = vsel %vm1885_vm1, %v1870_v46, 0.0  ;;  %v2187_v46 = vadd.f32 %v2186_v54, %v4616_v35 }
 0x1cf   :  { %v3350_v30 = vpop.eup %3349  ;;  %v2265_v3 = vunpack.c.l.b16 %v2210_v6  ;;  %v2195_v45 = vadd.f32 %v2194_v7, %v1868_v10  ;;  %v1811_v0 = vmul.f32 %v3348_v42, %v4579_v19  ;;  %v2097_v56 = vadd.f32 %v2096_v13, %v1810_v16 }
 0x1d0   :  { %v3352_v26 = vpop.eup %3351  ;;  %3365 = vrcp.f32 %v1484_v60  ;;  %v1814_v41 = vmul.f32 %v3350_v30, %v4582_v55  ;;  %v1813_v19 = vmul.f32 %v3346_v8, %v4575_v24  ;;  %v4822_v55 = vld [vmem:[#allocation42_spill] sm:$0xff]  ;;  %v2150_v24 = vrot.slane %v4232_v52, 4  ;;  %v4823_v60 = vld [vmem:[#allocation7_spill] sm:$0xff] }
 0x1d1   :  { %v2196_v28 = vadd.f32 %v2195_v45, %v1869_v31  ;;  %v2098_v1 = vadd.f32 %v2097_v56, %v1811_v0  ;;  %v1812_v62 = vmul.f32 %v3352_v26, %v4585_v34  ;;  %v4645_v63 = vsel %vm2285_vm8, %v2265_v3, %v4614_v61 }
 0x1d2   :  { %v3354_v49 = vpop.eup %3353  ;;  %v2126_v34 = vrot.slane %v4821_v2, 4  ;;  %v1955_v61 = vsel %vm1885_vm1, %v1814_v41, 0.0  ;;  %v2138_v25 = vrot.slane %v4822_v55, 4  ;;  %v2163_v8 = vadd.f32 %v2162_v36, %v4400_v17 }
 0x1d3   :  { %v2197_v7 = vadd.f32 %v2196_v28, %v2011_v11  ;;  %v2099_v9 = vadd.f32 %v2098_v1, %v1812_v62  ;;  %v3356_v20 = vpop.eup %3355  ;;  %v1815_v47 = vmul.f32 %v3354_v49, %v4593_v37  ;;  %v2174_v37 = vrot.slane %v4527_v57, 4 }
 0x1d4   :  { %v1817_v50 = vmul.f32 %v3356_v20, %v4589_v22  ;;  %v2127_v59 = vadd.f32 %v2126_v34, %v4821_v2  ;;  %v2139_v58 = vadd.f32 %v2138_v25, %v4822_v55  ;;  %v2151_v22 = vadd.f32 %v2150_v24, %v4232_v52 }
 0x1d5   :  { %v3358_v53 = vpop.eup %3357  ;;  %v2100_v18 = vadd.f32 %v2099_v9, %v1813_v19  ;;  %v2198_v39 = vrot.slane %v2197_v7, 4  ;;  %v2175_v10 = vadd.f32 %v2174_v37, %v4527_v57  ;;  %v2164_v0 = vrot.slane %v2163_v8, 2 }
 0x1d6   :  { %v3360_v23 = vpop.eup %3359  ;;  %v1816_v12 = vmul.f32 %v3358_v53, %v4610_v29  ;;  %v2140_v31 = vrot.slane %v2139_v58, 2  ;;  %v2188_v1 = vrot.slane %v2187_v46, 2 }
 0x1d7   :  { %v3362_v44 = vpop.eup %3361  ;;  %v2101_v14 = vadd.f32 %v2100_v18, %v1955_v61  ;;  %v1821_v16 = vmul.f32 %v3360_v23, %v4823_v60  ;;  %v2199_v3 = vadd.f32 %v2198_v39, %v2197_v7  ;;  %v2176_v26 = vrot.slane %v2175_v10, 2 }
 0x1d8   :  { %v3364_v27 = vpop.eup %3363  ;;  %v2108_v48 = vadd.f32 %v1816_v12, %v1815_v47  ;;  %v1818_v29 = vmul.f32 %v3362_v44, %v4602_v51  ;;  %v2128_v51 = vrot.slane %v2127_v59, 2  ;;  %v2165_v49 = vadd.f32 %v2164_v0, %v2163_v8 }
 0x1d9   :  { %v2102_v32 = vrot.slane %v2101_v14, 4  ;;  %v1819_v43 = vmul.f32 %v3364_v27, %v4428_v4  ;;  %v2152_v4 = vrot.slane %v2151_v22, 2  ;;  %v1962_v45 = vsel %vm1885_vm1, %v1821_v16, 0.0 }
 0x1da   :  { %v3366_v21 = vpop.eup %3365  ;;  %v2109_v38 = vadd.f32 %v2108_v48, %v1817_v50  ;;  %v2129_v17 = vadd.f32 %v2128_v51, %v2127_v59  ;;  %v2200_v11 = vrot.slane %v2199_v3, 2  ;;  %v2177_v9 = vadd.f32 %v2176_v26, %v2175_v10 }
 0x1db   :  { %v2103_v15 = vadd.f32 %v2102_v32, %v2101_v14  ;;  %v1820_v13 = vmul.f32 %v3366_v21, %v4434_v40  ;;  %v2141_v40 = vadd.f32 %v2140_v31, %v2139_v58  ;;  %v2153_v57 = vadd.f32 %v2152_v4, %v2151_v22 }
 0x1dc   :  { %v2110_v5 = vadd.f32 %v2109_v38, %v1818_v29  ;;  %v2130_v19 = vrot.slane %v2129_v17, 1  ;;  %v2189_v33 = vadd.f32 %v2188_v1, %v2187_v46  ;;  %v2201_v23 = vadd.f32 %v2200_v11, %v2199_v3  ;;  %v2632_v3 = vld [vmem:[%s4702_s4] ss:$0 sm:$0xff] }
 0x1dd   :  { %v2104_v6 = vrot.slane %v2103_v15, 2  ;;  %v2142_v20 = vrot.slane %v2141_v40, 1  ;;  %v2154_v18 = vrot.slane %v2153_v57, 1  ;;  %v2166_v34 = vrot.slane %v2165_v49, 1 }
 0x1de   :  { %v2111_v42 = vadd.f32 %v2110_v5, %v1819_v43  ;;  %v2131_v47 = vadd.f32 %v2130_v19, %v2129_v17  ;;  %v2178_v12 = vrot.slane %v2177_v9, 1  ;;  %v2190_v25 = vrot.slane %v2189_v33, 1 }
 0x1df   :  { %v2105_v30 = vadd.f32 %v2104_v6, %v2103_v15  ;;  %v2143_v55 = vadd.f32 %v2142_v20, %v2141_v40  ;;  %v2155_v14 = vadd.f32 %v2154_v18, %v2153_v57  ;;  %v2202_v27 = vrot.slane %v2201_v23, 1 }
 0x1e0   :  { %v2112_v52 = vadd.f32 %v2111_v42, %v1820_v13  ;;  %v2167_v50 = vadd.f32 %v2166_v34, %v2165_v49  ;;  %v2213_v48 = vpack.c.bf16 %v2131_v47, %v2131_v47  ;;  %v2179_v36 = vadd.f32 %v2178_v12, %v2177_v9 }
 0x1e1   :  { %v2106_v56 = vrot.slane %v2105_v30, 1  ;;  %v2214_v21 = vpack.c.bf16 %v2143_v55, %v2143_v55  ;;  %v2191_v59 = vadd.f32 %v2190_v25, %v2189_v33  ;;  %v2215_v37 = vpack.c.bf16 %v2155_v14, %v2155_v14 }
 0x1e2   :  { %v2113_v28 = vadd.f32 %v2112_v52, %v1962_v45  ;;  %v2203_v29 = vadd.f32 %v2202_v27, %v2201_v23  ;;  %v2216_v58 = vpack.c.bf16 %v2167_v50, %v2167_v50  ;;  %v2268_v54 = vunpack.c.l.b16 %v2213_v48 }
 0x1e3   :  { %v2107_v62 = vadd.f32 %v2106_v56, %v2105_v30  ;;  %v2269_v43 = vunpack.c.l.b16 %v2214_v21  ;;  %v2218_v22 = vpack.c.bf16 %v2191_v59, %v2191_v59  ;;  %v2270_v39 = vunpack.c.l.b16 %v2215_v37 }
 0x1e4   :  { %v2114_v41 = vrot.slane %v2113_v28, 4  ;;  %v2219_v5 = vpack.c.bf16 %v2203_v29, %v2203_v29  ;;  %v2271_v16 = vunpack.c.l.b16 %v2216_v58 }
 0x1e5   :  { %v2211_v35 = vpack.c.bf16 %v2107_v62, %v2107_v62  ;;  %v2273_v51 = vunpack.c.l.b16 %v2218_v22 }
 0x1e6   :  { %v2115_v7 = vadd.f32 %v2114_v41, %v2113_v28  ;;  %v2274_v42 = vunpack.c.l.b16 %v2219_v5 }
 0x1e7   :  { %v2266_v53 = vunpack.c.l.b16 %v2211_v35 }
 0x1e8   :  { %v2116_v2 = vrot.slane %v2115_v7, 2 }
 0x1e9   :  { %v2288_v61 = vsel %vm2287_vm9, %v2266_v53, %v4645_v63  ;;  %v2217_v63 = vpack.c.bf16 %v2179_v36, %v2179_v36 }
 0x1ea   :  { %v2117_v44 = vadd.f32 %v2116_v2, %v2115_v7 }
 0x1eb   :  { %v2272_v6 = vunpack.c.l.b16 %v2217_v63 }
 0x1ec   :  { %v2118_v24 = vrot.slane %v2117_v44, 1 }
 0x1ee   :  { %v2119_v32 = vadd.f32 %v2118_v24, %v2117_v44 }
 0x1f0   :  { %v2212_v38 = vpack.c.bf16 %v2119_v32, %v2119_v32 }
 0x1f2   :  { %v2267_v15 = vunpack.c.l.b16 %v2212_v38 }
 0x1f4   :  { %v2289_v60 = vsel %vm2275_vm2, %v2268_v54, %v2267_v15 }
 0x1f5   :  { %v2290_v8 = vsel %vm2277_vm3, %v2269_v43, %v2289_v60 }
 0x1f6   :  { %v2291_v13 = vsel %vm2279_vm4, %v2270_v39, %v2290_v8 }
 0x1f7   :  { %v2292_v10 = vsel %vm2281_vm5, %v2271_v16, %v2291_v13 }
 0x1f8   :  { %v2293_v31 = vsel %vm2283_vm7, %v2272_v6, %v2292_v10 }
 0x1f9   :  { %v2294_v46 = vsel %vm2285_vm8, %v2273_v51, %v2293_v31 }
 0x1fa   :  { %v2295_v30 = vsel %vm2287_vm9, %v2274_v42, %v2294_v46 }
 0x1fb   :  { %v2296_v4 = vpack.c.b16 %v2295_v30, %v2288_v61 }
 0x1fd   :  { %2841 = vmatmul.mubr.bf16.vlgmr.msra.gmra.mrb[52].mxu1 %v2296_v4 }
 0x2d0   :  { %v2380_v52 = vpop.f32.mrb[52].mxu1 }
 0x2d1   :  { %v2381_v45 = vadd.f32 %v2632_v3, %v2380_v52  ;;  %v2842_v0 = vpop.f32.mrb[53].mxu1 }
 0x2d2   :  { %v2383_v56 = vpop.f32.mrb[54].mxu1 }
 0x2d3   :  { %2387 = vst [vmem:[#allocation2] sm:$0xff] %v2381_v45  ;;  %v2384_v17 = vadd.f32 %v2632_v3, %v2383_v56  ;;  %v2843_v26 = vpop.f32.mrb[55].mxu1 }
 0x2d5   :  { %2388 = vst [vmem:[#allocation2 + $0x8] sm:$0xff] %v2384_v17 }
 0x2d6   :  { %3380 = shalt.err (!%p3377_p4)
}
 0x2d7   :  { %s3381_s28 = scalar_lea.hbm %s4703_s5, 256 }
 0x2d8   :  { %p3382_p5 = scmp.ne.s32.totalorder %s4703_s5, %s3381_s28  ;;  %p3385_p6 = scmp.lt.u32.totalorder %s3381_s28, %s4703_s5 }
 0x2da   :  { %p3387_p7 = pnand %p3385_p6, %p3382_p5 }
 0x2dc   :  { %3390 = shalt.err (!%p3387_p7)
}
 0x2dd   :  { %s3396_s7 = smov 128   ;;  %s3397_s8 = smov 8  }
 0x2de   :  { %2400 = dma.vmem_to_hbm [thread:$0]  %s2395_s26, 256, %s4703_s5, [#allocation3], %s3396_s7, %s3396_s7, %s3397_s8  }
 0x2df   :  { %3391 = dma.done.wait [#allocation3], 256  }
 0x2e0   :  { %3392 = vsyncadd [#allocation3], 4294967040 }
 0x2e1   :  { %2404 = vsyncpa [#allocation3], 1 }

</bundles_post_ra>
